<compile_context>
chip_gen: v5e
topology: v5e:2x2
jax: 0.10.0
libtpu: 0.0.40
codegen_flags: <defaults>
</compile_context>

<pallas_src>
import functools
import math

import jax
import jax.numpy as jnp
from jax.experimental import pallas as pl
from jax.experimental.pallas import tpu as pltpu


def _round_up(x, m):
    return (x + m - 1) // m * m


def _vmem_limit(nbytes):
    # Explicit scoped-VMEM budget: computed need + headroom, floored at the v5e
    # default (16 MiB), capped at v7x physical VMEM (64 MiB).
    return int(min(max(nbytes, 16 << 20), 64 << 20))


def _const_index_map(ndim):
    return lambda b: (0,) * ndim


# ----------------------------------------------------------------------------
# Pallas kernels
# ----------------------------------------------------------------------------
def tower_kernel(x_ref, *refs, K, L, pads, HALO, R):
    """Fused per-kernel-size tower: baseconv(+bias)+tanh, then residual blocks
    (conv1+BN+tanh, folded 1x1 shortcut+BN, conv2+BN+add+tanh), all in VMEM.

    refs = [w_base, a_base, b_base,
            (w1sc, a1sc, b1sc, w2, a2, b2) per block,
            o_ref, buf]
    Conv weights are (K, Cin_pad, Cout_pad) bf16; scales/shifts are f32 rows.
    buf is an (R, Wmax) f32 halo buffer; live rows are [HALO, HALO+L).
    """
    pad = K // 2
    num_layers = len(pads) - 1
    nw = 3 + 6 * num_layers
    w = refs[:nw]
    o_ref = refs[nw]
    buf = refs[nw + 1]
    Wmax = buf.shape[1]

    # Zero ONLY the halo rows (tiny), every step: correct even when the
    # "parallel" grid is core-sharded (a program_id==0 guard would skip init on
    # the second TensorCore) and avoids full-buffer memset sweeps.
    tail = R - HALO - L
    buf[pl.ds(0, HALO), :] = jnp.zeros((HALO, Wmax), jnp.float32)
    if tail:
        buf[pl.ds(HALO + L, tail), :] = jnp.zeros((tail, Wmax), jnp.float32)

    def conv(cin, w_ref):
        # Per-tap accumulation: K matmuls of contraction depth cin (>=128),
        # bf16 MXU inputs, f32 accumulation. No patch materialisation.
        acc = None
        for t in range(K):
            lhs = buf[pl.ds(HALO - pad + t, L), :cin].astype(jnp.bfloat16)
            part = jnp.dot(lhs, w_ref[t], preferred_element_type=jnp.float32)
            acc = part if acc is None else acc + part
        return acc

    # base conv: Conv1d(E, E, K, padding=K//2, bias=True) -> tanh
    Epad = pads[0]
    buf[pl.ds(HALO, L), :Epad] = x_ref[...].astype(jnp.float32)
    h = jnp.tanh(conv(Epad, w[0]) * w[1][...] + w[2][...])           # (L, Epad)

    for i in range(num_layers):
        cin, cout = pads[i], pads[i + 1]
        w1sc, a1sc, b1sc, w2, a2, b2 = w[3 + 6 * i: 9 + 6 * i]
        buf[pl.ds(HALO, L), :cin] = h
        # One matmul produces conv1 (cols [:cout]) and the folded 1x1 shortcut
        # (cols [cout:], weight at the centre tap); both BN-scaled/shifted.
        pre = conv(cin, w1sc) * a1sc[...] + b1sc[...]                 # (L, 2*cout)
        h1 = jnp.tanh(pre[:, :cout])
        sc = pre[:, cout:]
        buf[pl.ds(HALO, L), :cout] = h1                               # reuse buf; h dead
        h = jnp.tanh(conv(cout, w2) * a2[...] + b2[...] + sc)

    o_ref[...] = h.astype(o_ref.dtype)


def attention_kernel(*refs, L, Fpad, Apad, n_k):
    """AttentionWithContext (seq_len=None), one batch element per grid step.

    refs = [h_0 .. h_{n_k-1}, w1_stack, b1, w2row, b2, o_ref]
    h_i: (L, Fpad) bf16 tower output block; w1_stack: (n_k, Fpad, Apad) bf16.
    Output block: (1, n_k*Fpad) f32 (lane-dense).
    """
    h_refs = refs[:n_k]
    w1_ref, b1_ref, w2row_ref, b2_ref, o_ref = refs[n_k:n_k + 5]

    # Accumulate the (L, Apad) attention pre-activation tower-by-tower:
    # no in-kernel channel concat, no full f32 copy of the inputs.
    acc = None
    for i in range(n_k):
        d = jnp.dot(h_refs[i][...], w1_ref[i], preferred_element_type=jnp.float32)
        acc = d if acc is None else acc + d
    att = jnp.tanh(acc + b1_ref[...])                                 # (L, Apad)

    # context score via VPU multiply + lane reduce (no N=1 matmul)
    s = jnp.sum(att * w2row_ref[...], axis=-1, keepdims=True) + b2_ref[...]   # (L, 1)
    e = jnp.exp(s - jnp.max(s, axis=0, keepdims=True))
    score = e * pl.reciprocal(jnp.sum(e, axis=0, keepdims=True), approx=True)

    # per-tower weighted sum -> lane-dense (1, n_k*Fpad) output block
    for i in range(n_k):
        o_ref[:, i * Fpad:(i + 1) * Fpad] = jnp.sum(
            score * h_refs[i][...].astype(jnp.float32), axis=0, keepdims=True)


# ----------------------------------------------------------------------------
# pallas_call wrappers
# ----------------------------------------------------------------------------
def _tower_call(x, tw, *, K, pads, B, L):
    pad = K // 2
    HALO = max(8, _round_up(pad, 8))          # sublane-aligned live region
    R = HALO + _round_up(L + pad, 8)
    Wmax = max(pads)
    Epad, Fpad = pads[0], pads[-1]

    flat_w = [tw["w_base"], tw["a_base"], tw["b_base"]]
    for blk in tw["blocks"]:
        flat_w += [blk["w1sc"], blk["a1sc"], blk["b1sc"],
                   blk["w2"], blk["a2"], blk["b2"]]

    in_specs = [pl.BlockSpec((None, L, Epad), lambda b: (b, 0, 0))]
    in_specs += [pl.BlockSpec(w.shape, _const_index_map(w.ndim)) for w in flat_w]

    # Explicit VMEM budget: double-buffered blocks + weights (x2) + scratch +
    # headroom for live intermediates.
    w_bytes = sum(int(w.size) * w.dtype.itemsize for w in flat_w)
    blk_bytes = 2 * (L * Epad * 2) + 2 * (L * Fpad * 2)
    scratch_bytes = R * Wmax * 4
    live_bytes = 8 * L * Wmax * 4
    vmem = _vmem_limit(2 * w_bytes + blk_bytes + scratch_bytes + live_bytes + (2 << 20))

    kernel = functools.partial(tower_kernel, K=K, L=L, pads=tuple(pads),
                               HALO=HALO, R=R)
    return pl.pallas_call(
        kernel,
        out_shape=jax.ShapeDtypeStruct((B, L, Fpad), jnp.bfloat16),
        grid=(B,),
        in_specs=in_specs,
        out_specs=pl.BlockSpec((None, L, Fpad), lambda b: (b, 0, 0)),
        scratch_shapes=[pltpu.VMEM((R, Wmax), jnp.float32)],
        compiler_params=pltpu.CompilerParams(
            dimension_semantics=("parallel",),
            vmem_limit_bytes=vmem),
    )(x, *flat_w)


def _attention_call(tower_outs, att, *, B, L, Fpad, Apad):
    n_k = len(tower_outs)
    nC = n_k * Fpad
    in_specs = [pl.BlockSpec((None, L, Fpad), lambda b: (b, 0, 0))
                for _ in range(n_k)]
    in_specs += [pl.BlockSpec(att["w1"].shape, _const_index_map(3)),
                 pl.BlockSpec(att["b1"].shape, _const_index_map(2)),
                 pl.BlockSpec(att["w2row"].shape, _const_index_map(2)),
                 pl.BlockSpec(att["b2"].shape, _const_index_map(2))]

    w_bytes = sum(int(att[k].size) * att[k].dtype.itemsize
                  for k in ("w1", "b1", "w2row", "b2"))
    blk_bytes = 2 * n_k * (L * Fpad * 2) + 2 * (nC * 4)
    live_bytes = 4 * L * Apad * 4 + 2 * L * Fpad * 4
    vmem = _vmem_limit(2 * w_bytes + blk_bytes + live_bytes + (2 << 20))

    kernel = functools.partial(attention_kernel, L=L, Fpad=Fpad, Apad=Apad, n_k=n_k)
    return pl.pallas_call(
        kernel,
        out_shape=jax.ShapeDtypeStruct((B, 1, nC), jnp.float32),
        grid=(B,),
        in_specs=in_specs,
        out_specs=pl.BlockSpec((None, 1, nC), lambda b: (b, 0, 0)),
        compiler_params=pltpu.CompilerParams(
            dimension_semantics=("parallel",),
            vmem_limit_bytes=vmem),
    )(*tower_outs, att["w1"], att["b1"], att["w2row"], att["b2"])


# ----------------------------------------------------------------------------
# Parameter construction (mirrors MultiResCNN.__init__ shapes) + packing
# ----------------------------------------------------------------------------
def _xavier_uniform(key, shape, fan_in, fan_out):
    bound = math.sqrt(6.0 / (fan_in + fan_out))
    return jax.random.uniform(key, shape, jnp.float32, -bound, bound)


def _conv_default(key, shape):            # (K, Cin, Cout), PyTorch default bound
    K, cin, _ = shape
    bound = 1.0 / math.sqrt(cin * K)
    return jax.random.uniform(key, shape, jnp.float32, -bound, bound)


def _pad_row(v, n):
    v = jnp.asarray(v, jnp.float32).reshape(1, -1)
    return jnp.pad(v, ((0, 0), (0, n - v.shape[1])))


def _pack_conv(w, cin_pad, cout_pad):      # (K,cin,cout) -> (K,cin_pad,cout_pad) bf16
    _, cin, cout = w.shape
    return jnp.pad(w, ((0, 0), (0, cin_pad - cin),
                       (0, cout_pad - cout))).astype(jnp.bfloat16)


def _combine_w1_wsc(w1, wsc, cin_pad, cout_pad):
    """conv1 weight in cols [:cout_pad]; 1x1 shortcut at centre tap, cols [cout_pad:]."""
    K, cin, cout = w1.shape
    wc = jnp.zeros((K, cin_pad, 2 * cout_pad), jnp.float32)
    wc = wc.at[:, :cin, :cout].set(w1)
    wc = wc.at[K // 2, :cin, cout_pad:cout_pad + cout].set(wsc[0])
    return wc.astype(jnp.bfloat16)


def build_model(key, *, filter_num, filter_sizes, num_layers, vocab_size,
                embed_dim, bn_eps=1e-5):
    kernels = [int(k) for k in filter_sizes.split(",")]
    # TODO(synk): only odd kernel sizes supported (PyTorch even-k "same" pad
    #   yields L+1 outputs).
    assert all(k % 2 == 1 for k in kernels)
    conv_dim = {1: [embed_dim, filter_num],
                2: [embed_dim, 100, filter_num],
                3: [embed_dim, 150, 100, filter_num],
                4: [embed_dim, 200, 150, 100, filter_num]}[num_layers]
    n_k = len(kernels)
    encode_dim = filter_num * n_k
    pads = [_round_up(c, 128) for c in conv_dim]     # per-layer lane padding
    Epad, Fpad = pads[0], pads[-1]
    Apad = _round_up(encode_dim, 128)

    keys = iter(jax.random.split(key, 512))
    # Eval-mode BN with default running stats (mean=0, var=1, gamma=1, beta=0).
    # TODO(synk): a trained model's running stats / affine params must be folded
    #   into (scale, shift) here.
    bn_s = 1.0 / math.sqrt(1.0 + bn_eps)

    # embedding table: channel-padded + bf16 so the gather output is already
    # the lane-dense bf16 kernel input.
    emb = jax.random.normal(next(keys), (vocab_size, embed_dim), jnp.float32)
    emb_p = jnp.pad(emb, ((0, 0), (0, Epad - embed_dim))).astype(jnp.bfloat16)

    towers = []
    for k in kernels:
        wb = _xavier_uniform(next(keys), (k, embed_dim, embed_dim),
                             embed_dim * k, embed_dim * k)
        bbound = 1.0 / math.sqrt(embed_dim * k)
        bb = jax.random.uniform(next(keys), (embed_dim,), jnp.float32,
                                -bbound, bbound)
        tower = {
            "w_base": _pack_conv(wb, Epad, Epad),
            "a_base": _pad_row(jnp.ones((embed_dim,), jnp.float32), Epad),
            "b_base": _pad_row(bb, Epad),            # conv bias folded into shift
            "blocks": [],
        }
        for idx in range(num_layers):
            cin, cout = conv_dim[idx], conv_dim[idx + 1]
            cinp, coutp = pads[idx], pads[idx + 1]
            w1 = _conv_default(next(keys), (k, cin, cout))
            w2 = _conv_default(next(keys), (k, cout, cout))
            wsc = _conv_default(next(keys), (1, cin, cout))
            s = jnp.full((cout,), bn_s, jnp.float32)
            z = jnp.zeros((cout,), jnp.float32)
            tower["blocks"].append({
                "w1sc": _combine_w1_wsc(w1, wsc, cinp, coutp),
                "a1sc": jnp.concatenate([_pad_row(s, coutp), _pad_row(s, coutp)], axis=1),
                "b1sc": jnp.concatenate([_pad_row(z, coutp), _pad_row(z, coutp)], axis=1),
                "w2": _pack_conv(w2, coutp, coutp),
                "a2": _pad_row(s, coutp),
                "b2": _pad_row(z, coutp),
            })
        towers.append(tower)

    # attention weights, split per tower for the padded tower-output layout
    D = encode_dim
    aw1 = _xavier_uniform(next(keys), (D, D), D, D)      # effective (input, attention)
    ab1 = jax.random.uniform(next(keys), (D,), jnp.float32,
                             -1.0 / math.sqrt(D), 1.0 / math.sqrt(D))
    aw2 = _xavier_uniform(next(keys), (D, 1), D, 1)
    ab2 = jax.random.uniform(next(keys), (1,), jnp.float32,
                             -1.0 / math.sqrt(D), 1.0 / math.sqrt(D))

    w1_stack = jnp.zeros((n_k, Fpad, Apad), jnp.float32)
    for i in range(n_k):
        w1_stack = w1_stack.at[i, :filter_num, :D].set(
            aw1[i * filter_num:(i + 1) * filter_num, :])
    w2row = jnp.zeros((1, Apad), jnp.float32).at[0, :D].set(aw2[:, 0])

    params = {
        "embed": emb_p,
        "towers": towers,
        "att": {"w1": w1_stack.astype(jnp.bfloat16),
                "b1": _pad_row(ab1, Apad),
                "w2row": w2row,
                "b2": ab2.reshape(1, 1)},
    }
    cfg = {"kernels": kernels, "num_layers": num_layers, "pads": pads,
           "Epad": Epad, "Fpad": Fpad, "Apad": Apad, "filter_num": filter_num,
           "n_k": n_k, "encode_dim": encode_dim}
    return cfg, params


# ----------------------------------------------------------------------------
# MultiResCNN forward (eval mode: all Dropout layers are identity)
# ----------------------------------------------------------------------------
def multirescnn_forward(cfg, params, token_ids):
    B, L = token_ids.shape
    # TODO(synk): embedding gather left to plain XLA indexing (no Pallas win).
    x = params["embed"][token_ids]                         # (B, L, Epad) bf16

    tower_outs = []
    for k, tw in zip(cfg["kernels"], params["towers"]):
        tower_outs.append(_tower_call(x, tw, K=k, pads=cfg["pads"], B=B, L=L))

    out_full = _attention_call(tower_outs, params["att"], B=B, L=L,
                               Fpad=cfg["Fpad"], Apad=cfg["Apad"])
    out_full = out_full.reshape(B, -1)                     # (B, n_k*Fpad)

    # extract the real (unpadded) encode columns: tower i -> cols [i*Fpad : +fn]
    fn, Fpad = cfg["filter_num"], cfg["Fpad"]
    out = jnp.concatenate([out_full[:, i * Fpad: i * Fpad + fn]
                           for i in range(cfg["n_k"])], axis=-1)
    return out                                             # (B, encode_dim) f32


# ----------------------------------------------------------------------------
if __name__ == "__main__":
    B, L = 2, 16
    vocab_size, embed_dim = 50, 32
    filter_num, filter_sizes, num_layers = 16, "3,5", 1
    # dropout = 0.2  # identity at eval; unused

    key = jax.random.PRNGKey(0)
    pkey, xkey = jax.random.split(key)
    cfg, params = build_model(pkey, filter_num=filter_num,
                              filter_sizes=filter_sizes,
                              num_layers=num_layers, vocab_size=vocab_size,
                              embed_dim=embed_dim)
    token_ids = jax.random.randint(xkey, (B, L), 0, vocab_size)

    fwd = jax.jit(functools.partial(multirescnn_forward, cfg))
    out = jax.block_until_ready(fwd(params, token_ids))

    assert out.shape == (B, cfg["encode_dim"])
    assert bool(jnp.all(jnp.isfinite(out)))
    print("KERNEL_OK")
</pallas_src>

<mosaic_0001>
module attributes {stable_mosaic.version = 11 : i64} {
  func.func @attention_kernel(%arg0: i32, %arg1: memref<1x16x128xbf16, #tpu.memory_space<vmem>>, %arg2: memref<1x16x128xbf16, #tpu.memory_space<vmem>>, %arg3: memref<2x128x128xbf16, #tpu.memory_space<vmem>>, %arg4: memref<1x128xf32, #tpu.memory_space<vmem>>, %arg5: memref<1x128xf32, #tpu.memory_space<vmem>>, %arg6: memref<1x1xf32, #tpu.memory_space<vmem>>, %arg7: memref<1x1x256xf32, #tpu.memory_space<vmem>>) attributes {dimension_semantics = [#tpu.dimension_semantics<parallel>], iteration_bounds = array<i64: 2>, scalar_prefetch = 0 : i64, scratch_operands = 0 : i64, tpu.core_type = #tpu.core_type<tc>, window_params = [{transform_indices = @transform_0, window_bounds = array<i64: 1, 16, 128>}, {transform_indices = @transform_1, window_bounds = array<i64: 1, 16, 128>}, {pipeline_mode = #tpu.pipeline_mode<synchronous>, transform_indices = @transform_2, window_bounds = array<i64: 2, 128, 128>}, {pipeline_mode = #tpu.pipeline_mode<synchronous>, transform_indices = @transform_3, window_bounds = array<i64: 1, 128>}, {pipeline_mode = #tpu.pipeline_mode<synchronous>, transform_indices = @transform_4, window_bounds = array<i64: 1, 128>}, {pipeline_mode = #tpu.pipeline_mode<synchronous>, transform_indices = @transform_5, window_bounds = array<i64: 1, 1>}, {transform_indices = @transform_6, window_bounds = array<i64: 1, 1, 256>}]} {
    %c0 = arith.constant 0 : index
    %c0_0 = arith.constant 0 : index
    %c0_1 = arith.constant 0 : index
    %0 = vector.load %arg1[%c0, %c0_0, %c0_1] : memref<1x16x128xbf16, #tpu.memory_space<vmem>>, vector<1x16x128xbf16>
    %1 = vector.shape_cast %0 : vector<1x16x128xbf16> to vector<16x128xbf16>
    %c0_2 = arith.constant 0 : index
    %c0_3 = arith.constant 0 : index
    %c0_4 = arith.constant 0 : index
    %2 = vector.load %arg3[%c0_2, %c0_3, %c0_4] : memref<2x128x128xbf16, #tpu.memory_space<vmem>>, vector<1x128x128xbf16>
    %3 = vector.shape_cast %2 : vector<1x128x128xbf16> to vector<128x128xbf16>
    %cst = arith.constant dense<0.000000e+00> : vector<16x128xf32>
    %4 = tpu.matmul %1, %3, %cst {dimension_numbers = #tpu.dot_dimension_numbers<[1], [0], [0], [1], [0, 0, 1, 1], [], []>} : vector<16x128xbf16>, vector<128x128xbf16>, vector<16x128xf32> -> vector<16x128xf32>
    %c0_5 = arith.constant 0 : index
    %c0_6 = arith.constant 0 : index
    %c0_7 = arith.constant 0 : index
    %5 = vector.load %arg2[%c0_5, %c0_6, %c0_7] : memref<1x16x128xbf16, #tpu.memory_space<vmem>>, vector<1x16x128xbf16>
    %6 = vector.shape_cast %5 : vector<1x16x128xbf16> to vector<16x128xbf16>
    %c1 = arith.constant 1 : index
    %c0_8 = arith.constant 0 : index
    %c0_9 = arith.constant 0 : index
    %7 = vector.load %arg3[%c1, %c0_8, %c0_9] : memref<2x128x128xbf16, #tpu.memory_space<vmem>>, vector<1x128x128xbf16>
    %8 = vector.shape_cast %7 : vector<1x128x128xbf16> to vector<128x128xbf16>
    %cst_10 = arith.constant dense<0.000000e+00> : vector<16x128xf32>
    %9 = tpu.matmul %6, %8, %cst_10 {dimension_numbers = #tpu.dot_dimension_numbers<[1], [0], [0], [1], [0, 0, 1, 1], [], []>} : vector<16x128xbf16>, vector<128x128xbf16>, vector<16x128xf32> -> vector<16x128xf32>
    %10 = arith.addf %4, %9 : vector<16x128xf32>
    %c0_11 = arith.constant 0 : index
    %c0_12 = arith.constant 0 : index
    %11 = vector.load %arg4[%c0_11, %c0_12] : memref<1x128xf32, #tpu.memory_space<vmem>>, vector<1x128xf32>
    %12 = vector.broadcast %11 : vector<1x128xf32> to vector<16x128xf32>
    %13 = arith.addf %10, %12 : vector<16x128xf32>
    %14 = math.tanh %13 : vector<16x128xf32>
    %c0_13 = arith.constant 0 : index
    %c0_14 = arith.constant 0 : index
    %15 = vector.load %arg5[%c0_13, %c0_14] : memref<1x128xf32, #tpu.memory_space<vmem>>, vector<1x128xf32>
    %16 = vector.broadcast %15 : vector<1x128xf32> to vector<16x128xf32>
    %17 = arith.mulf %14, %16 : vector<16x128xf32>
    %cst_15 = arith.constant dense<0.000000e+00> : vector<16xf32>
    %18 = vector.multi_reduction <add>, %17, %cst_15 [1] : vector<16x128xf32> to vector<16xf32>
    %19 = vector.shape_cast %18 : vector<16xf32> to vector<16x1xf32>
    %c0_16 = arith.constant 0 : index
    %c0_17 = arith.constant 0 : index
    %20 = vector.load %arg6[%c0_16, %c0_17] : memref<1x1xf32, #tpu.memory_space<vmem>>, vector<1x1xf32>
    %21 = vector.broadcast %20 : vector<1x1xf32> to vector<16x1xf32>
    %22 = arith.addf %19, %21 : vector<16x1xf32>
    %cst_18 = arith.constant dense<0xFF800000> : vector<1xf32>
    %23 = vector.multi_reduction <maximumf>, %22, %cst_18 [0] : vector<16x1xf32> to vector<1xf32>
    %24 = vector.shape_cast %23 : vector<1xf32> to vector<1x1xf32>
    %25 = vector.broadcast %24 : vector<1x1xf32> to vector<16x1xf32>
    %26 = arith.subf %22, %25 : vector<16x1xf32>
    %27 = math.exp %26 : vector<16x1xf32>
    %cst_19 = arith.constant dense<0.000000e+00> : vector<1xf32>
    %28 = vector.multi_reduction <add>, %27, %cst_19 [0] : vector<16x1xf32> to vector<1xf32>
    %29 = vector.shape_cast %28 : vector<1xf32> to vector<1x1xf32>
    %30 = tpu.reciprocal %29 {approx = true} : vector<1x1xf32> -> vector<1x1xf32>
    %31 = vector.broadcast %30 : vector<1x1xf32> to vector<16x1xf32>
    %32 = arith.mulf %27, %31 : vector<16x1xf32>
    %c0_20 = arith.constant 0 : index
    %c0_21 = arith.constant 0 : index
    %c0_22 = arith.constant 0 : index
    %33 = vector.load %arg1[%c0_20, %c0_21, %c0_22] : memref<1x16x128xbf16, #tpu.memory_space<vmem>>, vector<1x16x128xbf16>
    %34 = vector.shape_cast %33 : vector<1x16x128xbf16> to vector<16x128xbf16>
    %35 = arith.extf %34 : vector<16x128xbf16> to vector<16x128xf32>
    %36 = vector.broadcast %32 : vector<16x1xf32> to vector<16x128xf32>
    %37 = arith.mulf %36, %35 : vector<16x128xf32>
    %cst_23 = arith.constant dense<0.000000e+00> : vector<128xf32>
    %38 = vector.multi_reduction <add>, %37, %cst_23 [0] : vector<16x128xf32> to vector<128xf32>
    %39 = vector.shape_cast %38 : vector<128xf32> to vector<1x128xf32>
    %c0_24 = arith.constant 0 : index
    %c0_25 = arith.constant 0 : index
    %c0_26 = arith.constant 0 : index
    %40 = vector.load %arg7[%c0_24, %c0_25, %c0_26] : memref<1x1x256xf32, #tpu.memory_space<vmem>>, vector<1x1x128xf32>
    %41 = vector.shape_cast %40 : vector<1x1x128xf32> to vector<1x128xf32>
    %42 = vector.shape_cast %39 : vector<1x128xf32> to vector<1x1x128xf32>
    tpu.vector_store %arg7[%c0_24, %c0_25, %c0_26], %42 {strides = array<i32>} : memref<1x1x256xf32, #tpu.memory_space<vmem>>, vector<1x1x128xf32>,
    %c0_27 = arith.constant 0 : index
    %c0_28 = arith.constant 0 : index
    %c0_29 = arith.constant 0 : index
    %43 = vector.load %arg2[%c0_27, %c0_28, %c0_29] : memref<1x16x128xbf16, #tpu.memory_space<vmem>>, vector<1x16x128xbf16>
    %44 = vector.shape_cast %43 : vector<1x16x128xbf16> to vector<16x128xbf16>
    %45 = arith.extf %44 : vector<16x128xbf16> to vector<16x128xf32>
    %46 = vector.broadcast %32 : vector<16x1xf32> to vector<16x128xf32>
    %47 = arith.mulf %46, %45 : vector<16x128xf32>
    %cst_30 = arith.constant dense<0.000000e+00> : vector<128xf32>
    %48 = vector.multi_reduction <add>, %47, %cst_30 [0] : vector<16x128xf32> to vector<128xf32>
    %49 = vector.shape_cast %48 : vector<128xf32> to vector<1x128xf32>
    %c0_31 = arith.constant 0 : index
    %c0_32 = arith.constant 0 : index
    %c128 = arith.constant 128 : index
    %50 = vector.load %arg7[%c0_31, %c0_32, %c128] : memref<1x1x256xf32, #tpu.memory_space<vmem>>, vector<1x1x128xf32>
    %51 = vector.shape_cast %50 : vector<1x1x128xf32> to vector<1x128xf32>
    %52 = vector.shape_cast %49 : vector<1x128xf32> to vector<1x1x128xf32>
    tpu.vector_store %arg7[%c0_31, %c0_32, %c128], %52 {strides = array<i32>} : memref<1x1x256xf32, #tpu.memory_space<vmem>>, vector<1x1x128xf32>,
    return
  }
  func.func @transform_0(%arg0: i32) -> (i32, i32, i32) {
    %c0_i32 = arith.constant 0 : i32
    %c0_i32_0 = arith.constant 0 : i32
    %c0_i32_1 = arith.constant 0 : i32
    return %arg0, %c0_i32, %c0_i32_0 : i32, i32, i32
  }
  func.func @transform_1(%arg0: i32) -> (i32, i32, i32) {
    %c0_i32 = arith.constant 0 : i32
    %c0_i32_0 = arith.constant 0 : i32
    %c0_i32_1 = arith.constant 0 : i32
    return %arg0, %c0_i32, %c0_i32_0 : i32, i32, i32
  }
  func.func @transform_2(%arg0: i32) -> (i32, i32, i32) {
    %c0_i32 = arith.constant 0 : i32
    %c0_i32_0 = arith.constant 0 : i32
    %c0_i32_1 = arith.constant 0 : i32
    %c0_i32_2 = arith.constant 0 : i32
    return %c0_i32, %c0_i32_0, %c0_i32_1 : i32, i32, i32
  }
  func.func @transform_3(%arg0: i32) -> (i32, i32) {
    %c0_i32 = arith.constant 0 : i32
    %c0_i32_0 = arith.constant 0 : i32
    %c0_i32_1 = arith.constant 0 : i32
    return %c0_i32, %c0_i32_0 : i32, i32
  }
  func.func @transform_4(%arg0: i32) -> (i32, i32) {
    %c0_i32 = arith.constant 0 : i32
    %c0_i32_0 = arith.constant 0 : i32
    %c0_i32_1 = arith.constant 0 : i32
    return %c0_i32, %c0_i32_0 : i32, i32
  }
  func.func @transform_5(%arg0: i32) -> (i32, i32) {
    %c0_i32 = arith.constant 0 : i32
    %c0_i32_0 = arith.constant 0 : i32
    %c0_i32_1 = arith.constant 0 : i32
    return %c0_i32, %c0_i32_0 : i32, i32
  }
  func.func @transform_6(%arg0: i32) -> (i32, i32, i32) {
    %c0_i32 = arith.constant 0 : i32
    %c0_i32_0 = arith.constant 0 : i32
    %c0_i32_1 = arith.constant 0 : i32
    return %arg0, %c0_i32, %c0_i32_0 : i32, i32, i32
  }
}

module attributes {stable_mosaic.version = 11 : i64} {
  func.func @tower_kernel(%arg0: i32, %arg1: memref<1x16x128xbf16, #tpu.memory_space<vmem>>, %arg2: memref<3x128x128xbf16, #tpu.memory_space<vmem>>, %arg3: memref<1x128xf32, #tpu.memory_space<vmem>>, %arg4: memref<1x128xf32, #tpu.memory_space<vmem>>, %arg5: memref<3x128x256xbf16, #tpu.memory_space<vmem>>, %arg6: memref<1x256xf32, #tpu.memory_space<vmem>>, %arg7: memref<1x256xf32, #tpu.memory_space<vmem>>, %arg8: memref<3x128x128xbf16, #tpu.memory_space<vmem>>, %arg9: memref<1x128xf32, #tpu.memory_space<vmem>>, %arg10: memref<1x128xf32, #tpu.memory_space<vmem>>, %arg11: memref<1x16x128xbf16, #tpu.memory_space<vmem>>, %arg12: memref<32x128xf32, #tpu.memory_space<vmem>>) attributes {dimension_semantics = [#tpu.dimension_semantics<parallel>], iteration_bounds = array<i64: 2>, scalar_prefetch = 0 : i64, scratch_operands = 1 : i64, tpu.core_type = #tpu.core_type<tc>, window_params = [{transform_indices = @transform_0, window_bounds = array<i64: 1, 16, 128>}, {pipeline_mode = #tpu.pipeline_mode<synchronous>, transform_indices = @transform_1, window_bounds = array<i64: 3, 128, 128>}, {pipeline_mode = #tpu.pipeline_mode<synchronous>, transform_indices = @transform_2, window_bounds = array<i64: 1, 128>}, {pipeline_mode = #tpu.pipeline_mode<synchronous>, transform_indices = @transform_3, window_bounds = array<i64: 1, 128>}, {pipeline_mode = #tpu.pipeline_mode<synchronous>, transform_indices = @transform_4, window_bounds = array<i64: 3, 128, 256>}, {pipeline_mode = #tpu.pipeline_mode<synchronous>, transform_indices = @transform_5, window_bounds = array<i64: 1, 256>}, {pipeline_mode = #tpu.pipeline_mode<synchronous>, transform_indices = @transform_6, window_bounds = array<i64: 1, 256>}, {pipeline_mode = #tpu.pipeline_mode<synchronous>, transform_indices = @transform_7, window_bounds = array<i64: 3, 128, 128>}, {pipeline_mode = #tpu.pipeline_mode<synchronous>, transform_indices = @transform_8, window_bounds = array<i64: 1, 128>}, {pipeline_mode = #tpu.pipeline_mode<synchronous>, transform_indices = @transform_9, window_bounds = array<i64: 1, 128>}, {transform_indices = @transform_10, window_bounds = array<i64: 1, 16, 128>}]} {
    %cst = arith.constant 0.000000e+00 : f32
    %0 = vector.broadcast %cst : f32 to vector<8x128xf32>
    %c0 = arith.constant 0 : index
    %c0_0 = arith.constant 0 : index
    %1 = vector.load %arg12[%c0, %c0_0] : memref<32x128xf32, #tpu.memory_space<vmem>>, vector<8x128xf32>
    tpu.vector_store %arg12[%c0, %c0_0], %0 {strides = array<i32>} : memref<32x128xf32, #tpu.memory_space<vmem>>, vector<8x128xf32>,
    %cst_1 = arith.constant 0.000000e+00 : f32
    %2 = vector.broadcast %cst_1 : f32 to vector<8x128xf32>
    %c24 = arith.constant 24 : index
    %c0_2 = arith.constant 0 : index
    %3 = vector.load %arg12[%c24, %c0_2] : memref<32x128xf32, #tpu.memory_space<vmem>>, vector<8x128xf32>
    tpu.vector_store %arg12[%c24, %c0_2], %2 {strides = array<i32>} : memref<32x128xf32, #tpu.memory_space<vmem>>, vector<8x128xf32>,
    %c0_3 = arith.constant 0 : index
    %c0_4 = arith.constant 0 : index
    %c0_5 = arith.constant 0 : index
    %4 = vector.load %arg1[%c0_3, %c0_4, %c0_5] : memref<1x16x128xbf16, #tpu.memory_space<vmem>>, vector<1x16x128xbf16>
    %5 = vector.shape_cast %4 : vector<1x16x128xbf16> to vector<16x128xbf16>
    %6 = arith.extf %5 : vector<16x128xbf16> to vector<16x128xf32>
    %c8 = arith.constant 8 : index
    %c0_6 = arith.constant 0 : index
    %7 = vector.load %arg12[%c8, %c0_6] : memref<32x128xf32, #tpu.memory_space<vmem>>, vector<16x128xf32>
    tpu.vector_store %arg12[%c8, %c0_6], %6 {strides = array<i32>} : memref<32x128xf32, #tpu.memory_space<vmem>>, vector<16x128xf32>,
    %c7 = arith.constant 7 : index
    %c0_7 = arith.constant 0 : index
    %8 = vector.load %arg12[%c7, %c0_7] : memref<32x128xf32, #tpu.memory_space<vmem>>, vector<16x128xf32>
    %9 = arith.truncf %8 : vector<16x128xf32> to vector<16x128xbf16>
    %c0_8 = arith.constant 0 : index
    %c0_9 = arith.constant 0 : index
    %c0_10 = arith.constant 0 : index
    %10 = vector.load %arg2[%c0_8, %c0_9, %c0_10] : memref<3x128x128xbf16, #tpu.memory_space<vmem>>, vector<1x128x128xbf16>
    %11 = vector.shape_cast %10 : vector<1x128x128xbf16> to vector<128x128xbf16>
    %cst_11 = arith.constant dense<0.000000e+00> : vector<16x128xf32>
    %12 = tpu.matmul %9, %11, %cst_11 {dimension_numbers = #tpu.dot_dimension_numbers<[1], [0], [0], [1], [0, 0, 1, 1], [], []>} : vector<16x128xbf16>, vector<128x128xbf16>, vector<16x128xf32> -> vector<16x128xf32>
    %c8_12 = arith.constant 8 : index
    %c0_13 = arith.constant 0 : index
    %13 = vector.load %arg12[%c8_12, %c0_13] : memref<32x128xf32, #tpu.memory_space<vmem>>, vector<16x128xf32>
    %14 = arith.truncf %13 : vector<16x128xf32> to vector<16x128xbf16>
    %c1 = arith.constant 1 : index
    %c0_14 = arith.constant 0 : index
    %c0_15 = arith.constant 0 : index
    %15 = vector.load %arg2[%c1, %c0_14, %c0_15] : memref<3x128x128xbf16, #tpu.memory_space<vmem>>, vector<1x128x128xbf16>
    %16 = vector.shape_cast %15 : vector<1x128x128xbf16> to vector<128x128xbf16>
    %cst_16 = arith.constant dense<0.000000e+00> : vector<16x128xf32>
    %17 = tpu.matmul %14, %16, %cst_16 {dimension_numbers = #tpu.dot_dimension_numbers<[1], [0], [0], [1], [0, 0, 1, 1], [], []>} : vector<16x128xbf16>, vector<128x128xbf16>, vector<16x128xf32> -> vector<16x128xf32>
    %18 = arith.addf %12, %17 : vector<16x128xf32>
    %c9 = arith.constant 9 : index
    %c0_17 = arith.constant 0 : index
    %19 = vector.load %arg12[%c9, %c0_17] : memref<32x128xf32, #tpu.memory_space<vmem>>, vector<16x128xf32>
    %20 = arith.truncf %19 : vector<16x128xf32> to vector<16x128xbf16>
    %c2 = arith.constant 2 : index
    %c0_18 = arith.constant 0 : index
    %c0_19 = arith.constant 0 : index
    %21 = vector.load %arg2[%c2, %c0_18, %c0_19] : memref<3x128x128xbf16, #tpu.memory_space<vmem>>, vector<1x128x128xbf16>
    %22 = vector.shape_cast %21 : vector<1x128x128xbf16> to vector<128x128xbf16>
    %cst_20 = arith.constant dense<0.000000e+00> : vector<16x128xf32>
    %23 = tpu.matmul %20, %22, %cst_20 {dimension_numbers = #tpu.dot_dimension_numbers<[1], [0], [0], [1], [0, 0, 1, 1], [], []>} : vector<16x128xbf16>, vector<128x128xbf16>, vector<16x128xf32> -> vector<16x128xf32>
    %24 = arith.addf %18, %23 : vector<16x128xf32>
    %c0_21 = arith.constant 0 : index
    %c0_22 = arith.constant 0 : index
    %25 = vector.load %arg3[%c0_21, %c0_22] : memref<1x128xf32, #tpu.memory_space<vmem>>, vector<1x128xf32>
    %26 = vector.broadcast %25 : vector<1x128xf32> to vector<16x128xf32>
    %27 = arith.mulf %24, %26 : vector<16x128xf32>
    %c0_23 = arith.constant 0 : index
    %c0_24 = arith.constant 0 : index
    %28 = vector.load %arg4[%c0_23, %c0_24] : memref<1x128xf32, #tpu.memory_space<vmem>>, vector<1x128xf32>
    %29 = vector.broadcast %28 : vector<1x128xf32> to vector<16x128xf32>
    %30 = arith.addf %27, %29 : vector<16x128xf32>
    %31 = math.tanh %30 : vector<16x128xf32>
    %c8_25 = arith.constant 8 : index
    %c0_26 = arith.constant 0 : index
    %32 = vector.load %arg12[%c8_25, %c0_26] : memref<32x128xf32, #tpu.memory_space<vmem>>, vector<16x128xf32>
    tpu.vector_store %arg12[%c8_25, %c0_26], %31 {strides = array<i32>} : memref<32x128xf32, #tpu.memory_space<vmem>>, vector<16x128xf32>,
    %c7_27 = arith.constant 7 : index
    %c0_28 = arith.constant 0 : index
    %33 = vector.load %arg12[%c7_27, %c0_28] : memref<32x128xf32, #tpu.memory_space<vmem>>, vector<16x128xf32>
    %34 = arith.truncf %33 : vector<16x128xf32> to vector<16x128xbf16>
    %c0_29 = arith.constant 0 : index
    %c0_30 = arith.constant 0 : index
    %c0_31 = arith.constant 0 : index
    %35 = vector.load %arg5[%c0_29, %c0_30, %c0_31] : memref<3x128x256xbf16, #tpu.memory_space<vmem>>, vector<1x128x256xbf16>
    %36 = vector.shape_cast %35 : vector<1x128x256xbf16> to vector<128x256xbf16>
    %cst_32 = arith.constant dense<0.000000e+00> : vector<16x256xf32>
    %37 = tpu.matmul %34, %36, %cst_32 {dimension_numbers = #tpu.dot_dimension_numbers<[1], [0], [0], [1], [0, 0, 1, 1], [], []>} : vector<16x128xbf16>, vector<128x256xbf16>, vector<16x256xf32> -> vector<16x256xf32>
    %c8_33 = arith.constant 8 : index
    %c0_34 = arith.constant 0 : index
    %38 = vector.load %arg12[%c8_33, %c0_34] : memref<32x128xf32, #tpu.memory_space<vmem>>, vector<16x128xf32>
    %39 = arith.truncf %38 : vector<16x128xf32> to vector<16x128xbf16>
    %c1_35 = arith.constant 1 : index
    %c0_36 = arith.constant 0 : index
    %c0_37 = arith.constant 0 : index
    %40 = vector.load %arg5[%c1_35, %c0_36, %c0_37] : memref<3x128x256xbf16, #tpu.memory_space<vmem>>, vector<1x128x256xbf16>
    %41 = vector.shape_cast %40 : vector<1x128x256xbf16> to vector<128x256xbf16>
    %cst_38 = arith.constant dense<0.000000e+00> : vector<16x256xf32>
    %42 = tpu.matmul %39, %41, %cst_38 {dimension_numbers = #tpu.dot_dimension_numbers<[1], [0], [0], [1], [0, 0, 1, 1], [], []>} : vector<16x128xbf16>, vector<128x256xbf16>, vector<16x256xf32> -> vector<16x256xf32>
    %43 = arith.addf %37, %42 : vector<16x256xf32>
    %c9_39 = arith.constant 9 : index
    %c0_40 = arith.constant 0 : index
    %44 = vector.load %arg12[%c9_39, %c0_40] : memref<32x128xf32, #tpu.memory_space<vmem>>, vector<16x128xf32>
    %45 = arith.truncf %44 : vector<16x128xf32> to vector<16x128xbf16>
    %c2_41 = arith.constant 2 : index
    %c0_42 = arith.constant 0 : index
    %c0_43 = arith.constant 0 : index
    %46 = vector.load %arg5[%c2_41, %c0_42, %c0_43] : memref<3x128x256xbf16, #tpu.memory_space<vmem>>, vector<1x128x256xbf16>
    %47 = vector.shape_cast %46 : vector<1x128x256xbf16> to vector<128x256xbf16>
    %cst_44 = arith.constant dense<0.000000e+00> : vector<16x256xf32>
    %48 = tpu.matmul %45, %47, %cst_44 {dimension_numbers = #tpu.dot_dimension_numbers<[1], [0], [0], [1], [0, 0, 1, 1], [], []>} : vector<16x128xbf16>, vector<128x256xbf16>, vector<16x256xf32> -> vector<16x256xf32>
    %49 = arith.addf %43, %48 : vector<16x256xf32>
    %c0_45 = arith.constant 0 : index
    %c0_46 = arith.constant 0 : index
    %50 = vector.load %arg6[%c0_45, %c0_46] : memref<1x256xf32, #tpu.memory_space<vmem>>, vector<1x256xf32>
    %51 = vector.broadcast %50 : vector<1x256xf32> to vector<16x256xf32>
    %52 = arith.mulf %49, %51 : vector<16x256xf32>
    %c0_47 = arith.constant 0 : index
    %c0_48 = arith.constant 0 : index
    %53 = vector.load %arg7[%c0_47, %c0_48] : memref<1x256xf32, #tpu.memory_space<vmem>>, vector<1x256xf32>
    %54 = vector.broadcast %53 : vector<1x256xf32> to vector<16x256xf32>
    %55 = arith.addf %52, %54 : vector<16x256xf32>
    %56 = vector.extract_strided_slice %55 {offsets = [0, 0], sizes = [16, 128], strides = [1, 1]} : vector<16x256xf32> to vector<16x128xf32>
    %57 = math.tanh %56 : vector<16x128xf32>
    %58 = vector.extract_strided_slice %55 {offsets = [0, 128], sizes = [16, 128], strides = [1, 1]} : vector<16x256xf32> to vector<16x128xf32>
    %c8_49 = arith.constant 8 : index
    %c0_50 = arith.constant 0 : index
    %59 = vector.load %arg12[%c8_49, %c0_50] : memref<32x128xf32, #tpu.memory_space<vmem>>, vector<16x128xf32>
    tpu.vector_store %arg12[%c8_49, %c0_50], %57 {strides = array<i32>} : memref<32x128xf32, #tpu.memory_space<vmem>>, vector<16x128xf32>,
    %c7_51 = arith.constant 7 : index
    %c0_52 = arith.constant 0 : index
    %60 = vector.load %arg12[%c7_51, %c0_52] : memref<32x128xf32, #tpu.memory_space<vmem>>, vector<16x128xf32>
    %61 = arith.truncf %60 : vector<16x128xf32> to vector<16x128xbf16>
    %c0_53 = arith.constant 0 : index
    %c0_54 = arith.constant 0 : index
    %c0_55 = arith.constant 0 : index
    %62 = vector.load %arg8[%c0_53, %c0_54, %c0_55] : memref<3x128x128xbf16, #tpu.memory_space<vmem>>, vector<1x128x128xbf16>
    %63 = vector.shape_cast %62 : vector<1x128x128xbf16> to vector<128x128xbf16>
    %cst_56 = arith.constant dense<0.000000e+00> : vector<16x128xf32>
    %64 = tpu.matmul %61, %63, %cst_56 {dimension_numbers = #tpu.dot_dimension_numbers<[1], [0], [0], [1], [0, 0, 1, 1], [], []>} : vector<16x128xbf16>, vector<128x128xbf16>, vector<16x128xf32> -> vector<16x128xf32>
    %c8_57 = arith.constant 8 : index
    %c0_58 = arith.constant 0 : index
    %65 = vector.load %arg12[%c8_57, %c0_58] : memref<32x128xf32, #tpu.memory_space<vmem>>, vector<16x128xf32>
    %66 = arith.truncf %65 : vector<16x128xf32> to vector<16x128xbf16>
    %c1_59 = arith.constant 1 : index
    %c0_60 = arith.constant 0 : index
    %c0_61 = arith.constant 0 : index
    %67 = vector.load %arg8[%c1_59, %c0_60, %c0_61] : memref<3x128x128xbf16, #tpu.memory_space<vmem>>, vector<1x128x128xbf16>
    %68 = vector.shape_cast %67 : vector<1x128x128xbf16> to vector<128x128xbf16>
    %cst_62 = arith.constant dense<0.000000e+00> : vector<16x128xf32>
    %69 = tpu.matmul %66, %68, %cst_62 {dimension_numbers = #tpu.dot_dimension_numbers<[1], [0], [0], [1], [0, 0, 1, 1], [], []>} : vector<16x128xbf16>, vector<128x128xbf16>, vector<16x128xf32> -> vector<16x128xf32>
    %70 = arith.addf %64, %69 : vector<16x128xf32>
    %c9_63 = arith.constant 9 : index
    %c0_64 = arith.constant 0 : index
    %71 = vector.load %arg12[%c9_63, %c0_64] : memref<32x128xf32, #tpu.memory_space<vmem>>, vector<16x128xf32>
    %72 = arith.truncf %71 : vector<16x128xf32> to vector<16x128xbf16>
    %c2_65 = arith.constant 2 : index
    %c0_66 = arith.constant 0 : index
    %c0_67 = arith.constant 0 : index
    %73 = vector.load %arg8[%c2_65, %c0_66, %c0_67] : memref<3x128x128xbf16, #tpu.memory_space<vmem>>, vector<1x128x128xbf16>
    %74 = vector.shape_cast %73 : vector<1x128x128xbf16> to vector<128x128xbf16>
    %cst_68 = arith.constant dense<0.000000e+00> : vector<16x128xf32>
    %75 = tpu.matmul %72, %74, %cst_68 {dimension_numbers = #tpu.dot_dimension_numbers<[1], [0], [0], [1], [0, 0, 1, 1], [], []>} : vector<16x128xbf16>, vector<128x128xbf16>, vector<16x128xf32> -> vector<16x128xf32>
    %76 = arith.addf %70, %75 : vector<16x128xf32>
    %c0_69 = arith.constant 0 : index
    %c0_70 = arith.constant 0 : index
    %77 = vector.load %arg9[%c0_69, %c0_70] : memref<1x128xf32, #tpu.memory_space<vmem>>, vector<1x128xf32>
    %78 = vector.broadcast %77 : vector<1x128xf32> to vector<16x128xf32>
    %79 = arith.mulf %76, %78 : vector<16x128xf32>
    %c0_71 = arith.constant 0 : index
    %c0_72 = arith.constant 0 : index
    %80 = vector.load %arg10[%c0_71, %c0_72] : memref<1x128xf32, #tpu.memory_space<vmem>>, vector<1x128xf32>
    %81 = vector.broadcast %80 : vector<1x128xf32> to vector<16x128xf32>
    %82 = arith.addf %79, %81 : vector<16x128xf32>
    %83 = arith.addf %82, %58 : vector<16x128xf32>
    %84 = math.tanh %83 : vector<16x128xf32>
    %85 = arith.truncf %84 : vector<16x128xf32> to vector<16x128xbf16>
    %c0_73 = arith.constant 0 : index
    %c0_74 = arith.constant 0 : index
    %c0_75 = arith.constant 0 : index
    %86 = vector.load %arg11[%c0_73, %c0_74, %c0_75] : memref<1x16x128xbf16, #tpu.memory_space<vmem>>, vector<1x16x128xbf16>
    %87 = vector.shape_cast %86 : vector<1x16x128xbf16> to vector<16x128xbf16>
    %88 = vector.shape_cast %85 : vector<16x128xbf16> to vector<1x16x128xbf16>
    tpu.vector_store %arg11[%c0_73, %c0_74, %c0_75], %88 {strides = array<i32>} : memref<1x16x128xbf16, #tpu.memory_space<vmem>>, vector<1x16x128xbf16>,
    return
  }
  func.func @transform_0(%arg0: i32) -> (i32, i32, i32) {
    %c0_i32 = arith.constant 0 : i32
    %c0_i32_0 = arith.constant 0 : i32
    %c0_i32_1 = arith.constant 0 : i32
    return %arg0, %c0_i32, %c0_i32_0 : i32, i32, i32
  }
  func.func @transform_1(%arg0: i32) -> (i32, i32, i32) {
    %c0_i32 = arith.constant 0 : i32
    %c0_i32_0 = arith.constant 0 : i32
    %c0_i32_1 = arith.constant 0 : i32
    %c0_i32_2 = arith.constant 0 : i32
    return %c0_i32, %c0_i32_0, %c0_i32_1 : i32, i32, i32
  }
  func.func @transform_2(%arg0: i32) -> (i32, i32) {
    %c0_i32 = arith.constant 0 : i32
    %c0_i32_0 = arith.constant 0 : i32
    %c0_i32_1 = arith.constant 0 : i32
    return %c0_i32, %c0_i32_0 : i32, i32
  }
  func.func @transform_3(%arg0: i32) -> (i32, i32) {
    %c0_i32 = arith.constant 0 : i32
    %c0_i32_0 = arith.constant 0 : i32
    %c0_i32_1 = arith.constant 0 : i32
    return %c0_i32, %c0_i32_0 : i32, i32
  }
  func.func @transform_4(%arg0: i32) -> (i32, i32, i32) {
    %c0_i32 = arith.constant 0 : i32
    %c0_i32_0 = arith.constant 0 : i32
    %c0_i32_1 = arith.constant 0 : i32
    %c0_i32_2 = arith.constant 0 : i32
    return %c0_i32, %c0_i32_0, %c0_i32_1 : i32, i32, i32
  }
  func.func @transform_5(%arg0: i32) -> (i32, i32) {
    %c0_i32 = arith.constant 0 : i32
    %c0_i32_0 = arith.constant 0 : i32
    %c0_i32_1 = arith.constant 0 : i32
    return %c0_i32, %c0_i32_0 : i32, i32
  }
  func.func @transform_6(%arg0: i32) -> (i32, i32) {
    %c0_i32 = arith.constant 0 : i32
    %c0_i32_0 = arith.constant 0 : i32
    %c0_i32_1 = arith.constant 0 : i32
    return %c0_i32, %c0_i32_0 : i32, i32
  }
  func.func @transform_7(%arg0: i32) -> (i32, i32, i32) {
    %c0_i32 = arith.constant 0 : i32
    %c0_i32_0 = arith.constant 0 : i32
    %c0_i32_1 = arith.constant 0 : i32
    %c0_i32_2 = arith.constant 0 : i32
    return %c0_i32, %c0_i32_0, %c0_i32_1 : i32, i32, i32
  }
  func.func @transform_8(%arg0: i32) -> (i32, i32) {
    %c0_i32 = arith.constant 0 : i32
    %c0_i32_0 = arith.constant 0 : i32
    %c0_i32_1 = arith.constant 0 : i32
    return %c0_i32, %c0_i32_0 : i32, i32
  }
  func.func @transform_9(%arg0: i32) -> (i32, i32) {
    %c0_i32 = arith.constant 0 : i32
    %c0_i32_0 = arith.constant 0 : i32
    %c0_i32_1 = arith.constant 0 : i32
    return %c0_i32, %c0_i32_0 : i32, i32
  }
  func.func @transform_10(%arg0: i32) -> (i32, i32, i32) {
    %c0_i32 = arith.constant 0 : i32
    %c0_i32_0 = arith.constant 0 : i32
    %c0_i32_1 = arith.constant 0 : i32
    return %arg0, %c0_i32, %c0_i32_0 : i32, i32, i32
  }
}

module attributes {stable_mosaic.version = 11 : i64} {
  func.func @tower_kernel(%arg0: i32, %arg1: memref<1x16x128xbf16, #tpu.memory_space<vmem>>, %arg2: memref<5x128x128xbf16, #tpu.memory_space<vmem>>, %arg3: memref<1x128xf32, #tpu.memory_space<vmem>>, %arg4: memref<1x128xf32, #tpu.memory_space<vmem>>, %arg5: memref<5x128x256xbf16, #tpu.memory_space<vmem>>, %arg6: memref<1x256xf32, #tpu.memory_space<vmem>>, %arg7: memref<1x256xf32, #tpu.memory_space<vmem>>, %arg8: memref<5x128x128xbf16, #tpu.memory_space<vmem>>, %arg9: memref<1x128xf32, #tpu.memory_space<vmem>>, %arg10: memref<1x128xf32, #tpu.memory_space<vmem>>, %arg11: memref<1x16x128xbf16, #tpu.memory_space<vmem>>, %arg12: memref<32x128xf32, #tpu.memory_space<vmem>>) attributes {dimension_semantics = [#tpu.dimension_semantics<parallel>], iteration_bounds = array<i64: 2>, scalar_prefetch = 0 : i64, scratch_operands = 1 : i64, tpu.core_type = #tpu.core_type<tc>, window_params = [{transform_indices = @transform_0, window_bounds = array<i64: 1, 16, 128>}, {pipeline_mode = #tpu.pipeline_mode<synchronous>, transform_indices = @transform_1, window_bounds = array<i64: 5, 128, 128>}, {pipeline_mode = #tpu.pipeline_mode<synchronous>, transform_indices = @transform_2, window_bounds = array<i64: 1, 128>}, {pipeline_mode = #tpu.pipeline_mode<synchronous>, transform_indices = @transform_3, window_bounds = array<i64: 1, 128>}, {pipeline_mode = #tpu.pipeline_mode<synchronous>, transform_indices = @transform_4, window_bounds = array<i64: 5, 128, 256>}, {pipeline_mode = #tpu.pipeline_mode<synchronous>, transform_indices = @transform_5, window_bounds = array<i64: 1, 256>}, {pipeline_mode = #tpu.pipeline_mode<synchronous>, transform_indices = @transform_6, window_bounds = array<i64: 1, 256>}, {pipeline_mode = #tpu.pipeline_mode<synchronous>, transform_indices = @transform_7, window_bounds = array<i64: 5, 128, 128>}, {pipeline_mode = #tpu.pipeline_mode<synchronous>, transform_indices = @transform_8, window_bounds = array<i64: 1, 128>}, {pipeline_mode = #tpu.pipeline_mode<synchronous>, transform_indices = @transform_9, window_bounds = array<i64: 1, 128>}, {transform_indices = @transform_10, window_bounds = array<i64: 1, 16, 128>}]} {
    %cst = arith.constant 0.000000e+00 : f32
    %0 = vector.broadcast %cst : f32 to vector<8x128xf32>
    %c0 = arith.constant 0 : index
    %c0_0 = arith.constant 0 : index
    %1 = vector.load %arg12[%c0, %c0_0] : memref<32x128xf32, #tpu.memory_space<vmem>>, vector<8x128xf32>
    tpu.vector_store %arg12[%c0, %c0_0], %0 {strides = array<i32>} : memref<32x128xf32, #tpu.memory_space<vmem>>, vector<8x128xf32>,
    %cst_1 = arith.constant 0.000000e+00 : f32
    %2 = vector.broadcast %cst_1 : f32 to vector<8x128xf32>
    %c24 = arith.constant 24 : index
    %c0_2 = arith.constant 0 : index
    %3 = vector.load %arg12[%c24, %c0_2] : memref<32x128xf32, #tpu.memory_space<vmem>>, vector<8x128xf32>
    tpu.vector_store %arg12[%c24, %c0_2], %2 {strides = array<i32>} : memref<32x128xf32, #tpu.memory_space<vmem>>, vector<8x128xf32>,
    %c0_3 = arith.constant 0 : index
    %c0_4 = arith.constant 0 : index
    %c0_5 = arith.constant 0 : index
    %4 = vector.load %arg1[%c0_3, %c0_4, %c0_5] : memref<1x16x128xbf16, #tpu.memory_space<vmem>>, vector<1x16x128xbf16>
    %5 = vector.shape_cast %4 : vector<1x16x128xbf16> to vector<16x128xbf16>
    %6 = arith.extf %5 : vector<16x128xbf16> to vector<16x128xf32>
    %c8 = arith.constant 8 : index
    %c0_6 = arith.constant 0 : index
    %7 = vector.load %arg12[%c8, %c0_6] : memref<32x128xf32, #tpu.memory_space<vmem>>, vector<16x128xf32>
    tpu.vector_store %arg12[%c8, %c0_6], %6 {strides = array<i32>} : memref<32x128xf32, #tpu.memory_space<vmem>>, vector<16x128xf32>,
    %c6 = arith.constant 6 : index
    %c0_7 = arith.constant 0 : index
    %8 = vector.load %arg12[%c6, %c0_7] : memref<32x128xf32, #tpu.memory_space<vmem>>, vector<16x128xf32>
    %9 = arith.truncf %8 : vector<16x128xf32> to vector<16x128xbf16>
    %c0_8 = arith.constant 0 : index
    %c0_9 = arith.constant 0 : index
    %c0_10 = arith.constant 0 : index
    %10 = vector.load %arg2[%c0_8, %c0_9, %c0_10] : memref<5x128x128xbf16, #tpu.memory_space<vmem>>, vector<1x128x128xbf16>
    %11 = vector.shape_cast %10 : vector<1x128x128xbf16> to vector<128x128xbf16>
    %cst_11 = arith.constant dense<0.000000e+00> : vector<16x128xf32>
    %12 = tpu.matmul %9, %11, %cst_11 {dimension_numbers = #tpu.dot_dimension_numbers<[1], [0], [0], [1], [0, 0, 1, 1], [], []>} : vector<16x128xbf16>, vector<128x128xbf16>, vector<16x128xf32> -> vector<16x128xf32>
    %c7 = arith.constant 7 : index
    %c0_12 = arith.constant 0 : index
    %13 = vector.load %arg12[%c7, %c0_12] : memref<32x128xf32, #tpu.memory_space<vmem>>, vector<16x128xf32>
    %14 = arith.truncf %13 : vector<16x128xf32> to vector<16x128xbf16>
    %c1 = arith.constant 1 : index
    %c0_13 = arith.constant 0 : index
    %c0_14 = arith.constant 0 : index
    %15 = vector.load %arg2[%c1, %c0_13, %c0_14] : memref<5x128x128xbf16, #tpu.memory_space<vmem>>, vector<1x128x128xbf16>
    %16 = vector.shape_cast %15 : vector<1x128x128xbf16> to vector<128x128xbf16>
    %cst_15 = arith.constant dense<0.000000e+00> : vector<16x128xf32>
    %17 = tpu.matmul %14, %16, %cst_15 {dimension_numbers = #tpu.dot_dimension_numbers<[1], [0], [0], [1], [0, 0, 1, 1], [], []>} : vector<16x128xbf16>, vector<128x128xbf16>, vector<16x128xf32> -> vector<16x128xf32>
    %18 = arith.addf %12, %17 : vector<16x128xf32>
    %c8_16 = arith.constant 8 : index
    %c0_17 = arith.constant 0 : index
    %19 = vector.load %arg12[%c8_16, %c0_17] : memref<32x128xf32, #tpu.memory_space<vmem>>, vector<16x128xf32>
    %20 = arith.truncf %19 : vector<16x128xf32> to vector<16x128xbf16>
    %c2 = arith.constant 2 : index
    %c0_18 = arith.constant 0 : index
    %c0_19 = arith.constant 0 : index
    %21 = vector.load %arg2[%c2, %c0_18, %c0_19] : memref<5x128x128xbf16, #tpu.memory_space<vmem>>, vector<1x128x128xbf16>
    %22 = vector.shape_cast %21 : vector<1x128x128xbf16> to vector<128x128xbf16>
    %cst_20 = arith.constant dense<0.000000e+00> : vector<16x128xf32>
    %23 = tpu.matmul %20, %22, %cst_20 {dimension_numbers = #tpu.dot_dimension_numbers<[1], [0], [0], [1], [0, 0, 1, 1], [], []>} : vector<16x128xbf16>, vector<128x128xbf16>, vector<16x128xf32> -> vector<16x128xf32>
    %24 = arith.addf %18, %23 : vector<16x128xf32>
    %c9 = arith.constant 9 : index
    %c0_21 = arith.constant 0 : index
    %25 = vector.load %arg12[%c9, %c0_21] : memref<32x128xf32, #tpu.memory_space<vmem>>, vector<16x128xf32>
    %26 = arith.truncf %25 : vector<16x128xf32> to vector<16x128xbf16>
    %c3 = arith.constant 3 : index
    %c0_22 = arith.constant 0 : index
    %c0_23 = arith.constant 0 : index
    %27 = vector.load %arg2[%c3, %c0_22, %c0_23] : memref<5x128x128xbf16, #tpu.memory_space<vmem>>, vector<1x128x128xbf16>
    %28 = vector.shape_cast %27 : vector<1x128x128xbf16> to vector<128x128xbf16>
    %cst_24 = arith.constant dense<0.000000e+00> : vector<16x128xf32>
    %29 = tpu.matmul %26, %28, %cst_24 {dimension_numbers = #tpu.dot_dimension_numbers<[1], [0], [0], [1], [0, 0, 1, 1], [], []>} : vector<16x128xbf16>, vector<128x128xbf16>, vector<16x128xf32> -> vector<16x128xf32>
    %30 = arith.addf %24, %29 : vector<16x128xf32>
    %c10 = arith.constant 10 : index
    %c0_25 = arith.constant 0 : index
    %31 = vector.load %arg12[%c10, %c0_25] : memref<32x128xf32, #tpu.memory_space<vmem>>, vector<16x128xf32>
    %32 = arith.truncf %31 : vector<16x128xf32> to vector<16x128xbf16>
    %c4 = arith.constant 4 : index
    %c0_26 = arith.constant 0 : index
    %c0_27 = arith.constant 0 : index
    %33 = vector.load %arg2[%c4, %c0_26, %c0_27] : memref<5x128x128xbf16, #tpu.memory_space<vmem>>, vector<1x128x128xbf16>
    %34 = vector.shape_cast %33 : vector<1x128x128xbf16> to vector<128x128xbf16>
    %cst_28 = arith.constant dense<0.000000e+00> : vector<16x128xf32>
    %35 = tpu.matmul %32, %34, %cst_28 {dimension_numbers = #tpu.dot_dimension_numbers<[1], [0], [0], [1], [0, 0, 1, 1], [], []>} : vector<16x128xbf16>, vector<128x128xbf16>, vector<16x128xf32> -> vector<16x128xf32>
    %36 = arith.addf %30, %35 : vector<16x128xf32>
    %c0_29 = arith.constant 0 : index
    %c0_30 = arith.constant 0 : index
    %37 = vector.load %arg3[%c0_29, %c0_30] : memref<1x128xf32, #tpu.memory_space<vmem>>, vector<1x128xf32>
    %38 = vector.broadcast %37 : vector<1x128xf32> to vector<16x128xf32>
    %39 = arith.mulf %36, %38 : vector<16x128xf32>
    %c0_31 = arith.constant 0 : index
    %c0_32 = arith.constant 0 : index
    %40 = vector.load %arg4[%c0_31, %c0_32] : memref<1x128xf32, #tpu.memory_space<vmem>>, vector<1x128xf32>
    %41 = vector.broadcast %40 : vector<1x128xf32> to vector<16x128xf32>
    %42 = arith.addf %39, %41 : vector<16x128xf32>
    %43 = math.tanh %42 : vector<16x128xf32>
    %c8_33 = arith.constant 8 : index
    %c0_34 = arith.constant 0 : index
    %44 = vector.load %arg12[%c8_33, %c0_34] : memref<32x128xf32, #tpu.memory_space<vmem>>, vector<16x128xf32>
    tpu.vector_store %arg12[%c8_33, %c0_34], %43 {strides = array<i32>} : memref<32x128xf32, #tpu.memory_space<vmem>>, vector<16x128xf32>,
    %c6_35 = arith.constant 6 : index
    %c0_36 = arith.constant 0 : index
    %45 = vector.load %arg12[%c6_35, %c0_36] : memref<32x128xf32, #tpu.memory_space<vmem>>, vector<16x128xf32>
    %46 = arith.truncf %45 : vector<16x128xf32> to vector<16x128xbf16>
    %c0_37 = arith.constant 0 : index
    %c0_38 = arith.constant 0 : index
    %c0_39 = arith.constant 0 : index
    %47 = vector.load %arg5[%c0_37, %c0_38, %c0_39] : memref<5x128x256xbf16, #tpu.memory_space<vmem>>, vector<1x128x256xbf16>
    %48 = vector.shape_cast %47 : vector<1x128x256xbf16> to vector<128x256xbf16>
    %cst_40 = arith.constant dense<0.000000e+00> : vector<16x256xf32>
    %49 = tpu.matmul %46, %48, %cst_40 {dimension_numbers = #tpu.dot_dimension_numbers<[1], [0], [0], [1], [0, 0, 1, 1], [], []>} : vector<16x128xbf16>, vector<128x256xbf16>, vector<16x256xf32> -> vector<16x256xf32>
    %c7_41 = arith.constant 7 : index
    %c0_42 = arith.constant 0 : index
    %50 = vector.load %arg12[%c7_41, %c0_42] : memref<32x128xf32, #tpu.memory_space<vmem>>, vector<16x128xf32>
    %51 = arith.truncf %50 : vector<16x128xf32> to vector<16x128xbf16>
    %c1_43 = arith.constant 1 : index
    %c0_44 = arith.constant 0 : index
    %c0_45 = arith.constant 0 : index
    %52 = vector.load %arg5[%c1_43, %c0_44, %c0_45] : memref<5x128x256xbf16, #tpu.memory_space<vmem>>, vector<1x128x256xbf16>
    %53 = vector.shape_cast %52 : vector<1x128x256xbf16> to vector<128x256xbf16>
    %cst_46 = arith.constant dense<0.000000e+00> : vector<16x256xf32>
    %54 = tpu.matmul %51, %53, %cst_46 {dimension_numbers = #tpu.dot_dimension_numbers<[1], [0], [0], [1], [0, 0, 1, 1], [], []>} : vector<16x128xbf16>, vector<128x256xbf16>, vector<16x256xf32> -> vector<16x256xf32>
    %55 = arith.addf %49, %54 : vector<16x256xf32>
    %c8_47 = arith.constant 8 : index
    %c0_48 = arith.constant 0 : index
    %56 = vector.load %arg12[%c8_47, %c0_48] : memref<32x128xf32, #tpu.memory_space<vmem>>, vector<16x128xf32>
    %57 = arith.truncf %56 : vector<16x128xf32> to vector<16x128xbf16>
    %c2_49 = arith.constant 2 : index
    %c0_50 = arith.constant 0 : index
    %c0_51 = arith.constant 0 : index
    %58 = vector.load %arg5[%c2_49, %c0_50, %c0_51] : memref<5x128x256xbf16, #tpu.memory_space<vmem>>, vector<1x128x256xbf16>
    %59 = vector.shape_cast %58 : vector<1x128x256xbf16> to vector<128x256xbf16>
    %cst_52 = arith.constant dense<0.000000e+00> : vector<16x256xf32>
    %60 = tpu.matmul %57, %59, %cst_52 {dimension_numbers = #tpu.dot_dimension_numbers<[1], [0], [0], [1], [0, 0, 1, 1], [], []>} : vector<16x128xbf16>, vector<128x256xbf16>, vector<16x256xf32> -> vector<16x256xf32>
    %61 = arith.addf %55, %60 : vector<16x256xf32>
    %c9_53 = arith.constant 9 : index
    %c0_54 = arith.constant 0 : index
    %62 = vector.load %arg12[%c9_53, %c0_54] : memref<32x128xf32, #tpu.memory_space<vmem>>, vector<16x128xf32>
    %63 = arith.truncf %62 : vector<16x128xf32> to vector<16x128xbf16>
    %c3_55 = arith.constant 3 : index
    %c0_56 = arith.constant 0 : index
    %c0_57 = arith.constant 0 : index
    %64 = vector.load %arg5[%c3_55, %c0_56, %c0_57] : memref<5x128x256xbf16, #tpu.memory_space<vmem>>, vector<1x128x256xbf16>
    %65 = vector.shape_cast %64 : vector<1x128x256xbf16> to vector<128x256xbf16>
    %cst_58 = arith.constant dense<0.000000e+00> : vector<16x256xf32>
    %66 = tpu.matmul %63, %65, %cst_58 {dimension_numbers = #tpu.dot_dimension_numbers<[1], [0], [0], [1], [0, 0, 1, 1], [], []>} : vector<16x128xbf16>, vector<128x256xbf16>, vector<16x256xf32> -> vector<16x256xf32>
    %67 = arith.addf %61, %66 : vector<16x256xf32>
    %c10_59 = arith.constant 10 : index
    %c0_60 = arith.constant 0 : index
    %68 = vector.load %arg12[%c10_59, %c0_60] : memref<32x128xf32, #tpu.memory_space<vmem>>, vector<16x128xf32>
    %69 = arith.truncf %68 : vector<16x128xf32> to vector<16x128xbf16>
    %c4_61 = arith.constant 4 : index
    %c0_62 = arith.constant 0 : index
    %c0_63 = arith.constant 0 : index
    %70 = vector.load %arg5[%c4_61, %c0_62, %c0_63] : memref<5x128x256xbf16, #tpu.memory_space<vmem>>, vector<1x128x256xbf16>
    %71 = vector.shape_cast %70 : vector<1x128x256xbf16> to vector<128x256xbf16>
    %cst_64 = arith.constant dense<0.000000e+00> : vector<16x256xf32>
    %72 = tpu.matmul %69, %71, %cst_64 {dimension_numbers = #tpu.dot_dimension_numbers<[1], [0], [0], [1], [0, 0, 1, 1], [], []>} : vector<16x128xbf16>, vector<128x256xbf16>, vector<16x256xf32> -> vector<16x256xf32>
    %73 = arith.addf %67, %72 : vector<16x256xf32>
    %c0_65 = arith.constant 0 : index
    %c0_66 = arith.constant 0 : index
    %74 = vector.load %arg6[%c0_65, %c0_66] : memref<1x256xf32, #tpu.memory_space<vmem>>, vector<1x256xf32>
    %75 = vector.broadcast %74 : vector<1x256xf32> to vector<16x256xf32>
    %76 = arith.mulf %73, %75 : vector<16x256xf32>
    %c0_67 = arith.constant 0 : index
    %c0_68 = arith.constant 0 : index
    %77 = vector.load %arg7[%c0_67, %c0_68] : memref<1x256xf32, #tpu.memory_space<vmem>>, vector<1x256xf32>
    %78 = vector.broadcast %77 : vector<1x256xf32> to vector<16x256xf32>
    %79 = arith.addf %76, %78 : vector<16x256xf32>
    %80 = vector.extract_strided_slice %79 {offsets = [0, 0], sizes = [16, 128], strides = [1, 1]} : vector<16x256xf32> to vector<16x128xf32>
    %81 = math.tanh %80 : vector<16x128xf32>
    %82 = vector.extract_strided_slice %79 {offsets = [0, 128], sizes = [16, 128], strides = [1, 1]} : vector<16x256xf32> to vector<16x128xf32>
    %c8_69 = arith.constant 8 : index
    %c0_70 = arith.constant 0 : index
    %83 = vector.load %arg12[%c8_69, %c0_70] : memref<32x128xf32, #tpu.memory_space<vmem>>, vector<16x128xf32>
    tpu.vector_store %arg12[%c8_69, %c0_70], %81 {strides = array<i32>} : memref<32x128xf32, #tpu.memory_space<vmem>>, vector<16x128xf32>,
    %c6_71 = arith.constant 6 : index
    %c0_72 = arith.constant 0 : index
    %84 = vector.load %arg12[%c6_71, %c0_72] : memref<32x128xf32, #tpu.memory_space<vmem>>, vector<16x128xf32>
    %85 = arith.truncf %84 : vector<16x128xf32> to vector<16x128xbf16>
    %c0_73 = arith.constant 0 : index
    %c0_74 = arith.constant 0 : index
    %c0_75 = arith.constant 0 : index
    %86 = vector.load %arg8[%c0_73, %c0_74, %c0_75] : memref<5x128x128xbf16, #tpu.memory_space<vmem>>, vector<1x128x128xbf16>
    %87 = vector.shape_cast %86 : vector<1x128x128xbf16> to vector<128x128xbf16>
    %cst_76 = arith.constant dense<0.000000e+00> : vector<16x128xf32>
    %88 = tpu.matmul %85, %87, %cst_76 {dimension_numbers = #tpu.dot_dimension_numbers<[1], [0], [0], [1], [0, 0, 1, 1], [], []>} : vector<16x128xbf16>, vector<128x128xbf16>, vector<16x128xf32> -> vector<16x128xf32>
    %c7_77 = arith.constant 7 : index
    %c0_78 = arith.constant 0 : index
    %89 = vector.load %arg12[%c7_77, %c0_78] : memref<32x128xf32, #tpu.memory_space<vmem>>, vector<16x128xf32>
    %90 = arith.truncf %89 : vector<16x128xf32> to vector<16x128xbf16>
    %c1_79 = arith.constant 1 : index
    %c0_80 = arith.constant 0 : index
    %c0_81 = arith.constant 0 : index
    %91 = vector.load %arg8[%c1_79, %c0_80, %c0_81] : memref<5x128x128xbf16, #tpu.memory_space<vmem>>, vector<1x128x128xbf16>
    %92 = vector.shape_cast %91 : vector<1x128x128xbf16> to vector<128x128xbf16>
    %cst_82 = arith.constant dense<0.000000e+00> : vector<16x128xf32>
    %93 = tpu.matmul %90, %92, %cst_82 {dimension_numbers = #tpu.dot_dimension_numbers<[1], [0], [0], [1], [0, 0, 1, 1], [], []>} : vector<16x128xbf16>, vector<128x128xbf16>, vector<16x128xf32> -> vector<16x128xf32>
    %94 = arith.addf %88, %93 : vector<16x128xf32>
    %c8_83 = arith.constant 8 : index
    %c0_84 = arith.constant 0 : index
    %95 = vector.load %arg12[%c8_83, %c0_84] : memref<32x128xf32, #tpu.memory_space<vmem>>, vector<16x128xf32>
    %96 = arith.truncf %95 : vector<16x128xf32> to vector<16x128xbf16>
    %c2_85 = arith.constant 2 : index
    %c0_86 = arith.constant 0 : index
    %c0_87 = arith.constant 0 : index
    %97 = vector.load %arg8[%c2_85, %c0_86, %c0_87] : memref<5x128x128xbf16, #tpu.memory_space<vmem>>, vector<1x128x128xbf16>
    %98 = vector.shape_cast %97 : vector<1x128x128xbf16> to vector<128x128xbf16>
    %cst_88 = arith.constant dense<0.000000e+00> : vector<16x128xf32>
    %99 = tpu.matmul %96, %98, %cst_88 {dimension_numbers = #tpu.dot_dimension_numbers<[1], [0], [0], [1], [0, 0, 1, 1], [], []>} : vector<16x128xbf16>, vector<128x128xbf16>, vector<16x128xf32> -> vector<16x128xf32>
    %100 = arith.addf %94, %99 : vector<16x128xf32>
    %c9_89 = arith.constant 9 : index
    %c0_90 = arith.constant 0 : index
    %101 = vector.load %arg12[%c9_89, %c0_90] : memref<32x128xf32, #tpu.memory_space<vmem>>, vector<16x128xf32>
    %102 = arith.truncf %101 : vector<16x128xf32> to vector<16x128xbf16>
    %c3_91 = arith.constant 3 : index
    %c0_92 = arith.constant 0 : index
    %c0_93 = arith.constant 0 : index
    %103 = vector.load %arg8[%c3_91, %c0_92, %c0_93] : memref<5x128x128xbf16, #tpu.memory_space<vmem>>, vector<1x128x128xbf16>
    %104 = vector.shape_cast %103 : vector<1x128x128xbf16> to vector<128x128xbf16>
    %cst_94 = arith.constant dense<0.000000e+00> : vector<16x128xf32>
    %105 = tpu.matmul %102, %104, %cst_94 {dimension_numbers = #tpu.dot_dimension_numbers<[1], [0], [0], [1], [0, 0, 1, 1], [], []>} : vector<16x128xbf16>, vector<128x128xbf16>, vector<16x128xf32> -> vector<16x128xf32>
    %106 = arith.addf %100, %105 : vector<16x128xf32>
    %c10_95 = arith.constant 10 : index
    %c0_96 = arith.constant 0 : index
    %107 = vector.load %arg12[%c10_95, %c0_96] : memref<32x128xf32, #tpu.memory_space<vmem>>, vector<16x128xf32>
    %108 = arith.truncf %107 : vector<16x128xf32> to vector<16x128xbf16>
    %c4_97 = arith.constant 4 : index
    %c0_98 = arith.constant 0 : index
    %c0_99 = arith.constant 0 : index
    %109 = vector.load %arg8[%c4_97, %c0_98, %c0_99] : memref<5x128x128xbf16, #tpu.memory_space<vmem>>, vector<1x128x128xbf16>
    %110 = vector.shape_cast %109 : vector<1x128x128xbf16> to vector<128x128xbf16>
    %cst_100 = arith.constant dense<0.000000e+00> : vector<16x128xf32>
    %111 = tpu.matmul %108, %110, %cst_100 {dimension_numbers = #tpu.dot_dimension_numbers<[1], [0], [0], [1], [0, 0, 1, 1], [], []>} : vector<16x128xbf16>, vector<128x128xbf16>, vector<16x128xf32> -> vector<16x128xf32>
    %112 = arith.addf %106, %111 : vector<16x128xf32>
    %c0_101 = arith.constant 0 : index
    %c0_102 = arith.constant 0 : index
    %113 = vector.load %arg9[%c0_101, %c0_102] : memref<1x128xf32, #tpu.memory_space<vmem>>, vector<1x128xf32>
    %114 = vector.broadcast %113 : vector<1x128xf32> to vector<16x128xf32>
    %115 = arith.mulf %112, %114 : vector<16x128xf32>
    %c0_103 = arith.constant 0 : index
    %c0_104 = arith.constant 0 : index
    %116 = vector.load %arg10[%c0_103, %c0_104] : memref<1x128xf32, #tpu.memory_space<vmem>>, vector<1x128xf32>
    %117 = vector.broadcast %116 : vector<1x128xf32> to vector<16x128xf32>
    %118 = arith.addf %115, %117 : vector<16x128xf32>
    %119 = arith.addf %118, %82 : vector<16x128xf32>
    %120 = math.tanh %119 : vector<16x128xf32>
    %121 = arith.truncf %120 : vector<16x128xf32> to vector<16x128xbf16>
    %c0_105 = arith.constant 0 : index
    %c0_106 = arith.constant 0 : index
    %c0_107 = arith.constant 0 : index
    %122 = vector.load %arg11[%c0_105, %c0_106, %c0_107] : memref<1x16x128xbf16, #tpu.memory_space<vmem>>, vector<1x16x128xbf16>
    %123 = vector.shape_cast %122 : vector<1x16x128xbf16> to vector<16x128xbf16>
    %124 = vector.shape_cast %121 : vector<16x128xbf16> to vector<1x16x128xbf16>
    tpu.vector_store %arg11[%c0_105, %c0_106, %c0_107], %124 {strides = array<i32>} : memref<1x16x128xbf16, #tpu.memory_space<vmem>>, vector<1x16x128xbf16>,
    return
  }
  func.func @transform_0(%arg0: i32) -> (i32, i32, i32) {
    %c0_i32 = arith.constant 0 : i32
    %c0_i32_0 = arith.constant 0 : i32
    %c0_i32_1 = arith.constant 0 : i32
    return %arg0, %c0_i32, %c0_i32_0 : i32, i32, i32
  }
  func.func @transform_1(%arg0: i32) -> (i32, i32, i32) {
    %c0_i32 = arith.constant 0 : i32
    %c0_i32_0 = arith.constant 0 : i32
    %c0_i32_1 = arith.constant 0 : i32
    %c0_i32_2 = arith.constant 0 : i32
    return %c0_i32, %c0_i32_0, %c0_i32_1 : i32, i32, i32
  }
  func.func @transform_2(%arg0: i32) -> (i32, i32) {
    %c0_i32 = arith.constant 0 : i32
    %c0_i32_0 = arith.constant 0 : i32
    %c0_i32_1 = arith.constant 0 : i32
    return %c0_i32, %c0_i32_0 : i32, i32
  }
  func.func @transform_3(%arg0: i32) -> (i32, i32) {
    %c0_i32 = arith.constant 0 : i32
    %c0_i32_0 = arith.constant 0 : i32
    %c0_i32_1 = arith.constant 0 : i32
    return %c0_i32, %c0_i32_0 : i32, i32
  }
  func.func @transform_4(%arg0: i32) -> (i32, i32, i32) {
    %c0_i32 = arith.constant 0 : i32
    %c0_i32_0 = arith.constant 0 : i32
    %c0_i32_1 = arith.constant 0 : i32
    %c0_i32_2 = arith.constant 0 : i32
    return %c0_i32, %c0_i32_0, %c0_i32_1 : i32, i32, i32
  }
  func.func @transform_5(%arg0: i32) -> (i32, i32) {
    %c0_i32 = arith.constant 0 : i32
    %c0_i32_0 = arith.constant 0 : i32
    %c0_i32_1 = arith.constant 0 : i32
    return %c0_i32, %c0_i32_0 : i32, i32
  }
  func.func @transform_6(%arg0: i32) -> (i32, i32) {
    %c0_i32 = arith.constant 0 : i32
    %c0_i32_0 = arith.constant 0 : i32
    %c0_i32_1 = arith.constant 0 : i32
    return %c0_i32, %c0_i32_0 : i32, i32
  }
  func.func @transform_7(%arg0: i32) -> (i32, i32, i32) {
    %c0_i32 = arith.constant 0 : i32
    %c0_i32_0 = arith.constant 0 : i32
    %c0_i32_1 = arith.constant 0 : i32
    %c0_i32_2 = arith.constant 0 : i32
    return %c0_i32, %c0_i32_0, %c0_i32_1 : i32, i32, i32
  }
  func.func @transform_8(%arg0: i32) -> (i32, i32) {
    %c0_i32 = arith.constant 0 : i32
    %c0_i32_0 = arith.constant 0 : i32
    %c0_i32_1 = arith.constant 0 : i32
    return %c0_i32, %c0_i32_0 : i32, i32
  }
  func.func @transform_9(%arg0: i32) -> (i32, i32) {
    %c0_i32 = arith.constant 0 : i32
    %c0_i32_0 = arith.constant 0 : i32
    %c0_i32_1 = arith.constant 0 : i32
    return %c0_i32, %c0_i32_0 : i32, i32
  }
  func.func @transform_10(%arg0: i32) -> (i32, i32, i32) {
    %c0_i32 = arith.constant 0 : i32
    %c0_i32_0 = arith.constant 0 : i32
    %c0_i32_1 = arith.constant 0 : i32
    return %arg0, %c0_i32, %c0_i32_0 : i32, i32, i32
  }
}

</mosaic_0001>

<bundles_post_ra>
// kernel: multirescnn_forward.5
= control target key start
LH: loop header
LB: loop body
LE: loop exit
PB: predicated region body
PF: predicated region fallthrough
CT: control target
= control target key end

     0   :  { %s797_s23 = smov 0   ;;  %s887_s0 = inlined_call_operand.vmem [shape: bf16[2,16,128], index: 0, kind: input, shape index: {}]   ;;  %s888_s1 = inlined_call_operand.vmem [shape: bf16[2,16,128], index: 1, kind: input, shape index: {}]   ;;  %s889_s2 = inlined_call_operand.vmem [shape: bf16[2,128,128], index: 2, kind: input, shape index: {}]   ;;  %s890_s3 = inlined_call_operand.vmem [shape: f32[1,128], index: 3, kind: input, shape index: {}]   ;;  %s891_s4 = inlined_call_operand.vmem [shape: f32[1,128], index: 4, kind: input, shape index: {}]   ;;  %s892_s5 = inlined_call_operand.<no memory space> [shape: f32[1,1], index: 5, kind: input, shape index: {}]   ;;  %s893_s6 = inlined_call_operand.vmem [shape: f32[2,1,256], index: 6, kind: output, shape index: {}]  }
   0x1   :  { %v11_v0 = vstv %s892_s5 }
   0x2   :  { %12 = vst [vmem:[#allocation2] sm:$0x1] %v11_v0 }
   0x3 LB: > { %s602_s24 = sadd.s32 4294967295, %s756_s23   ;;  %p606_p0 = scmp.ge.s32.totalorder %s756_s23, 1  ;;  %s756_s23 = sphi %s797_s23, %s18_s23  }
   0x4   : > { %p224_p1 = scmp.lt.s32.totalorder %s756_s23, 3 }
   0x6   : > { %p225_p2 = pnand %p606_p0, %p224_p1 }
   0x7   : > { %p258_p3 = scmp.lt.s32.totalorder (!%p225_p2), %s602_s24, 1 }
   0x8   : > { %228 = sbr.rel (%p225_p2) target bundleno = 503 (0x1f7), region = 44 }
   0xd   : > { %v721_v1 = vld [vmem:[%s889_s2 + $0x78] sm:$0xff]  ;;  %v720_v3 = vld [vmem:[%s889_s2 + $0x70] sm:$0xff]  ;;  %v719_v5 = vld [vmem:[%s889_s2 + $0x68] sm:$0xff]  ;;  %s895_s24 = smov (!%p258_p3, %s602_s24), 1  ;;  %vm469_vm0 = vcmask 7168   ;;  %v758_v38 = vmov 0  }
   0xe   : > { %v712_v2 = vld [vmem:[%s889_s2 + $0x38] sm:$0xff]  ;;  %363 = vmatpush.bf16.msra.mxu0 %v721_v1  ;;  %v711_v4 = vld [vmem:[%s889_s2 + $0x30] sm:$0xff]  ;;  %v710_v6 = vld [vmem:[%s889_s2 + $0x28] sm:$0xff]  ;;  %s702_s29 = sshll.u32 %s895_s24, 3  ;;  %735 = vset.pattern.permute.xlu1 %v758_v38  ;;  %s611_s20 = sshll.u32 %s895_s24, 1 }
   0xf   : > { %431 = vmatpush.bf16.msra.mxu1 %v712_v2  ;;  %v718_v7 = vld [vmem:[%s889_s2 + $0x60] sm:$0xff]  ;;  %v717_v9 = vld [vmem:[%s889_s2 + $0x58] sm:$0xff]  ;;  %v716_v11 = vld [vmem:[%s889_s2 + $0x50] sm:$0xff]  ;;  %s859_s12 = scalar_lea.vmem %s888_s1, %s702_s29  ;;  %s864_s15 = scalar_lea.vmem %s887_s0, %s702_s29  ;;  %736 = vset.pattern.permute.xlu0 %v758_v38 }
  0x10   : > { %v709_v8 = vld [vmem:[%s889_s2 + $0x20] sm:$0xff]  ;;  %v708_v10 = vld [vmem:[%s889_s2 + $0x18] sm:$0xff]  ;;  %v707_v12 = vld [vmem:[%s889_s2 + $0x10] sm:$0xff]  ;;  %s271_s25 = scalar_lea.vmem %s893_s6, %s611_s20 }
  0x11   : > { %v715_v13 = vld [vmem:[%s889_s2 + $0x48] sm:$0xff]  ;;  %v714_v15 = vld [vmem:[%s889_s2 + $0x40] sm:$0xff] }
  0x12   : > { %364 = vmatpush.bf16.msra.mxu0 %v720_v3  ;;  %v706_v14 = vld [vmem:[%s889_s2 + $0x8] sm:$0xff]  ;;  %v705_v16 = vld [vmem:[%s889_s2] sm:$0xff] }
  0x13   : > { %432 = vmatpush.bf16.msra.mxu1 %v711_v4  ;;  %v713_v17 = vld [vmem:[%s859_s12] sm:$0xff] }
  0x14   : > { %v704_v18 = vld [vmem:[%s864_s15] sm:$0xff] }
  0x15   : > { %v737_v19 = vld [vmem:[%s890_s3] ss:$0 sm:$0xff] }
  0x16   : > { %365 = vmatpush.bf16.msra.mxu0 %v719_v5  ;;  %v738_v26 = vld [vmem:[%s891_s4] ss:$0 sm:$0xff] }
  0x17   : > { %433 = vmatpush.bf16.msra.mxu1 %v710_v6  ;;  %v739_v34 = vld [vmem:[#allocation2] ss:$0 sm:$0xff] }
  0x18   : > { %v723_v3 = vld [vmem:[%s859_s12] sm:$0xff]  }
  0x19   : > { %v272_v4 = vld [vmem:[%s864_s15] sm:$0xff]   ;;  %v724_v5 = vunpack.c.l.bf16 %v723_v3 }
  0x1a   : > { %366 = vmatpush.bf16.msra.mxu0 %v718_v7  ;;  %v497_v6 = vunpack.c.l.bf16 %v272_v4  ;;  %v498_v7 = vunpack.c.h.bf16 %v272_v4 }
  0x1b   : > { %434 = vmatpush.bf16.msra.mxu1 %v709_v8  ;;  %v725_v8 = vunpack.c.h.bf16 %v723_v3 }
  0x1e   : > { %367 = vmatpush.bf16.msra.mxu0 %v717_v9 }
  0x1f   : > { %435 = vmatpush.bf16.msra.mxu1 %v708_v10 }
  0x22   : > { %368 = vmatpush.bf16.msra.mxu0 %v716_v11 }
  0x23   : > { %436 = vmatpush.bf16.msra.mxu1 %v707_v12 }
  0x26   : > { %369 = vmatpush.bf16.msra.mxu0 %v715_v13 }
  0x27   : > { %437 = vmatpush.bf16.msra.mxu1 %v706_v14 }
  0x2a   : > { %370 = vmatpush.bf16.msra.mxu0 %v714_v15 }
  0x2b   : > { %438 = vmatpush.bf16.msra.mxu1 %v705_v16 }
  0x2d   : > { %371 = vmatmul.bf16.vlgmr.msra.gmra.mxu0 %v713_v17 }
  0x2e   : > { %439 = vmatmul.bf16.vlgmr.msra.gmra.mxu1 %v704_v18 }
  0xaa   : > { %v372_v20 = vpop.f32.mrf.mxu0 }
  0xab   : > { %v440_v21 = vpop.f32.mrf.mxu1 }
  0xac   : > { %v441_v22 = vadd.f32 %v440_v21, %v372_v20 }
  0xae   : > { %v449_v23 = vadd.f32 %v737_v19, %v441_v22  ;;  %v518_v22 = vlaneseq }
  0xb0   : > { %740 = vtanh.f32 %v449_v23  ;;  %vm520_vm1 = vcmp.lt.s32.totalorder %v518_v22, 128 }
  0xb2   : > { %v374_v24 = vpop.f32.mrf.mxu0 }
  0xb3   : > { %v442_v25 = vpop.f32.mrf.mxu1 }
  0xb4   : > { %v443_v27 = vadd.f32 %v442_v25, %v374_v24 }
  0xb6   : > { %v741_v28 = vpop.eup %740  ;;  %v450_v29 = vadd.f32 %v737_v19, %v443_v27 }
  0xb7   : > { %v457_v30 = vmul.f32 %v741_v28, %v738_v26 }
  0xb8   : > { %742 = vtanh.f32 %v450_v29 }
  0xb9   : > { %459 = vadd.xlane.f32.xlu0 %v457_v30 }
  0xbe   : > { %v743_v31 = vpop.eup %742 }
  0xbf   : > { %v458_v32 = vmul.f32 %v743_v31, %v738_v26 }
  0xc1   : > { %461 = vadd.xlane.f32.xlu0 %v458_v32 }
 0x12c   : > { %v460_v33 = vpop.xlane.xlu0 %459 }
 0x12d   : > { %v467_v35 = vadd.f32 %v739_v34, %v460_v33 }
 0x12f   : > { %v470_v39 = vsel %vm469_vm0, %v467_v35, -inf }
 0x134   : > { %v462_v36 = vpop.xlane.xlu0 %461 }
 0x135   : > { %v468_v37 = vadd.f32 %v739_v34, %v462_v36 }
 0x137   : > { %v471_v40 = vsel %vm469_vm0, %v468_v37, -inf }
 0x138   : > { %v472_v41 = vmax.f32 %v470_v39, %v471_v40 }
 0x13a   : > { %v473_v42 = vrot.slane %v472_v41, 4 }
 0x13c   : > { %v474_v43 = vmax.f32 %v472_v41, %v473_v42 }
 0x13e   : > { %v475_v44 = vrot.slane %v474_v43, 2 }
 0x140   : > { %v476_v45 = vmax.f32 %v474_v43, %v475_v44 }
 0x142   : > { %v477_v46 = vrot.slane %v476_v45, 1 }
 0x144   : > { %v478_v47 = vmax.f32 %v476_v45, %v477_v46 }
 0x146   : > { %v479_v48 = vsub.f32 %v467_v35, %v478_v47  ;;  %v480_v49 = vsub.f32 %v468_v37, %v478_v47 }
 0x148   : > { %v481_v50 = vmul.f32 1.442695, %v479_v48  ;;  %v483_v51 = vmul.f32 1.442695, %v480_v49 }
 0x14a   : > { %744 = vpow2.f32 %v481_v50 }
 0x14b   : > { %746 = vpow2.f32 %v483_v51 }
 0x150   : > { %v745_v52 = vpop.eup %744 }
 0x151   : > { %v747_v53 = vpop.eup %746  ;;  %v485_v54 = vsel %vm469_vm0, %v745_v52, 0.0 }
 0x152   : > { %v486_v55 = vsel %vm469_vm0, %v747_v53, 0.0 }
 0x153   : > { %v487_v56 = vadd.f32 %v486_v55, %v485_v54 }
 0x155   : > { %v488_v57 = vrot.slane %v487_v56, 4 }
 0x157   : > { %v489_v58 = vadd.f32 %v488_v57, %v487_v56 }
 0x159   : > { %v490_v59 = vrot.slane %v489_v58, 2 }
 0x15b   : > { %v491_v60 = vadd.f32 %v490_v59, %v489_v58 }
 0x15d   : > { %v492_v61 = vrot.slane %v491_v60, 1 }
 0x15f   : > { %v493_v62 = vadd.f32 %v492_v61, %v491_v60 }
 0x161   : > { %748 = vrcp.f32 %v493_v62 }
 0x167   : > { %v749_v63 = vpop.eup %748 }
 0x168   : > { %v495_v0 = vmul.f32 %v749_v63, %v745_v52  ;;  %v496_v1 = vmul.f32 %v749_v63, %v747_v53 }
 0x16a   : > { %501 = vperm.xlu1 %735, %v495_v0  }
 0x172   : > { %506 = vperm.xlu1 %735, %v496_v1  }
 0x1dc   : > { %v502_v2 = vpop.permute.xlu1 %501 }
 0x1dd   : > { %v509_v10 = vmul.f32 %v502_v2, %v497_v6  ;;  %v527_v11 = vmul.f32 %v724_v5, %v502_v2 }
 0x1e4   : > { %v507_v9 = vpop.permute.xlu1 %506 }
 0x1e5   : > { %v510_v12 = vmul.f32 %v507_v9, %v498_v7  ;;  %v528_v13 = vmul.f32 %v725_v8, %v507_v9 }
 0x1e7   : > { %v511_v14 = vadd.f32 %v510_v12, %v509_v10  ;;  %v529_v15 = vadd.f32 %v528_v13, %v527_v11 }
 0x1e9   : > { %v512_v16 = vrot.slane %v511_v14, 4  ;;  %v530_v17 = vrot.slane %v529_v15, 4 }
 0x1eb   : > { %v513_v18 = vadd.f32 %v512_v16, %v511_v14  ;;  %v531_v19 = vadd.f32 %v530_v17, %v529_v15 }
 0x1ed   : > { %v514_v20 = vrot.slane %v513_v18, 2  ;;  %v532_v21 = vrot.slane %v531_v19, 2 }
 0x1ef   : > { %v515_v23 = vadd.f32 %v514_v20, %v513_v18  ;;  %v533_v24 = vadd.f32 %v532_v21, %v531_v19 }
 0x1f1   : > { %v516_v25 = vrot.slane %v515_v23, 1  ;;  %v534_v26 = vrot.slane %v533_v24, 1 }
 0x1f3   : > { %v517_v27 = vadd.f32 %v516_v25, %v515_v23  ;;  %v535_v28 = vadd.f32 %v534_v26, %v533_v24 }
 0x1f5   : > { %522 = vst.msk [vmem:[%s271_s25] sm:$0x1] %vm520_vm1, %v517_v27 }
 0x1f6   : > { %536 = vst.msk [vmem:[%s271_s25 + $0x1] sm:$0x1] %vm520_vm1, %v535_v28 }
 0x1f7 PF: > { %s18_s23 = sadd.s32 1, %s756_s23  }
 0x1f8   : > { %p15_p4 = scmp.ge.s32.totalorder %s18_s23, 4  }
 0x1fa   :  { %17 = sbr.rel (!%p15_p4) target bundleno = 3 (0x3), region = 78 }

// kernel: multirescnn_forward.3
= control target key start
LH: loop header
LB: loop body
LE: loop exit
PB: predicated region body
PF: predicated region fallthrough
CT: control target
= control target key end

     0   :  { %15 = vsyncpa [#allocation4], 0  ;;  %s2271_s0 = inlined_call_operand.vmem [shape: bf16[2,16,128], index: 0, kind: input, shape index: {}]   ;;  %s2272_s1 = inlined_call_operand.hbm [shape: bf16[3,128,128], index: 1, kind: input, shape index: {}]   ;;  %s2273_s2 = inlined_call_operand.vmem [shape: f32[1,128], index: 2, kind: input, shape index: {}]   ;;  %s2274_s3 = inlined_call_operand.vmem [shape: f32[1,128], index: 3, kind: input, shape index: {}]   ;;  %s2275_s4 = inlined_call_operand.hbm [shape: bf16[3,128,256], index: 4, kind: input, shape index: {}]   ;;  %s2276_s5 = inlined_call_operand.vmem [shape: f32[1,256], index: 5, kind: input, shape index: {}]   ;;  %s2277_s6 = inlined_call_operand.vmem [shape: f32[1,256], index: 6, kind: input, shape index: {}]   ;;  %s2278_s7 = inlined_call_operand.hbm [shape: bf16[3,128,128], index: 7, kind: input, shape index: {}]   ;;  %s2279_s8 = inlined_call_operand.vmem [shape: f32[1,128], index: 8, kind: input, shape index: {}]   ;;  %s2280_s9 = inlined_call_operand.vmem [shape: f32[1,128], index: 9, kind: input, shape index: {}]   ;;  %s2281_s10 = inlined_call_operand.vmem [shape: bf16[2,16,128], index: 10, kind: output, shape index: {}]  }
   0x1   :  { %16 = vsyncpa [#allocation6], 0  ;;  %s2183_s13 = smov 0  }
   0x2 LB: > { %s299_s16 = sshll.u32 %s2275_s4, 4  ;;  %s2192_s17 = sadd.s32 4294967295, %s2118_s13   ;;  %s2118_s13 = sphi %s2183_s13, %s22_s13   ;;  %s300_s16 = int_to_ptr.hbm [resolvable:$true] %s299_s16 }
   0x3   : > { %p1447_p0 = scmp.ge.s32.totalorder %s2118_s13, 1  ;;  %p268_p1 = scmp.lt.s32.totalorder %s2118_s13, 3 }
   0x4   : > { %p1975_p2 = scmp.eq.s32.totalorder %s2192_s17, 0  ;;  %s2120_s19 = smov [#allocation5]  }
   0x5   : > { %p2197_p3 = pnand %p1447_p0, %p268_p1  ;;  %s301_s20 = sshll.u32 %s2120_s19, 4  ;;  %s302_s20 = int_to_ptr.vmem [resolvable:$true] %s301_s20 }
   0x6   : > { %s279_s23 = sshll.u32 %s2272_s1, 4  ;;  %s2121_s25 = smov [#allocation3]   ;;  %s280_s23 = int_to_ptr.hbm [resolvable:$true] %s279_s23 }
   0x7   : > { %p1965_p4 = pneg %p2197_p3  ;;  %s281_s26 = sshll.u32 %s2121_s25, 4  ;;  %s282_s26 = int_to_ptr.vmem [resolvable:$true] %s281_s26 }
   0x8   : > { %s2122_s27 = smov 128   ;;  %s2123_s28 = smov 8  }
   0x9   : > { %p2208_p5 = pnand %p1975_p2, %p1965_p4  ;;  %s319_s11 = sshll.u32 %s2278_s7, 4  ;;  %s320_s11 = int_to_ptr.hbm [resolvable:$true] %s319_s11 }
   0xa   : > { %s2124_s12 = smov 64   ;;  %s2125_s14 = smov 4  }
   0xb   : > { %1971 = dma.hbm_to_vmem [thread:$0]  (!%p2208_p5), %s300_s16, 6144, %s302_s20, [#allocation6], %s2122_s27, %s2122_s27, %s2123_s28  }
   0xc   : > { %1968 = dma.hbm_to_vmem [thread:$0]  (!%p2208_p5), %s280_s23, 3072, %s282_s26, [#allocation4], %s2124_s12, %s2124_s12, %s2125_s14  }
   0xd   : > { %s2126_s15 = smov [#allocation7]   ;;  %351 = sbr.rel (%p2197_p3) target bundleno = 549 (0x225), region = 60 }
   0xe   : > { %s321_s19 = sshll.u32 %s2126_s15, 4  ;;  %s322_s19 = int_to_ptr.vmem [resolvable:$true] %s321_s19 }
   0xf   : > { %1974 = dma.hbm_to_vmem [thread:$0]  (!%p2208_p5), %s320_s11, 3072, %s322_s19, [#allocation6], %s2124_s12, %s2124_s12, %s2125_s14  }
  0x12   : > { %2109 = dma.done.wait (%p1975_p2), [#allocation4], 3072  }
  0x13   : > { %2111 = vsyncadd (%p1975_p2), [#allocation4], 4294964224 }
  0x14   : > { %2113 = dma.done.wait (%p1975_p2), [#allocation6], 9216  }
  0x15   : > { %2115 = vsyncadd (%p1975_p2), [#allocation6], 4294958080  ;;  %p400_p6 = scmp.lt.s32.totalorder %s2192_s17, 1  ;;  %v2127_v0 = vmov 0.0   ;;  %v1863_v1 = vld [vmem:[#allocation3 + $0x78] sm:$0xff]  ;;  %v1862_v4 = vld [vmem:[#allocation3 + $0x70] sm:$0xff] }
  0x16   : > { %410 = vst [vmem:[#allocation2] sm:$0xff] %v2127_v0  ;;  %v1855_v2 = vld [vmem:[#allocation3 + $0x38] sm:$0xff]  ;;  %505 = vmatpush.bf16.msra.mxu0 %v1863_v1  ;;  %v1854_v5 = vld [vmem:[#allocation3 + $0x30] sm:$0xff]  ;;  %v1861_v7 = vld [vmem:[#allocation3 + $0x68] sm:$0xff] }
  0x17   : > { %411 = vst [vmem:[#allocation2 + $0x18] sm:$0xff] %v2127_v0  ;;  %s2285_s17 = smov (!%p400_p6, %s2192_s17), 1  ;;  %v1871_v3 = vld [vmem:[#allocation3 + $0xb8] sm:$0xff]  ;;  %567 = vmatpush.bf16.msra.mxu1 %v1855_v2  ;;  %v1870_v6 = vld [vmem:[#allocation3 + $0xb0] sm:$0xff]  ;;  %v1853_v8 = vld [vmem:[#allocation3 + $0x28] sm:$0xff] }
  0x18   : > { %s1846_s16 = sshll.u32 %s2285_s17, 3  ;;  %649 = vmatpush.bf16.msra.mxu2 %v1871_v3  ;;  %v1869_v9 = vld [vmem:[#allocation3 + $0xa8] sm:$0xff]  ;;  %v1614_v11 = vld [vmem:[#allocation5 + $0xf0] sm:$0xf]  ;;  %v1860_v12 = vld [vmem:[#allocation3 + $0x60] sm:$0xff] }
  0x19   : > { %s2241_s21 = scalar_lea.vmem %s2271_s0, %s1846_s16  ;;  %v1903_v15 = vld [vmem:[#allocation5 + $0xf4] sm:$0xf0]  ;;  %v1852_v16 = vld [vmem:[#allocation3 + $0x20] sm:$0xff]  ;;  %v1901_v19 = vld [vmem:[#allocation5 + $0xe4] sm:$0xf0]  ;;  %s409_s18 = scalar_lea.vmem %s2281_s10, %s1846_s16 }
  0x1a   : > { %506 = vmatpush.bf16.msra.mxu0 %v1862_v4  ;;  %v1945_v10 = vld [vmem:[%s2241_s21] sm:$0xff]   ;;  %v1615_v17 = vor.u32 %v1903_v15, %v1614_v11  ;;  %v1859_v22 = vld [vmem:[#allocation3 + $0x58] sm:$0xff]  ;;  %v1858_v25 = vld [vmem:[#allocation3 + $0x50] sm:$0xff] }
  0x1b   : > { %568 = vmatpush.bf16.msra.mxu1 %v1854_v5  ;;  %v1946_v13 = vunpack.c.l.bf16 %v1945_v10  ;;  %v1947_v14 = vunpack.c.h.bf16 %v1945_v10  ;;  %v1606_v18 = vld [vmem:[#allocation5 + $0xe0] sm:$0xf]  ;;  %v1851_v23 = vld [vmem:[#allocation3 + $0x18] sm:$0xff]  ;;  %v1850_v26 = vld [vmem:[#allocation3 + $0x10] sm:$0xff] }
  0x1c   : > { %650 = vmatpush.bf16.msra.mxu2 %v1870_v6  ;;  %v1868_v20 = vld [vmem:[#allocation3 + $0xa0] sm:$0xff]  ;;  %800 = vmatpush.bf16.msra.mxu3 %v1615_v17  ;;  %v1607_v21 = vor.u32 %v1901_v19, %v1606_v18  ;;  %v1867_v24 = vld [vmem:[#allocation3 + $0x98] sm:$0xff]  ;;  %v1866_v27 = vld [vmem:[#allocation3 + $0x90] sm:$0xff] }
  0x1d   : > { %416 = vst [vmem:[#allocation2 + $0x8] sm:$0xff] %v1946_v13  ;;  %v1857_v28 = vld [vmem:[#allocation3 + $0x48] sm:$0xff]  ;;  %v1902_v31 = vld [vmem:[#allocation5 + $0xf4] sm:$0xf]  ;;  %v1616_v32 = vld [vmem:[#allocation5 + $0xf8] sm:$0xf0] }
  0x1e   : > { %507 = vmatpush.bf16.msra.mxu0 %v1861_v7  ;;  %417 = vst [vmem:[#allocation2 + $0x10] sm:$0xff] %v1947_v14  ;;  %v1849_v29 = vld [vmem:[#allocation3 + $0x8] sm:$0xff]  ;;  %v1856_v33 = vld [vmem:[#allocation3 + $0x40] sm:$0xff]  ;;  %v1619_v40 = vor.u32 %v1902_v31, %v1616_v32  ;;  %v1598_v47 = vld [vmem:[#allocation5 + $0xd0] sm:$0xf] }
  0x1f   : > { %569 = vmatpush.bf16.msra.mxu1 %v1853_v8  ;;  %v1865_v30 = vld [vmem:[#allocation3 + $0x88] sm:$0xff]  ;;  %v1848_v34 = vld [vmem:[#allocation3] sm:$0xff]  ;;  %v1899_v48 = vld [vmem:[#allocation5 + $0xd4] sm:$0xf0] }
  0x20   : > { %651 = vmatpush.bf16.msra.mxu2 %v1869_v9  ;;  %801 = vmatpush.bf16.msra.mxu3 %v1607_v21  ;;  %v1864_v37 = vld [vmem:[#allocation3 + $0x80] sm:$0xff]  ;;  %v1608_v42 = vld [vmem:[#allocation5 + $0xe8] sm:$0xf0]  ;;  %v1898_v49 = vld [vmem:[#allocation5 + $0xd4] sm:$0xf]  ;;  %v1599_v50 = vor.u32 %v1899_v48, %v1598_v47 }
  0x21   : > { %v1900_v41 = vld [vmem:[#allocation5 + $0xe4] sm:$0xf]  ;;  %v1600_v51 = vld [vmem:[#allocation5 + $0xd8] sm:$0xf0]  ;;  %v1590_v53 = vld [vmem:[#allocation5 + $0xc0] sm:$0xf] }
  0x22   : > { %508 = vmatpush.bf16.msra.mxu0 %v1860_v12  ;;  %v1997_v43 = vld [vmem:[%s2241_s21] sm:$0xff]  ;;  %v1611_v46 = vor.u32 %v1900_v41, %v1608_v42  ;;  %v1603_v52 = vor.u32 %v1898_v49, %v1600_v51  ;;  %v1897_v54 = vld [vmem:[#allocation5 + $0xc4] sm:$0xf0]  ;;  %v1592_v57 = vld [vmem:[#allocation5 + $0xc8] sm:$0xf0] }
  0x23   : > { %570 = vmatpush.bf16.msra.mxu1 %v1852_v16  ;;  %v1896_v55 = vld [vmem:[#allocation5 + $0xc4] sm:$0xf]  ;;  %v1591_v56 = vor.u32 %v1897_v54, %v1590_v53  ;;  %v1582_v59 = vld [vmem:[#allocation5 + $0xb0] sm:$0xf]  ;;  %v1895_v60 = vld [vmem:[#allocation5 + $0xb4] sm:$0xf0] }
  0x24   : > { %652 = vmatpush.bf16.msra.mxu2 %v1868_v20  ;;  %v418_v35 = vld [vmem:[#allocation2 + $0x7] sm:$0xff]  ;;  %802 = vmatpush.bf16.msra.mxu3 %v1599_v50  ;;  %v1595_v58 = vor.u32 %v1896_v55, %v1592_v57  ;;  %v1894_v61 = vld [vmem:[#allocation5 + $0xb4] sm:$0xf]  ;;  %v1583_v62 = vor.u32 %v1895_v60, %v1582_v59  ;;  %v1584_v63 = vld [vmem:[#allocation5 + $0xb8] sm:$0xf0] }
  0x25   : > { %v419_v36 = vld [vmem:[#allocation2 + $0xf] sm:$0xff]  ;;  %v1587_v0 = vor.u32 %v1894_v61, %v1584_v63  ;;  %v1574_v1 = vld [vmem:[#allocation5 + $0xa0] sm:$0xf]  ;;  %v1893_v2 = vld [vmem:[#allocation5 + $0xa4] sm:$0xf0] }
  0x26   : > { %509 = vmatpush.bf16.msra.mxu0 %v1859_v22  ;;  %v581_v38 = vld [vmem:[#allocation2 + $0x9] sm:$0xff]  ;;  %v582_v39 = vld [vmem:[#allocation2 + $0x11] sm:$0xff]  ;;  %v420_v44 = vpack.c.bf16 %v419_v36, %v418_v35  ;;  %v1892_v3 = vld [vmem:[#allocation5 + $0xa4] sm:$0xf]  ;;  %v1575_v7 = vor.u32 %v1893_v2, %v1574_v1 }
  0x27   : > { %571 = vmatpush.bf16.msra.mxu1 %v1851_v23  ;;  %v583_v45 = vpack.c.bf16 %v582_v39, %v581_v38  ;;  %v1678_v4 = vld [vmem:[#allocation5 + $0x70] sm:$0xf]  ;;  %v1887_v5 = vld [vmem:[#allocation5 + $0x74] sm:$0xf0]  ;;  %v1886_v6 = vld [vmem:[#allocation5 + $0x74] sm:$0xf] }
  0x28   : > { %653 = vmatpush.bf16.msra.mxu2 %v1867_v24  ;;  %803 = vmatpush.bf16.msra.mxu3 %v1591_v56  ;;  %v1679_v8 = vor.u32 %v1887_v5, %v1678_v4  ;;  %v1680_v9 = vld [vmem:[#allocation5 + $0x78] sm:$0xf0]  ;;  %v1576_v10 = vld [vmem:[#allocation5 + $0xa8] sm:$0xf0]  ;;  %v1566_v13 = vld [vmem:[#allocation5 + $0x90] sm:$0xf] }
  0x29   : > { %v1683_v11 = vor.u32 %v1886_v6, %v1680_v9  ;;  %v1579_v12 = vor.u32 %v1892_v3, %v1576_v10  ;;  %v1891_v14 = vld [vmem:[#allocation5 + $0x94] sm:$0xf0]  ;;  %v1670_v15 = vld [vmem:[#allocation5 + $0x60] sm:$0xf]  ;;  %v1885_v16 = vld [vmem:[#allocation5 + $0x64] sm:$0xf0] }
  0x2a   : > { %510 = vmatpush.bf16.msra.mxu0 %v1858_v25  ;;  %v1884_v17 = vld [vmem:[#allocation5 + $0x64] sm:$0xf]  ;;  %v1567_v18 = vor.u32 %v1891_v14, %v1566_v13  ;;  %v1671_v19 = vor.u32 %v1885_v16, %v1670_v15  ;;  %v1672_v20 = vld [vmem:[#allocation5 + $0x68] sm:$0xf0]  ;;  %v1890_v21 = vld [vmem:[#allocation5 + $0x94] sm:$0xf] }
  0x2b   : > { %572 = vmatpush.bf16.msra.mxu1 %v1850_v26  ;;  %v1675_v22 = vor.u32 %v1884_v17, %v1672_v20  ;;  %v1568_v23 = vld [vmem:[#allocation5 + $0x98] sm:$0xf0]  ;;  %v1558_v25 = vld [vmem:[#allocation5 + $0x80] sm:$0xf]  ;;  %v1889_v26 = vld [vmem:[#allocation5 + $0x84] sm:$0xf0] }
  0x2c   : > { %654 = vmatpush.bf16.msra.mxu2 %v1866_v27  ;;  %804 = vmatpush.bf16.msra.mxu3 %v1583_v62  ;;  %v1571_v24 = vor.u32 %v1890_v21, %v1568_v23  ;;  %v1888_v27 = vld [vmem:[#allocation5 + $0x84] sm:$0xf]  ;;  %v1559_v31 = vor.u32 %v1889_v26, %v1558_v25  ;;  %v1742_v35 = vld [vmem:[#allocation5 + $0x170] sm:$0xf]  ;;  %v1919_v38 = vld [vmem:[#allocation5 + $0x174] sm:$0xf0] }
  0x2d   : > { %v1918_v39 = vld [vmem:[#allocation5 + $0x174] sm:$0xf]  ;;  %v1743_v41 = vor.u32 %v1919_v38, %v1742_v35  ;;  %v1656_v47 = vld [vmem:[#allocation5 + $0x48] sm:$0xf0]  ;;  %v1734_v48 = vld [vmem:[#allocation5 + $0x160] sm:$0xf] }
  0x2e   : > { %511 = vmatpush.bf16.msra.mxu0 %v1857_v28  ;;  %v1662_v28 = vld [vmem:[#allocation5 + $0x50] sm:$0xf]  ;;  %v1917_v49 = vld [vmem:[#allocation5 + $0x164] sm:$0xf0]  ;;  %v1736_v53 = vld [vmem:[#allocation5 + $0x168] sm:$0xf0] }
  0x2f   : > { %573 = vmatpush.bf16.msra.mxu1 %v1849_v29  ;;  %v1883_v29 = vld [vmem:[#allocation5 + $0x54] sm:$0xf0]  ;;  %v1735_v51 = vor.u32 %v1917_v49, %v1734_v48  ;;  %v1646_v55 = vld [vmem:[#allocation5 + $0x30] sm:$0xf]  ;;  %v1878_v57 = vld [vmem:[#allocation5 + $0x34] sm:$0xf] }
  0x30   : > { %655 = vmatpush.bf16.msra.mxu2 %v1865_v30  ;;  %805 = vmatpush.bf16.msra.mxu3 %v1575_v7  ;;  %v1882_v30 = vld [vmem:[#allocation5 + $0x54] sm:$0xf]  ;;  %v1663_v32 = vor.u32 %v1883_v29, %v1662_v28  ;;  %v1879_v56 = vld [vmem:[#allocation5 + $0x34] sm:$0xf0]  ;;  %v1648_v59 = vld [vmem:[#allocation5 + $0x38] sm:$0xf0] }
  0x31   : > { %v1726_v60 = vld [vmem:[#allocation5 + $0x150] sm:$0xf]  ;;  %v1915_v61 = vld [vmem:[#allocation5 + $0x154] sm:$0xf0]  ;;  %v1651_v62 = vor.u32 %v1878_v57, %v1648_v59  ;;  %v1728_v1 = vld [vmem:[#allocation5 + $0x158] sm:$0xf0] }
  0x32   : > { %512 = vmatpush.bf16.msra.mxu0 %v1856_v33  ;;  %v1664_v33 = vld [vmem:[#allocation5 + $0x58] sm:$0xf0]  ;;  %v1727_v63 = vor.u32 %v1915_v61, %v1726_v60  ;;  %v1638_v3 = vld [vmem:[#allocation5 + $0x20] sm:$0xf]  ;;  %v1877_v4 = vld [vmem:[#allocation5 + $0x24] sm:$0xf0] }
  0x33   : > { %574 = vmatpush.bf16.msra.mxu1 %v1848_v34  ;;  %v1560_v34 = vld [vmem:[#allocation5 + $0x88] sm:$0xf0]  ;;  %v1667_v36 = vor.u32 %v1882_v30, %v1664_v33  ;;  %v1876_v5 = vld [vmem:[#allocation5 + $0x24] sm:$0xf]  ;;  %v1639_v6 = vor.u32 %v1877_v4, %v1638_v3  ;;  %v1913_v9 = vld [vmem:[#allocation5 + $0x144] sm:$0xf0] }
  0x34   : > { %656 = vmatpush.bf16.msra.mxu2 %v1864_v37  ;;  %806 = vmatpush.bf16.msra.mxu3 %v1567_v18  ;;  %v1563_v37 = vor.u32 %v1888_v27, %v1560_v34  ;;  %v1640_v7 = vld [vmem:[#allocation5 + $0x28] sm:$0xf0]  ;;  %v1630_v15 = vld [vmem:[#allocation5 + $0x10] sm:$0xf]  ;;  %v1875_v16 = vld [vmem:[#allocation5 + $0x14] sm:$0xf0] }
  0x35   : > { %513 = vmatmul.bf16.vlgmr.msra.gmra.mxu0 %v1997_v43  ;;  %v1654_v43 = vld [vmem:[#allocation5 + $0x40] sm:$0xf]  ;;  %v1643_v10 = vor.u32 %v1876_v5, %v1640_v7  ;;  %v1720_v13 = vld [vmem:[#allocation5 + $0x148] sm:$0xf0]  ;;  %v1874_v17 = vld [vmem:[#allocation5 + $0x14] sm:$0xf]  ;;  %v1631_v18 = vor.u32 %v1875_v16, %v1630_v15 }
  0x36   : > { %814 = vmatpush.bf16.msrb.mxu0 %v1619_v40  ;;  %575 = vmatmul.bf16.vlgmr.msra.gmra.mxu1 %v420_v44  ;;  %v1744_v40 = vld [vmem:[#allocation5 + $0x178] sm:$0xf0]  ;;  %v1881_v44 = vld [vmem:[#allocation5 + $0x44] sm:$0xf0]  ;;  %v1622_v20 = vld [vmem:[#allocation5] sm:$0xf] }
  0x37   : > { %657 = vmatmul.bf16.vlgmr.msra.gmra.mxu2 %v583_v45  ;;  %908 = vmatpush.bf16.msrb.mxu1 %v1679_v8  ;;  %v1747_v42 = vor.u32 %v1918_v39, %v1744_v40  ;;  %v1880_v45 = vld [vmem:[#allocation5 + $0x44] sm:$0xf]  ;;  %v1718_v8 = vld [vmem:[#allocation5 + $0x140] sm:$0xf]  ;;  %v1873_v21 = vld [vmem:[#allocation5 + $0x4] sm:$0xf0] }
  0x38   : > { %922 = vmatpush.bf16.msrb.mxu2 %v1683_v11  ;;  %807 = vmatpush.bf16.msra.mxu3 %v1559_v31  ;;  %v1659_v50 = vor.u32 %v1880_v45, %v1656_v47  ;;  %v1719_v11 = vor.u32 %v1913_v9, %v1718_v8  ;;  %v1872_v23 = vld [vmem:[#allocation5 + $0x4] sm:$0xf]  ;;  %v1710_v25 = vld [vmem:[#allocation5 + $0x130] sm:$0xf]  ;;  %v1623_v26 = vor.u32 %v1873_v21, %v1622_v20  ;;  %v1911_v27 = vld [vmem:[#allocation5 + $0x134] sm:$0xf0] }
  0x39   : > { %v1910_v28 = vld [vmem:[#allocation5 + $0x134] sm:$0xf]  ;;  %v1712_v29 = vld [vmem:[#allocation5 + $0x138] sm:$0xf0]  ;;  %v1711_v33 = vor.u32 %v1911_v27, %v1710_v25  ;;  %v1702_v35 = vld [vmem:[#allocation5 + $0x120] sm:$0xf] }
  0x3a   : > { %815 = vmatpush.bf16.msrb.mxu0 %v1611_v46  ;;  %v1655_v46 = vor.u32 %v1881_v44, %v1654_v43  ;;  %v1715_v34 = vor.u32 %v1910_v28, %v1712_v29  ;;  %v1704_v38 = vld [vmem:[#allocation5 + $0x128] sm:$0xf0]  ;;  %v1907_v43 = vld [vmem:[#allocation5 + $0x114] sm:$0xf0]  ;;  %v1906_v44 = vld [vmem:[#allocation5 + $0x114] sm:$0xf] }
  0x3b   : > { %909 = vmatpush.bf16.msrb.mxu1 %v1671_v19  ;;  %v1632_v19 = vld [vmem:[#allocation5 + $0x18] sm:$0xf0]  ;;  %v1998_v45 = vld [vmem:[%s2273_s2] ss:$0 sm:$0xff]  ;;  %v1933_v16 = vld [vmem:[#allocation7 + $0x68] sm:$0xff] }
  0x3c   : > { %923 = vmatpush.bf16.msrb.mxu2 %v1675_v22  ;;  %1036 = vmatpush.bf16.msrb.mxu3 %v1743_v41  ;;  %v1635_v22 = vor.u32 %v1874_v17, %v1632_v19  ;;  %v1999_v48 = vld [vmem:[%s2274_s3] ss:$0 sm:$0xff]  ;;  %v1943_v15 = vld [vmem:[#allocation7 + $0xb8] sm:$0xff]  ;;  %v1926_v17 = vld [vmem:[#allocation7 + $0x30] sm:$0xff] }
  0x3d   : > { %v1932_v19 = vld [vmem:[#allocation7 + $0x60] sm:$0xff]  ;;  %v1925_v20 = vld [vmem:[#allocation7 + $0x28] sm:$0xff]  ;;  %v1923_v27 = vld [vmem:[#allocation7 + $0x18] sm:$0xff] }
  0x3e   : > { %816 = vmatpush.bf16.msrb.mxu0 %v1603_v52  ;;  %v1916_v52 = vld [vmem:[#allocation5 + $0x164] sm:$0xf]  ;;  %v1941_v21 = vld [vmem:[#allocation7 + $0xa8] sm:$0xff]  ;;  %v1939_v28 = vld [vmem:[#allocation7 + $0x98] sm:$0xff] }
  0x3f   : > { %910 = vmatpush.bf16.msrb.mxu1 %v1663_v32  ;;  %v1739_v54 = vor.u32 %v1916_v52, %v1736_v53  ;;  %v1905_v53 = vld [vmem:[#allocation5 + $0x104] sm:$0xf0]  ;;  %v1940_v25 = vld [vmem:[#allocation7 + $0xa0] sm:$0xff] }
  0x40   : > { %924 = vmatpush.bf16.msrb.mxu2 %v1667_v36  ;;  %1037 = vmatpush.bf16.msrb.mxu3 %v1735_v51  ;;  %v1909_v36 = vld [vmem:[#allocation5 + $0x124] sm:$0xf0]  ;;  %v1686_v51 = vld [vmem:[#allocation5 + $0x100] sm:$0xf] }
  0x41   : > { %v1703_v39 = vor.u32 %v1909_v36, %v1702_v35  ;;  %v1687_v59 = vor.u32 %v1905_v53, %v1686_v51  ;;  %v1929_v29 = vld [vmem:[#allocation7 + $0x48] sm:$0xff]  ;;  %v1068_v35 = vld [vmem:[%s2276_s5] sm:$0x3] }
  0x42   : > { %817 = vmatpush.bf16.msrb.mxu0 %v1595_v58  ;;  %v1647_v58 = vor.u32 %v1879_v56, %v1646_v55  ;;  %v1688_v55 = vld [vmem:[#allocation5 + $0x108] sm:$0xf0] }
  0x43   : > { %911 = vmatpush.bf16.msrb.mxu1 %v1655_v46  ;;  %v1696_v46 = vld [vmem:[#allocation5 + $0x118] sm:$0xf0]  ;;  %v1921_v36 = vld [vmem:[#allocation7 + $0x8] sm:$0xff] }
  0x44   : > { %925 = vmatpush.bf16.msrb.mxu2 %v1659_v50  ;;  %1038 = vmatpush.bf16.msrb.mxu3 %v1727_v63  ;;  %v1699_v50 = vor.u32 %v1906_v44, %v1696_v46  ;;  %v1936_v44 = vld [vmem:[#allocation7 + $0x80] sm:$0xff] }
  0x46   : > { %818 = vmatpush.bf16.msrb.mxu0 %v1587_v0  ;;  %v1914_v0 = vld [vmem:[#allocation5 + $0x154] sm:$0xf] }
  0x47   : > { %912 = vmatpush.bf16.msrb.mxu1 %v1647_v58  ;;  %v1731_v2 = vor.u32 %v1914_v0, %v1728_v1 }
  0x48   : > { %926 = vmatpush.bf16.msrb.mxu2 %v1651_v62  ;;  %1039 = vmatpush.bf16.msrb.mxu3 %v1719_v11 }
  0x4a   : > { %819 = vmatpush.bf16.msrb.mxu0 %v1579_v12  ;;  %v1912_v12 = vld [vmem:[#allocation5 + $0x144] sm:$0xf] }
  0x4b   : > { %913 = vmatpush.bf16.msrb.mxu1 %v1639_v6  ;;  %v1723_v14 = vor.u32 %v1912_v12, %v1720_v13  ;;  %v1935_v12 = vld [vmem:[#allocation7 + $0x78] sm:$0xff]  ;;  %v1934_v13 = vld [vmem:[#allocation7 + $0x70] sm:$0xff] }
  0x4c   : > { %927 = vmatpush.bf16.msrb.mxu2 %v1643_v10  ;;  %1040 = vmatpush.bf16.msrb.mxu3 %v1711_v33  ;;  %v1938_v33 = vld [vmem:[#allocation7 + $0x90] sm:$0xff] }
  0x4e   : > { %820 = vmatpush.bf16.msrb.mxu0 %v1571_v24  ;;  %v1624_v24 = vld [vmem:[#allocation5 + $0x8] sm:$0xf0] }
  0x4f   : > { %914 = vmatpush.bf16.msrb.mxu1 %v1631_v18  ;;  %v1627_v32 = vor.u32 %v1872_v23, %v1624_v24  ;;  %v1942_v18 = vld [vmem:[#allocation7 + $0xb0] sm:$0xff]  ;;  %v1924_v24 = vld [vmem:[#allocation7 + $0x20] sm:$0xff] }
  0x50   : > { %928 = vmatpush.bf16.msrb.mxu2 %v1635_v22  ;;  %1041 = vmatpush.bf16.msrb.mxu3 %v1703_v39  ;;  %v1931_v22 = vld [vmem:[#allocation7 + $0x58] sm:$0xff] }
  0x52   : > { %821 = vmatpush.bf16.msrb.mxu0 %v1563_v37  ;;  %v1908_v37 = vld [vmem:[#allocation5 + $0x124] sm:$0xf] }
  0x53   : > { %v1707_v40 = vor.u32 %v1908_v37, %v1704_v38  ;;  %915 = vmatpush.bf16.msrb.mxu1 %v1623_v26  ;;  %v1930_v26 = vld [vmem:[#allocation7 + $0x50] sm:$0xff]  ;;  %v1937_v37 = vld [vmem:[#allocation7 + $0x88] sm:$0xff] }
  0x54   : > { %929 = vmatpush.bf16.msrb.mxu2 %v1627_v32  ;;  %v1922_v32 = vld [vmem:[#allocation7 + $0x10] sm:$0xff] }
  0x56   : > { %1050 = vmatpush.bf16.msra.mxu0 %v1747_v42  ;;  %v1694_v42 = vld [vmem:[#allocation5 + $0x110] sm:$0xf] }
  0x57   : > { %v1695_v49 = vor.u32 %v1907_v43, %v1694_v42  ;;  %1179 = vmatpush.bf16.msra.mxu1 %v1935_v12  ;;  %v1071_v42 = vperm.slane %v1068_v35, 1  ;;  %v1920_v43 = vld [vmem:[#allocation7] sm:$0xff] }
  0x59   : > { %1042 = vmatpush.bf16.msrb.mxu3 %v1695_v49 }
  0x5a   : > { %1051 = vmatpush.bf16.msra.mxu0 %v1739_v54  ;;  %v1904_v54 = vld [vmem:[#allocation5 + $0x104] sm:$0xf] }
  0x5b   : > { %v1691_v60 = vor.u32 %v1904_v54, %v1688_v55  ;;  %1180 = vmatpush.bf16.msra.mxu1 %v1934_v13 }
  0x5d   : > { %1043 = vmatpush.bf16.msrb.mxu3 %v1687_v59 }
  0x5e   : > { %1052 = vmatpush.bf16.msra.mxu0 %v1731_v2 }
  0x5f   : > { %1181 = vmatpush.bf16.msra.mxu1 %v1933_v16 }
  0x62   : > { %1053 = vmatpush.bf16.msra.mxu0 %v1723_v14  ;;  %v1927_v14 = vld [vmem:[#allocation7 + $0x38] sm:$0xff] }
  0x63   : > { %1241 = vmatpush.bf16.msra.mxu2 %v1927_v14  ;;  %1182 = vmatpush.bf16.msra.mxu1 %v1932_v19  ;;  %v2000_v19 = vld [vmem:[%s2279_s8] ss:$0 sm:$0xff] }
  0x66   : > { %1054 = vmatpush.bf16.msra.mxu0 %v1715_v34  ;;  %v1928_v34 = vld [vmem:[#allocation7 + $0x40] sm:$0xff] }
  0x67   : > { %1242 = vmatpush.bf16.msra.mxu2 %v1926_v17  ;;  %1183 = vmatpush.bf16.msra.mxu1 %v1931_v22  ;;  %v2001_v22 = vld [vmem:[%s2280_s9] ss:$0 sm:$0xff] }
  0x6a   : > { %1055 = vmatpush.bf16.msra.mxu0 %v1707_v40  ;;  %v1078_v40 = vld [vmem:[%s2277_s6] sm:$0x3] }
  0x6b   : > { %1243 = vmatpush.bf16.msra.mxu2 %v1925_v20  ;;  %1184 = vmatpush.bf16.msra.mxu1 %v1930_v26 }
  0x6e   : > { %1056 = vmatpush.bf16.msra.mxu0 %v1699_v50 }
  0x6f   : > { %1244 = vmatpush.bf16.msra.mxu2 %v1924_v24  ;;  %1185 = vmatpush.bf16.msra.mxu1 %v1929_v29 }
  0x72   : > { %1057 = vmatpush.bf16.msra.mxu0 %v1691_v60 }
  0x73   : > { %1245 = vmatpush.bf16.msra.mxu2 %v1923_v27  ;;  %1186 = vmatpush.bf16.msra.mxu1 %v1928_v34 }
  0x77   : > { %1246 = vmatpush.bf16.msra.mxu2 %v1922_v32 }
  0x7b   : > { %1247 = vmatpush.bf16.msra.mxu2 %v1921_v36 }
  0x7f   : > { %1248 = vmatpush.bf16.msra.mxu2 %v1920_v43 }
  0xb2   : > { %v514_v30 = vpop.f32.mrf.mxu0 }
  0xb3   : > { %v576_v31 = vpop.f32.mrf.mxu1 }
  0xb4   : > { %v577_v41 = vadd.f32 %v576_v31, %v514_v30 }
  0xba   : > { %v658_v47 = vpop.f32.mrf.mxu2  ;;  %v516_v57 = vpop.f32.mrf.mxu0 }
  0xbb   : > { %v663_v52 = vadd.f32 %v658_v47, %v577_v41  ;;  %v578_v58 = vpop.f32.mrf.mxu1 }
  0xbc   : > { %v579_v62 = vadd.f32 %v578_v58, %v516_v57  ;;  %v1080_v57 = vperm.slane %v1078_v40, 0 }
  0xbd   : > { %v669_v56 = vmul.f32 %v1998_v45, %v663_v52  ;;  %v1070_v52 = vperm.slane %v1068_v35, 0 }
  0xbf   : > { %v675_v61 = vadd.f32 %v1999_v48, %v669_v56 }
  0xc1   : > { %2002 = vtanh.f32 %v675_v61 }
  0xc2   : > { %v660_v63 = vpop.f32.mrf.mxu2 }
  0xc3   : > { %v664_v0 = vadd.f32 %v660_v63, %v579_v62 }
  0xc5   : > { %v670_v1 = vmul.f32 %v1998_v45, %v664_v0 }
  0xc7   : > { %v2003_v2 = vpop.eup %2002  ;;  %v676_v3 = vadd.f32 %v1999_v48, %v670_v1  ;;  %v1081_v48 = vperm.slane %v1078_v40, 1 }
  0xc8   : > { %679 = vst [vmem:[#allocation2 + $0x8] sm:$0xff] %v2003_v2 }
  0xc9   : > { %2004 = vtanh.f32 %v676_v3 }
  0xcf   : > { %v2005_v4 = vpop.eup %2004  ;;  %v681_v6 = vld [vmem:[#allocation2 + $0x7] sm:$0xff] }
  0xd0   : > { %680 = vst [vmem:[#allocation2 + $0x10] sm:$0xff] %v2005_v4  ;;  %v702_v5 = vpack.c.bf16 %v2005_v4, %v2003_v2 }
  0xd2   : > { %808 = vmatmul.bf16.vlgmr.msra.gmra.mxu3 %v702_v5  ;;  %822 = vmatmul.bf16.vlgmr.msrb.gmra.mxu0 %v702_v5 }
  0xd3   : > { %1323 = vmatpush.bf16.msra.mxu3 %v1943_v15 }
  0xd7   : > { %v682_v7 = vld [vmem:[#allocation2 + $0xf] sm:$0xff]  ;;  %1324 = vmatpush.bf16.msra.mxu3 %v1942_v18 }
  0xd8   : > { %v683_v8 = vpack.c.bf16 %v682_v7, %v681_v6  ;;  %v936_v9 = vld [vmem:[#allocation2 + $0x9] sm:$0xff]  ;;  %v937_v10 = vld [vmem:[#allocation2 + $0x11] sm:$0xff] }
  0xd9   : > { %v938_v11 = vpack.c.bf16 %v937_v10, %v936_v9 }
  0xda   : > { %916 = vmatmul.bf16.vlgmr.msrb.gmra.mxu1 %v683_v8  ;;  %930 = vmatmul.bf16.vlgmr.msrb.gmra.mxu2 %v683_v8 }
  0xdb   : > { %1325 = vmatpush.bf16.msra.mxu3 %v1941_v21 }
  0xdf   : > { %1326 = vmatpush.bf16.msra.mxu3 %v1940_v25 }
  0xe2   : > { %1044 = vmatmul.bf16.vlgmr.msrb.gmra.mxu3 %v938_v11  ;;  %1058 = vmatmul.bf16.vlgmr.msra.gmra.mxu0 %v938_v11 }
  0xe3   : > { %1327 = vmatpush.bf16.msra.mxu3 %v1939_v28 }
  0xe7   : > { %1328 = vmatpush.bf16.msra.mxu3 %v1938_v33 }
  0xeb   : > { %1329 = vmatpush.bf16.msra.mxu3 %v1937_v37 }
  0xef   : > { %1330 = vmatpush.bf16.msra.mxu3 %v1936_v44 }
 0x14f   : > { %v823_v23 = vpop.f32.mrf.mxu0 }
 0x155   : > { %v809_v30 = vpop.f32.mrf.mxu3 }
 0x157   : > { %v825_v31 = vpop.f32.mrf.mxu0  ;;  %v917_v45 = vpop.f32.mrf.mxu1 }
 0x158   : > { %v918_v50 = vadd.f32 %v917_v45, %v809_v30 }
 0x15d   : > { %v931_v38 = vpop.f32.mrf.mxu2  ;;  %v811_v39 = vpop.f32.mrf.mxu3 }
 0x15e   : > { %v932_v41 = vadd.f32 %v931_v38, %v823_v23 }
 0x15f   : > { %v1059_v46 = vpop.f32.mrf.mxu0  ;;  %v919_v61 = vpop.f32.mrf.mxu1 }
 0x160   : > { %v1065_v47 = vadd.f32 %v1059_v46, %v932_v41  ;;  %v920_v0 = vadd.f32 %v919_v61, %v811_v39 }
 0x162   : > { %v1075_v49 = vmul.f32 %v1071_v42, %v1065_v47 }
 0x164   : > { %v1085_v51 = vadd.f32 %v1081_v48, %v1075_v49 }
 0x165   : > { %v933_v53 = vpop.f32.mrf.mxu2  ;;  %v1045_v54 = vpop.f32.mrf.mxu3 }
 0x166   : > { %v934_v55 = vadd.f32 %v933_v53, %v825_v31  ;;  %v1064_v56 = vadd.f32 %v1045_v54, %v918_v50 }
 0x167   : > { %v1061_v58 = vpop.f32.mrf.mxu0 }
 0x168   : > { %v1074_v59 = vmul.f32 %v1070_v52, %v1064_v56  ;;  %v1067_v60 = vadd.f32 %v1061_v58, %v934_v55 }
 0x16a   : > { %v1084_v62 = vadd.f32 %v1080_v57, %v1074_v59  ;;  %v1077_v63 = vmul.f32 %v1071_v42, %v1067_v60 }
 0x16c   : > { %2006 = vtanh.f32 %v1084_v62  ;;  %v1087_v1 = vadd.f32 %v1081_v48, %v1077_v63 }
 0x16d   : > { %v1047_v2 = vpop.f32.mrf.mxu3 }
 0x16e   : > { %v1066_v3 = vadd.f32 %v1047_v2, %v920_v0 }
 0x170   : > { %v1076_v4 = vmul.f32 %v1070_v52, %v1066_v3 }
 0x172   : > { %v2007_v5 = vpop.eup %2006  ;;  %v1086_v6 = vadd.f32 %v1080_v57, %v1076_v4 }
 0x173   : > { %1090 = vst [vmem:[#allocation2 + $0x8] sm:$0xff] %v2007_v5 }
 0x174   : > { %2008 = vtanh.f32 %v1086_v6 }
 0x17a   : > { %v2009_v7 = vpop.eup %2008  ;;  %v1092_v9 = vld [vmem:[#allocation2 + $0x7] sm:$0xff] }
 0x17b   : > { %1091 = vst [vmem:[#allocation2 + $0x10] sm:$0xff] %v2009_v7  ;;  %v1113_v8 = vpack.c.bf16 %v2009_v7, %v2007_v5 }
 0x17d   : > { %1187 = vmatmul.bf16.vlgmr.msra.gmra.mxu1 %v1113_v8 }
 0x182   : > { %v1093_v10 = vld [vmem:[#allocation2 + $0xf] sm:$0xff] }
 0x183   : > { %v1255_v11 = vld [vmem:[#allocation2 + $0x9] sm:$0xff]  ;;  %v1256_v12 = vld [vmem:[#allocation2 + $0x11] sm:$0xff]  ;;  %v1094_v13 = vpack.c.bf16 %v1093_v10, %v1092_v9 }
 0x184   : > { %v1257_v14 = vpack.c.bf16 %v1256_v12, %v1255_v11 }
 0x185   : > { %1249 = vmatmul.bf16.vlgmr.msra.gmra.mxu2 %v1094_v13 }
 0x186   : > { %1331 = vmatmul.bf16.vlgmr.msra.gmra.mxu3 %v1257_v14 }
 0x1fa   : > { %v1188_v15 = vpop.f32.mrf.mxu1 }
 0x202   : > { %v1190_v23 = vpop.f32.mrf.mxu1 }
 0x208   : > { %v1250_v16 = vpop.f32.mrf.mxu2 }
 0x209   : > { %v1332_v17 = vpop.f32.mrf.mxu3  ;;  %v1251_v18 = vadd.f32 %v1250_v16, %v1188_v15 }
 0x20b   : > { %v1337_v20 = vadd.f32 %v1332_v17, %v1251_v18 }
 0x20d   : > { %v1343_v21 = vmul.f32 %v2000_v19, %v1337_v20 }
 0x20f   : > { %v1349_v26 = vadd.f32 %v2001_v22, %v1343_v21 }
 0x210   : > { %v1252_v24 = vpop.f32.mrf.mxu2 }
 0x211   : > { %v1253_v25 = vadd.f32 %v1252_v24, %v1190_v23  ;;  %v1334_v27 = vpop.f32.mrf.mxu3  ;;  %v1351_v30 = vadd.f32 %v1349_v26, %v1085_v51 }
 0x213   : > { %v1338_v28 = vadd.f32 %v1334_v27, %v1253_v25  ;;  %2010 = vtanh.f32 %v1351_v30 }
 0x215   : > { %v1344_v29 = vmul.f32 %v2000_v19, %v1338_v28 }
 0x217   : > { %v1350_v31 = vadd.f32 %v2001_v22, %v1344_v29 }
 0x219   : > { %v1352_v32 = vadd.f32 %v1350_v31, %v1087_v1  ;;  %v2011_v33 = vpop.eup %2010 }
 0x21b   : > { %2012 = vtanh.f32 %v1352_v32 }
 0x221   : > { %v2013_v34 = vpop.eup %2012 }
 0x222   : > { %v1951_v35 = vpack.c.bf16 %v2013_v34, %v2011_v33 }
 0x224   : > { %1952 = vst [vmem:[%s409_s18] sm:$0xff] %v1951_v35  }
 0x225 PF: > { %s22_s13 = sadd.s32 1, %s2118_s13  }
 0x226   : > { %p19_p7 = scmp.ge.s32.totalorder %s22_s13, 4  }
 0x228   :  { %21 = sbr.rel (!%p19_p7) target bundleno = 2 (0x2), region = 109 }
 0x22d   :  { %1380 = vsyncpa [#allocation4], 1 }
 0x22e   :  { %1382 = vsyncpa [#allocation4 + $0x1], 1 }
 0x22f   :  { %1383 = vsyncpa [#allocation6], 1 }

// kernel: multirescnn_forward.4
= control target key start
LH: loop header
LB: loop body
LE: loop exit
PB: predicated region body
PF: predicated region fallthrough
CT: control target
= control target key end

     0   :  { %15 = vsyncpa [#allocation4], 0  ;;  %s3203_s0 = inlined_call_operand.vmem [shape: bf16[2,16,128], index: 0, kind: input, shape index: {}]   ;;  %s3204_s1 = inlined_call_operand.hbm [shape: bf16[5,128,128], index: 1, kind: input, shape index: {}]   ;;  %s3205_s2 = inlined_call_operand.vmem [shape: f32[1,128], index: 2, kind: input, shape index: {}]   ;;  %s3206_s3 = inlined_call_operand.vmem [shape: f32[1,128], index: 3, kind: input, shape index: {}]   ;;  %s3207_s4 = inlined_call_operand.hbm [shape: bf16[5,128,256], index: 4, kind: input, shape index: {}]   ;;  %s3208_s5 = inlined_call_operand.vmem [shape: f32[1,256], index: 5, kind: input, shape index: {}]   ;;  %s3209_s6 = inlined_call_operand.vmem [shape: f32[1,256], index: 6, kind: input, shape index: {}]   ;;  %s3210_s7 = inlined_call_operand.hbm [shape: bf16[5,128,128], index: 7, kind: input, shape index: {}]   ;;  %s3211_s8 = inlined_call_operand.vmem [shape: f32[1,128], index: 8, kind: input, shape index: {}]   ;;  %s3212_s9 = inlined_call_operand.vmem [shape: f32[1,128], index: 9, kind: input, shape index: {}]   ;;  %s3213_s10 = inlined_call_operand.vmem [shape: bf16[2,16,128], index: 10, kind: output, shape index: {}]  }
   0x1   :  { %16 = vsyncpa [#allocation6], 0  ;;  %s3103_s13 = smov 0  }
   0x2 LB: > { %s299_s16 = sshll.u32 %s3207_s4, 4  ;;  %s3112_s17 = sadd.s32 4294967295, %s3038_s13   ;;  %s3038_s13 = sphi %s3103_s13, %s22_s13   ;;  %s300_s16 = int_to_ptr.hbm [resolvable:$true] %s299_s16 }
   0x3   : > { %p2047_p0 = scmp.ge.s32.totalorder %s3038_s13, 1  ;;  %p268_p1 = scmp.lt.s32.totalorder %s3038_s13, 3 }
   0x4   : > { %p2895_p2 = scmp.eq.s32.totalorder %s3112_s17, 0  ;;  %s3040_s19 = smov [#allocation5]  }
   0x5   : > { %p3117_p3 = pnand %p2047_p0, %p268_p1  ;;  %s301_s20 = sshll.u32 %s3040_s19, 4  ;;  %s302_s20 = int_to_ptr.vmem [resolvable:$true] %s301_s20 }
   0x6   : > { %s279_s23 = sshll.u32 %s3204_s1, 4  ;;  %s3041_s25 = smov [#allocation3]   ;;  %s280_s23 = int_to_ptr.hbm [resolvable:$true] %s279_s23 }
   0x7   : > { %p2885_p4 = pneg %p3117_p3  ;;  %s281_s26 = sshll.u32 %s3041_s25, 4  ;;  %s282_s26 = int_to_ptr.vmem [resolvable:$true] %s281_s26 }
   0x8   : > { %s3042_s27 = smov 128   ;;  %s3043_s28 = smov 8  }
   0x9   : > { %p3128_p5 = pnand %p2895_p2, %p2885_p4  ;;  %s319_s11 = sshll.u32 %s3210_s7, 4  ;;  %s320_s11 = int_to_ptr.hbm [resolvable:$true] %s319_s11 }
   0xa   : > { %s3044_s12 = smov 64   ;;  %s3045_s14 = smov 4  }
   0xb   : > { %2891 = dma.hbm_to_vmem [thread:$0]  (!%p3128_p5), %s300_s16, 10240, %s302_s20, [#allocation6], %s3042_s27, %s3042_s27, %s3043_s28  }
   0xc   : > { %2888 = dma.hbm_to_vmem [thread:$0]  (!%p3128_p5), %s280_s23, 5120, %s282_s26, [#allocation4], %s3044_s12, %s3044_s12, %s3045_s14  }
   0xd   : > { %s3046_s15 = smov [#allocation7]   ;;  %351 = sbr.rel (%p3117_p3) target bundleno = 606 (0x25e), region = 60 }
   0xe   : > { %s321_s19 = sshll.u32 %s3046_s15, 4  ;;  %s322_s19 = int_to_ptr.vmem [resolvable:$true] %s321_s19 }
   0xf   : > { %2894 = dma.hbm_to_vmem [thread:$0]  (!%p3128_p5), %s320_s11, 5120, %s322_s19, [#allocation6], %s3044_s12, %s3044_s12, %s3045_s14  }
  0x12   : > { %3029 = dma.done.wait (%p2895_p2), [#allocation4], 5120  }
  0x13   : > { %3031 = vsyncadd (%p2895_p2), [#allocation4], 4294962176 }
  0x14   : > { %3033 = dma.done.wait (%p2895_p2), [#allocation6], 15360  }
  0x15   : > { %3035 = vsyncadd (%p2895_p2), [#allocation6], 4294951936  ;;  %v3047_v0 = vmov 0.0   ;;  %p400_p6 = scmp.lt.s32.totalorder %s3112_s17, 1  ;;  %v2719_v1 = vld [vmem:[#allocation3 + $0x78] sm:$0xff]  ;;  %v2718_v5 = vld [vmem:[#allocation3 + $0x70] sm:$0xff] }
  0x16   : > { %411 = vst [vmem:[#allocation2 + $0x18] sm:$0xff] %v3047_v0  ;;  %v2727_v2 = vld [vmem:[#allocation3 + $0xb8] sm:$0xff]  ;;  %505 = vmatpush.bf16.msra.mxu0 %v2719_v1  ;;  %v2726_v6 = vld [vmem:[#allocation3 + $0xb0] sm:$0xff]  ;;  %v2717_v9 = vld [vmem:[#allocation3 + $0x68] sm:$0xff] }
  0x17   : > { %410 = vst [vmem:[#allocation2] sm:$0xff] %v3047_v0  ;;  %v2735_v3 = vld [vmem:[#allocation3 + $0xf8] sm:$0xff]  ;;  %s3217_s17 = smov (!%p400_p6, %s3112_s17), 1  ;;  %649 = vmatpush.bf16.msra.mxu2 %v2727_v2  ;;  %v2734_v7 = vld [vmem:[#allocation3 + $0xf0] sm:$0xff]  ;;  %v2725_v10 = vld [vmem:[#allocation3 + $0xa8] sm:$0xff] }
  0x18   : > { %v2711_v4 = vld [vmem:[#allocation3 + $0x38] sm:$0xff]  ;;  %733 = vmatpush.bf16.msra.mxu3 %v2735_v3  ;;  %v2710_v8 = vld [vmem:[#allocation3 + $0x30] sm:$0xff]  ;;  %s2702_s16 = sshll.u32 %s3217_s17, 3  ;;  %v2733_v11 = vld [vmem:[#allocation3 + $0xe8] sm:$0xff] }
  0x19   : > { %567 = vmatpush.bf16.msra.mxu1 %v2711_v4  ;;  %v2709_v12 = vld [vmem:[#allocation3 + $0x28] sm:$0xff]  ;;  %s3161_s21 = scalar_lea.vmem %s3203_s0, %s2702_s16  ;;  %v2716_v13 = vld [vmem:[#allocation3 + $0x60] sm:$0xff]  ;;  %v2715_v20 = vld [vmem:[#allocation3 + $0x58] sm:$0xff]  ;;  %s409_s18 = scalar_lea.vmem %s3213_s10, %s2702_s16 }
  0x1a   : > { %506 = vmatpush.bf16.msra.mxu0 %v2718_v5  ;;  %v2724_v14 = vld [vmem:[#allocation3 + $0xa0] sm:$0xff]  ;;  %v2723_v21 = vld [vmem:[#allocation3 + $0x98] sm:$0xff]  ;;  %v2714_v24 = vld [vmem:[#allocation3 + $0x50] sm:$0xff] }
  0x1b   : > { %650 = vmatpush.bf16.msra.mxu2 %v2726_v6  ;;  %v2865_v15 = vld [vmem:[%s3161_s21] sm:$0xff]   ;;  %v2731_v22 = vld [vmem:[#allocation3 + $0xd8] sm:$0xff]  ;;  %v2722_v25 = vld [vmem:[#allocation3 + $0x90] sm:$0xff] }
  0x1c   : > { %734 = vmatpush.bf16.msra.mxu3 %v2734_v7  ;;  %v2732_v16 = vld [vmem:[#allocation3 + $0xe0] sm:$0xff]  ;;  %v2866_v18 = vunpack.c.l.bf16 %v2865_v15  ;;  %v2867_v19 = vunpack.c.h.bf16 %v2865_v15  ;;  %v2707_v23 = vld [vmem:[#allocation3 + $0x18] sm:$0xff]  ;;  %v2730_v26 = vld [vmem:[#allocation3 + $0xd0] sm:$0xff] }
  0x1d   : > { %568 = vmatpush.bf16.msra.mxu1 %v2710_v8  ;;  %v2708_v17 = vld [vmem:[#allocation3 + $0x20] sm:$0xff]  ;;  %v2706_v27 = vld [vmem:[#allocation3 + $0x10] sm:$0xff]  ;;  %v2713_v28 = vld [vmem:[#allocation3 + $0x48] sm:$0xff] }
  0x1e   : > { %507 = vmatpush.bf16.msra.mxu0 %v2717_v9  ;;  %416 = vst [vmem:[#allocation2 + $0x8] sm:$0xff] %v2866_v18  ;;  %v2721_v29 = vld [vmem:[#allocation3 + $0x88] sm:$0xff]  ;;  %v2712_v32 = vld [vmem:[#allocation3 + $0x40] sm:$0xff]  ;;  %v2743_v34 = vld [vmem:[#allocation3 + $0x138] sm:$0xff] }
  0x1f   : > { %651 = vmatpush.bf16.msra.mxu2 %v2725_v10  ;;  %417 = vst [vmem:[#allocation2 + $0x10] sm:$0xff] %v2867_v19  ;;  %v2729_v30 = vld [vmem:[#allocation3 + $0xc8] sm:$0xff]  ;;  %v2720_v33 = vld [vmem:[#allocation3 + $0x80] sm:$0xff]  ;;  %v2278_v46 = vld [vmem:[#allocation5 + $0xf0] sm:$0xf] }
  0x20   : > { %735 = vmatpush.bf16.msra.mxu3 %v2733_v11  ;;  %v2705_v31 = vld [vmem:[#allocation3 + $0x8] sm:$0xff]  ;;  %v2728_v37 = vld [vmem:[#allocation3 + $0xc0] sm:$0xff]  ;;  %v2775_v47 = vld [vmem:[#allocation5 + $0xf4] sm:$0xf0] }
  0x21   : > { %569 = vmatpush.bf16.msra.mxu1 %v2709_v12  ;;  %v2704_v40 = vld [vmem:[#allocation3] sm:$0xff]  ;;  %v2774_v48 = vld [vmem:[#allocation5 + $0xf4] sm:$0xf]  ;;  %v2279_v51 = vor.u32 %v2775_v47, %v2278_v46  ;;  %v2280_v52 = vld [vmem:[#allocation5 + $0xf8] sm:$0xf0] }
  0x22   : > { %508 = vmatpush.bf16.msra.mxu0 %v2716_v13  ;;  %v2917_v43 = vld [vmem:[%s3161_s21] sm:$0xff]  ;;  %v2742_v49 = vld [vmem:[#allocation3 + $0x130] sm:$0xff]  ;;  %v2283_v53 = vor.u32 %v2774_v48, %v2280_v52  ;;  %v2741_v54 = vld [vmem:[#allocation3 + $0x128] sm:$0xff] }
  0x23   : > { %652 = vmatpush.bf16.msra.mxu2 %v2724_v14  ;;  %v2740_v55 = vld [vmem:[#allocation3 + $0x120] sm:$0xff]  ;;  %v2739_v56 = vld [vmem:[#allocation3 + $0x118] sm:$0xff]  ;;  %v2738_v57 = vld [vmem:[#allocation3 + $0x110] sm:$0xff] }
  0x24   : > { %736 = vmatpush.bf16.msra.mxu3 %v2732_v16  ;;  %v2737_v58 = vld [vmem:[#allocation3 + $0x108] sm:$0xff]  ;;  %v2736_v59 = vld [vmem:[#allocation3 + $0x100] sm:$0xff]  ;;  %v2262_v5 = vld [vmem:[#allocation5 + $0xd0] sm:$0xf] }
  0x25   : > { %570 = vmatpush.bf16.msra.mxu1 %v2708_v17  ;;  %v437_v35 = vld [vmem:[#allocation2 + $0x7] sm:$0xff]  ;;  %v2270_v63 = vld [vmem:[#allocation5 + $0xe0] sm:$0xf]  ;;  %v2771_v6 = vld [vmem:[#allocation5 + $0xd4] sm:$0xf0] }
  0x26   : > { %509 = vmatpush.bf16.msra.mxu0 %v2715_v20  ;;  %v438_v36 = vld [vmem:[#allocation2 + $0xf] sm:$0xff]  ;;  %v418_v41 = vld [vmem:[#allocation2 + $0x6] sm:$0xff]  ;;  %v2263_v8 = vor.u32 %v2771_v6, %v2262_v5  ;;  %v2264_v9 = vld [vmem:[#allocation5 + $0xd8] sm:$0xf0] }
  0x27   : > { %653 = vmatpush.bf16.msra.mxu2 %v2723_v21  ;;  %v665_v38 = vld [vmem:[#allocation2 + $0x9] sm:$0xff]  ;;  %v666_v39 = vld [vmem:[#allocation2 + $0x11] sm:$0xff]  ;;  %v439_v44 = vpack.c.bf16 %v438_v36, %v437_v35  ;;  %v2772_v1 = vld [vmem:[#allocation5 + $0xe4] sm:$0xf] }
  0x28   : > { %737 = vmatpush.bf16.msra.mxu3 %v2731_v22  ;;  %v419_v42 = vld [vmem:[#allocation2 + $0xe] sm:$0xff]  ;;  %v667_v45 = vpack.c.bf16 %v666_v39, %v665_v38  ;;  %v2773_v0 = vld [vmem:[#allocation5 + $0xe4] sm:$0xf0]  ;;  %v2254_v11 = vld [vmem:[#allocation5 + $0xc0] sm:$0xf] }
  0x29   : > { %571 = vmatpush.bf16.msra.mxu1 %v2707_v23  ;;  %v420_v50 = vpack.c.bf16 %v419_v42, %v418_v41  ;;  %v749_v60 = vld [vmem:[#allocation2 + $0xa] sm:$0xff]  ;;  %v750_v61 = vld [vmem:[#allocation2 + $0x12] sm:$0xff]  ;;  %v2271_v2 = vor.u32 %v2773_v0, %v2270_v63  ;;  %v2768_v13 = vld [vmem:[#allocation5 + $0xc4] sm:$0xf] }
  0x2a   : > { %510 = vmatpush.bf16.msra.mxu0 %v2714_v24  ;;  %v751_v62 = vpack.c.bf16 %v750_v61, %v749_v60  ;;  %v2272_v3 = vld [vmem:[#allocation5 + $0xe8] sm:$0xf0]  ;;  %v2770_v7 = vld [vmem:[#allocation5 + $0xd4] sm:$0xf]  ;;  %v2769_v12 = vld [vmem:[#allocation5 + $0xc4] sm:$0xf0] }
  0x2b   : > { %654 = vmatpush.bf16.msra.mxu2 %v2722_v25  ;;  %v2275_v4 = vor.u32 %v2772_v1, %v2272_v3  ;;  %v2267_v10 = vor.u32 %v2770_v7, %v2264_v9  ;;  %v2255_v14 = vor.u32 %v2769_v12, %v2254_v11  ;;  %v2256_v15 = vld [vmem:[#allocation5 + $0xc8] sm:$0xf0]  ;;  %v2342_v16 = vld [vmem:[#allocation5 + $0x70] sm:$0xf]  ;;  %v2759_v17 = vld [vmem:[#allocation5 + $0x74] sm:$0xf0] }
  0x2c   : > { %738 = vmatpush.bf16.msra.mxu3 %v2730_v26  ;;  %v2259_v18 = vor.u32 %v2768_v13, %v2256_v15  ;;  %v2343_v19 = vor.u32 %v2759_v17, %v2342_v16  ;;  %v2758_v20 = vld [vmem:[#allocation5 + $0x74] sm:$0xf]  ;;  %v2344_v21 = vld [vmem:[#allocation5 + $0x78] sm:$0xf0]  ;;  %v2246_v23 = vld [vmem:[#allocation5 + $0xb0] sm:$0xf] }
  0x2d   : > { %572 = vmatpush.bf16.msra.mxu1 %v2706_v27  ;;  %v2347_v22 = vor.u32 %v2758_v20, %v2344_v21  ;;  %v2767_v24 = vld [vmem:[#allocation5 + $0xb4] sm:$0xf0]  ;;  %v2766_v25 = vld [vmem:[#allocation5 + $0xb4] sm:$0xf]  ;;  %v2248_v27 = vld [vmem:[#allocation5 + $0xb8] sm:$0xf0] }
  0x2e   : > { %511 = vmatpush.bf16.msra.mxu0 %v2713_v28  ;;  %v2247_v26 = vor.u32 %v2767_v24, %v2246_v23  ;;  %v2334_v28 = vld [vmem:[#allocation5 + $0x60] sm:$0xf]  ;;  %v2765_v36 = vld [vmem:[#allocation5 + $0xa4] sm:$0xf0]  ;;  %v2240_v38 = vld [vmem:[#allocation5 + $0xa8] sm:$0xf0] }
  0x2f   : > { %655 = vmatpush.bf16.msra.mxu2 %v2721_v29  ;;  %v2757_v29 = vld [vmem:[#allocation5 + $0x64] sm:$0xf0]  ;;  %v2326_v41 = vld [vmem:[#allocation5 + $0x50] sm:$0xf]  ;;  %v2755_v42 = vld [vmem:[#allocation5 + $0x54] sm:$0xf0] }
  0x30   : > { %739 = vmatpush.bf16.msra.mxu3 %v2729_v30  ;;  %v2251_v30 = vor.u32 %v2766_v25, %v2248_v27  ;;  %v2230_v46 = vld [vmem:[#allocation5 + $0x90] sm:$0xf]  ;;  %v2763_v47 = vld [vmem:[#allocation5 + $0x94] sm:$0xf0]  ;;  %v2761_v60 = vld [vmem:[#allocation5 + $0x84] sm:$0xf0] }
  0x31   : > { %573 = vmatpush.bf16.msra.mxu1 %v2705_v31  ;;  %v2335_v31 = vor.u32 %v2757_v29, %v2334_v28  ;;  %v2760_v61 = vld [vmem:[#allocation5 + $0x84] sm:$0xf]  ;;  %v2224_v63 = vld [vmem:[#allocation5 + $0x88] sm:$0xf0]  ;;  %v2310_v0 = vld [vmem:[#allocation5 + $0x30] sm:$0xf] }
  0x32   : > { %512 = vmatpush.bf16.msra.mxu0 %v2712_v32  ;;  %v2756_v32 = vld [vmem:[#allocation5 + $0x64] sm:$0xf]  ;;  %v2227_v1 = vor.u32 %v2760_v61, %v2224_v63  ;;  %v2750_v3 = vld [vmem:[#allocation5 + $0x34] sm:$0xf]  ;;  %v2406_v7 = vld [vmem:[#allocation5 + $0x170] sm:$0xf] }
  0x33   : > { %656 = vmatpush.bf16.msra.mxu2 %v2720_v33  ;;  %v2336_v33 = vld [vmem:[#allocation5 + $0x68] sm:$0xf0]  ;;  %v2408_v11 = vld [vmem:[#allocation5 + $0x178] sm:$0xf0]  ;;  %v2302_v13 = vld [vmem:[#allocation5 + $0x20] sm:$0xf] }
  0x34   : > { %740 = vmatpush.bf16.msra.mxu3 %v2728_v37  ;;  %v2339_v35 = vor.u32 %v2756_v32, %v2336_v33  ;;  %v2764_v37 = vld [vmem:[#allocation5 + $0xa4] sm:$0xf]  ;;  %v2304_v17 = vld [vmem:[#allocation5 + $0x28] sm:$0xf0]  ;;  %v2294_v25 = vld [vmem:[#allocation5 + $0x10] sm:$0xf] }
  0x35   : > { %574 = vmatpush.bf16.msra.mxu1 %v2704_v40  ;;  %513 = vmatmul.bf16.vlgmr.msra.gmra.mxu0 %v439_v44  ;;  %v2243_v40 = vor.u32 %v2764_v37, %v2240_v38  ;;  %v2327_v44 = vor.u32 %v2755_v42, %v2326_v41  ;;  %v2748_v15 = vld [vmem:[#allocation5 + $0x24] sm:$0xf]  ;;  %v2400_v23 = vld [vmem:[#allocation5 + $0x168] sm:$0xf0]  ;;  %v2746_v27 = vld [vmem:[#allocation5 + $0x14] sm:$0xf] }
  0x36   : > { %817 = vmatpush.bf16.msrb.mxu0 %v2743_v34  ;;  %657 = vmatmul.bf16.vlgmr.msra.gmra.mxu2 %v2917_v43  ;;  %v2238_v34 = vld [vmem:[#allocation5 + $0xa0] sm:$0xf]  ;;  %v2754_v43 = vld [vmem:[#allocation5 + $0x54] sm:$0xf]  ;;  %v2307_v20 = vor.u32 %v2748_v15, %v2304_v17  ;;  %v2296_v29 = vld [vmem:[#allocation5 + $0x18] sm:$0xf0] }
  0x37   : > { %741 = vmatmul.bf16.vlgmr.msra.gmra.mxu3 %v667_v45  ;;  %982 = vmatpush.bf16.msrb.mxu2 %v2283_v53  ;;  %v2239_v39 = vor.u32 %v2765_v36, %v2238_v34  ;;  %v2328_v45 = vld [vmem:[#allocation5 + $0x58] sm:$0xf0]  ;;  %v2318_v53 = vld [vmem:[#allocation5 + $0x40] sm:$0xf]  ;;  %v2299_v32 = vor.u32 %v2746_v27, %v2296_v29  ;;  %v2786_v34 = vld [vmem:[#allocation5 + $0x154] sm:$0xf] }
  0x38   : > { %575 = vmatmul.bf16.vlgmr.msra.gmra.mxu1 %v420_v50  ;;  %1076 = vmatpush.bf16.msrb.mxu3 %v2343_v19  ;;  %v2331_v48 = vor.u32 %v2754_v43, %v2328_v45  ;;  %v2232_v50 = vld [vmem:[#allocation5 + $0x98] sm:$0xf0]  ;;  %v2789_v19 = vld [vmem:[#allocation5 + $0x164] sm:$0xf0]  ;;  %v2286_v37 = vld [vmem:[#allocation5] sm:$0xf] }
  0x39   : > { %968 = vmatpush.bf16.msrb.mxu1 %v2279_v51  ;;  %v2231_v51 = vor.u32 %v2763_v47, %v2230_v46  ;;  %v2745_v38 = vld [vmem:[#allocation5 + $0x4] sm:$0xf0]  ;;  %v2288_v42 = vld [vmem:[#allocation5 + $0x8] sm:$0xf0]  ;;  %v2382_v43 = vld [vmem:[#allocation5 + $0x140] sm:$0xf] }
  0x3a   : > { %818 = vmatpush.bf16.msrb.mxu0 %v2742_v49  ;;  %v2762_v49 = vld [vmem:[#allocation5 + $0x94] sm:$0xf]  ;;  %v2287_v41 = vor.u32 %v2745_v38, %v2286_v37  ;;  %v2784_v47 = vld [vmem:[#allocation5 + $0x144] sm:$0xf]  ;;  %v2376_v61 = vld [vmem:[#allocation5 + $0x138] sm:$0xf0] }
  0x3b   : > { %983 = vmatpush.bf16.msrb.mxu2 %v2275_v4  ;;  %v2235_v52 = vor.u32 %v2762_v49, %v2232_v50  ;;  %v2312_v4 = vld [vmem:[#allocation5 + $0x38] sm:$0xf0]  ;;  %v2470_v49 = vld [vmem:[#allocation5 + $0x1f0] sm:$0xf]  ;;  %v2805_v63 = vld [vmem:[#allocation5 + $0x1e4] sm:$0xf0] }
  0x3c   : > { %1077 = vmatpush.bf16.msrb.mxu3 %v2335_v31  ;;  %v2315_v6 = vor.u32 %v2750_v3, %v2312_v4  ;;  %v2787_v31 = vld [vmem:[#allocation5 + $0x154] sm:$0xf0]  ;;  %v2464_v3 = vld [vmem:[#allocation5 + $0x1e8] sm:$0xf0]  ;;  %v2456_v17 = vld [vmem:[#allocation5 + $0x1d8] sm:$0xf0] }
  0x3d   : > { %969 = vmatpush.bf16.msrb.mxu1 %v2271_v2  ;;  %v2751_v2 = vld [vmem:[#allocation5 + $0x34] sm:$0xf0]  ;;  %v2448_v29 = vld [vmem:[#allocation5 + $0x1c8] sm:$0xf0]  ;;  %v2777_v37 = vld [vmem:[#allocation5 + $0x104] sm:$0xf0] }
  0x3e   : > { %819 = vmatpush.bf16.msrb.mxu0 %v2741_v54  ;;  %v2753_v54 = vld [vmem:[#allocation5 + $0x44] sm:$0xf0]  ;;  %v2311_v5 = vor.u32 %v2751_v2, %v2310_v0  ;;  %v2804_v2 = vld [vmem:[#allocation5 + $0x1e4] sm:$0xf] }
  0x3f   : > { %984 = vmatpush.bf16.msrb.mxu2 %v2267_v10  ;;  %v2790_v10 = vld [vmem:[#allocation5 + $0x174] sm:$0xf]  ;;  %v2467_v4 = vor.u32 %v2804_v2, %v2464_v3  ;;  %v2776_v38 = vld [vmem:[#allocation5 + $0x104] sm:$0xf] }
  0x40   : > { %1078 = vmatpush.bf16.msrb.mxu3 %v2327_v44  ;;  %v2411_v12 = vor.u32 %v2790_v10, %v2408_v11  ;;  %v2785_v44 = vld [vmem:[#allocation5 + $0x144] sm:$0xf0]  ;;  %v2368_v10 = vld [vmem:[#allocation5 + $0x128] sm:$0xf0]  ;;  %v2454_v11 = vld [vmem:[#allocation5 + $0x1d0] sm:$0xf] }
  0x41   : > { %970 = vmatpush.bf16.msrb.mxu1 %v2263_v8  ;;  %v2791_v8 = vld [vmem:[#allocation5 + $0x174] sm:$0xf0]  ;;  %v2383_v46 = vor.u32 %v2785_v44, %v2382_v43  ;;  %v2438_v43 = vld [vmem:[#allocation5 + $0x1b0] sm:$0xf]  ;;  %v2794_v2 = vld [vmem:[#allocation5 + $0x194] sm:$0xf] }
  0x42   : > { %820 = vmatpush.bf16.msrb.mxu0 %v2740_v55  ;;  %v2752_v55 = vld [vmem:[#allocation5 + $0x44] sm:$0xf]  ;;  %v2407_v9 = vor.u32 %v2791_v8, %v2406_v7  ;;  %v2799_v44 = vld [vmem:[#allocation5 + $0x1b4] sm:$0xf0] }
  0x43   : > { %985 = vmatpush.bf16.msrb.mxu2 %v2259_v18  ;;  %v2398_v18 = vld [vmem:[#allocation5 + $0x160] sm:$0xf]  ;;  %v2780_v7 = vld [vmem:[#allocation5 + $0x124] sm:$0xf] }
  0x44   : > { %v2399_v21 = vor.u32 %v2789_v19, %v2398_v18  ;;  %v2358_v18 = vld [vmem:[#allocation5 + $0x110] sm:$0xf] }
  0x45   : > { %971 = vmatpush.bf16.msrb.mxu1 %v2255_v14  ;;  %v2749_v14 = vld [vmem:[#allocation5 + $0x24] sm:$0xf0] }
  0x46   : > { %821 = vmatpush.bf16.msrb.mxu0 %v2739_v56  ;;  %v2319_v56 = vor.u32 %v2753_v54, %v2318_v53  ;;  %v2303_v16 = vor.u32 %v2749_v14, %v2302_v13  ;;  %v2472_v53 = vld [vmem:[#allocation5 + $0x1f8] sm:$0xf0]  ;;  %v2371_v14 = vor.u32 %v2780_v7, %v2368_v10  ;;  %v2793_v10 = vld [vmem:[#allocation5 + $0x184] sm:$0xf0] }
  0x47   : > { %986 = vmatpush.bf16.msrb.mxu2 %v2251_v30  ;;  %v2390_v30 = vld [vmem:[#allocation5 + $0x150] sm:$0xf] }
  0x48   : > { %1079 = vmatpush.bf16.msrb.mxu3 %v2319_v56  ;;  %v2391_v33 = vor.u32 %v2787_v31, %v2390_v30  ;;  %v2374_v56 = vld [vmem:[#allocation5 + $0x130] sm:$0xf] }
  0x49   : > { %972 = vmatpush.bf16.msrb.mxu1 %v2247_v26  ;;  %v2747_v26 = vld [vmem:[#allocation5 + $0x14] sm:$0xf0] }
  0x4a   : > { %822 = vmatpush.bf16.msrb.mxu0 %v2738_v57  ;;  %v2320_v57 = vld [vmem:[#allocation5 + $0x48] sm:$0xf0]  ;;  %v2295_v28 = vor.u32 %v2747_v26, %v2294_v25  ;;  %v2801_v25 = vld [vmem:[#allocation5 + $0x1c4] sm:$0xf0]  ;;  %v2800_v26 = vld [vmem:[#allocation5 + $0x1c4] sm:$0xf] }
  0x4b   : > { %987 = vmatpush.bf16.msrb.mxu2 %v2243_v40 }
  0x4c   : > { %1080 = vmatpush.bf16.msrb.mxu3 %v2311_v5  ;;  %v2366_v5 = vld [vmem:[#allocation5 + $0x120] sm:$0xf] }
  0x4d   : > { %973 = vmatpush.bf16.msrb.mxu1 %v2239_v39  ;;  %v2744_v39 = vld [vmem:[#allocation5 + $0x4] sm:$0xf] }
  0x4e   : > { %823 = vmatpush.bf16.msrb.mxu0 %v2737_v58  ;;  %v2323_v58 = vor.u32 %v2752_v55, %v2320_v57  ;;  %v2291_v45 = vor.u32 %v2744_v39, %v2288_v42  ;;  %v2783_v57 = vld [vmem:[#allocation5 + $0x134] sm:$0xf0]  ;;  %v2352_v42 = vld [vmem:[#allocation5 + $0x108] sm:$0xf0] }
  0x4f   : > { %988 = vmatpush.bf16.msrb.mxu2 %v2235_v52  ;;  %v2806_v52 = vld [vmem:[#allocation5 + $0x1f4] sm:$0xf] }
  0x50   : > { %1081 = vmatpush.bf16.msrb.mxu3 %v2303_v16  ;;  %v2475_v55 = vor.u32 %v2806_v52, %v2472_v53  ;;  %v2802_v16 = vld [vmem:[#allocation5 + $0x1d4] sm:$0xf]  ;;  %v2919_v52 = vld [vmem:[%s3206_s3] ss:$0 sm:$0xff] }
  0x51   : > { %974 = vmatpush.bf16.msrb.mxu1 %v2231_v51  ;;  %v2807_v51 = vld [vmem:[#allocation5 + $0x1f4] sm:$0xf0] }
  0x52   : > { %824 = vmatpush.bf16.msrb.mxu0 %v2736_v59  ;;  %v2222_v59 = vld [vmem:[#allocation5 + $0x80] sm:$0xf]  ;;  %v2471_v54 = vor.u32 %v2807_v51, %v2470_v49  ;;  %v2798_v49 = vld [vmem:[#allocation5 + $0x1b4] sm:$0xf] }
  0x53   : > { %989 = vmatpush.bf16.msrb.mxu2 %v2227_v1 }
  0x54   : > { %1082 = vmatpush.bf16.msrb.mxu3 %v2295_v28 }
  0x55   : > { %825 = vmatmul.bf16.vlgmr.msrb.gmra.mxu0 %v751_v62  ;;  %v2223_v62 = vor.u32 %v2761_v60, %v2222_v59  ;;  %v2375_v60 = vor.u32 %v2783_v57, %v2374_v56  ;;  %v2796_v56 = vld [vmem:[#allocation5 + $0x1a4] sm:$0xf] }
  0x56   : > { %1090 = vmatpush.bf16.msra.mxu0 %v2347_v22  ;;  %v2788_v22 = vld [vmem:[#allocation5 + $0x164] sm:$0xf] }
  0x57   : > { %975 = vmatpush.bf16.msrb.mxu1 %v2223_v62  ;;  %1218 = vmatpush.bf16.msra.mxu2 %v2411_v12  ;;  %v2403_v24 = vor.u32 %v2788_v22, %v2400_v23  ;;  %v2462_v62 = vld [vmem:[#allocation5 + $0x1e0] sm:$0xf]  ;;  %v2803_v12 = vld [vmem:[#allocation5 + $0x1d4] sm:$0xf0]  ;;  %v2778_v22 = vld [vmem:[#allocation5 + $0x114] sm:$0xf] }
  0x58   : > { %1083 = vmatpush.bf16.msrb.mxu3 %v2287_v41  ;;  %v2463_v1 = vor.u32 %v2805_v63, %v2462_v62  ;;  %v2455_v15 = vor.u32 %v2803_v12, %v2454_v11  ;;  %v2360_v23 = vld [vmem:[#allocation5 + $0x118] sm:$0xf0]  ;;  %v2792_v11 = vld [vmem:[#allocation5 + $0x184] sm:$0xf] }
  0x59   : > { %v2363_v31 = vor.u32 %v2778_v22, %v2360_v23  ;;  %v2536_v22 = vld [vmem:[#allocation5 + $0x278] sm:$0xf0] }
  0x5a   : > { %1091 = vmatpush.bf16.msra.mxu0 %v2339_v35  ;;  %v2392_v35 = vld [vmem:[#allocation5 + $0x158] sm:$0xf0] }
  0x5b   : > { %1204 = vmatpush.bf16.msra.mxu1 %v2407_v9  ;;  %1219 = vmatpush.bf16.msra.mxu2 %v2403_v24  ;;  %v2395_v36 = vor.u32 %v2786_v34, %v2392_v35  ;;  %v2446_v24 = vld [vmem:[#allocation5 + $0x1c0] sm:$0xf]  ;;  %v2451_v34 = vor.u32 %v2800_v26, %v2448_v29 }
  0x5c   : > { %1336 = vmatpush.bf16.msra.mxu3 %v2471_v54  ;;  %v2918_v35 = vld [vmem:[%s3205_s2] ss:$0 sm:$0xff] }
  0x5d   : > { %v2430_v54 = vld [vmem:[#allocation5 + $0x1a0] sm:$0xf] }
  0x5e   : > { %1092 = vmatpush.bf16.msra.mxu0 %v2331_v48  ;;  %v2384_v48 = vld [vmem:[#allocation5 + $0x148] sm:$0xf0] }
  0x5f   : > { %1205 = vmatpush.bf16.msra.mxu1 %v2399_v21  ;;  %1220 = vmatpush.bf16.msra.mxu2 %v2395_v36  ;;  %v2387_v50 = vor.u32 %v2784_v47, %v2384_v48  ;;  %v2779_v21 = vld [vmem:[#allocation5 + $0x114] sm:$0xf0]  ;;  %v2350_v36 = vld [vmem:[#allocation5 + $0x100] sm:$0xf]  ;;  %v2355_v47 = vor.u32 %v2776_v38, %v2352_v42  ;;  %v2439_v48 = vor.u32 %v2799_v44, %v2438_v43  ;;  %v2817_v44 = vld [vmem:[#allocation5 + $0x244] sm:$0xf0] }
  0x60   : > { %1337 = vmatpush.bf16.msra.mxu3 %v2463_v1  ;;  %v2359_v28 = vor.u32 %v2779_v21, %v2358_v18  ;;  %v2351_v41 = vor.u32 %v2777_v37, %v2350_v36  ;;  %v2795_v1 = vld [vmem:[#allocation5 + $0x194] sm:$0xf0]  ;;  %v2822_v21 = vld [vmem:[#allocation5 + $0x274] sm:$0xf]  ;;  %v2518_v37 = vld [vmem:[#allocation5 + $0x250] sm:$0xf] }
  0x61   : > { %v2819_v38 = vld [vmem:[#allocation5 + $0x254] sm:$0xf0]  ;;  %v2510_v43 = vld [vmem:[#allocation5 + $0x240] sm:$0xf] }
  0x62   : > { %1093 = vmatpush.bf16.msra.mxu0 %v2323_v58  ;;  %v2782_v58 = vld [vmem:[#allocation5 + $0x134] sm:$0xf] }
  0x63   : > { %1206 = vmatpush.bf16.msra.mxu1 %v2391_v33  ;;  %1221 = vmatpush.bf16.msra.mxu2 %v2387_v50  ;;  %v2379_v0 = vor.u32 %v2782_v58, %v2376_v61  ;;  %v2440_v50 = vld [vmem:[#allocation5 + $0x1b8] sm:$0xf0] }
  0x64   : > { %1338 = vmatpush.bf16.msra.mxu3 %v2455_v15  ;;  %v2443_v53 = vor.u32 %v2798_v49, %v2440_v50  ;;  %v2502_v49 = vld [vmem:[#allocation5 + $0x230] sm:$0xf]  ;;  %v2815_v50 = vld [vmem:[#allocation5 + $0x234] sm:$0xf0] }
  0x66   : > { %1094 = vmatpush.bf16.msra.mxu0 %v2315_v6  ;;  %v2781_v6 = vld [vmem:[#allocation5 + $0x124] sm:$0xf0] }
  0x67   : > { %1207 = vmatpush.bf16.msra.mxu1 %v2383_v46  ;;  %v2367_v9 = vor.u32 %v2781_v6, %v2366_v5  ;;  %1222 = vmatpush.bf16.msra.mxu2 %v2379_v0  ;;  %v2422_v0 = vld [vmem:[#allocation5 + $0x190] sm:$0xf]  ;;  %v2424_v5 = vld [vmem:[#allocation5 + $0x198] sm:$0xf0] }
  0x68   : > { %v2427_v7 = vor.u32 %v2794_v2, %v2424_v5  ;;  %v2811_v2 = vld [vmem:[#allocation5 + $0x214] sm:$0xf0] }
  0x6a   : > { %1095 = vmatpush.bf16.msra.mxu0 %v2307_v20  ;;  %v2459_v20 = vor.u32 %v2802_v16, %v2456_v17 }
  0x6b   : > { %1208 = vmatpush.bf16.msra.mxu1 %v2375_v60  ;;  %1223 = vmatpush.bf16.msra.mxu2 %v2371_v14  ;;  %v2432_v60 = vld [vmem:[#allocation5 + $0x1a8] sm:$0xf0] }
  0x6c   : > { %v2435_v62 = vor.u32 %v2796_v56, %v2432_v60  ;;  %v2416_v14 = vld [vmem:[#allocation5 + $0x188] sm:$0xf0]  ;;  %v2503_v56 = vor.u32 %v2815_v50, %v2502_v49  ;;  %v2813_v60 = vld [vmem:[#allocation5 + $0x224] sm:$0xf0]  ;;  %v2826_v50 = vld [vmem:[#allocation7 + $0x10] sm:$0xff] }
  0x6d   : > { %v2419_v15 = vor.u32 %v2792_v11, %v2416_v14  ;;  %v2841_v49 = vld [vmem:[#allocation7 + $0x88] sm:$0xff] }
  0x6e   : > { %1096 = vmatpush.bf16.msra.mxu0 %v2299_v32  ;;  %v2447_v32 = vor.u32 %v2801_v25, %v2446_v24 }
  0x6f   : > { %1209 = vmatpush.bf16.msra.mxu1 %v2367_v9  ;;  %1224 = vmatpush.bf16.msra.mxu2 %v2363_v31  ;;  %v2414_v9 = vld [vmem:[#allocation5 + $0x180] sm:$0xf] }
  0x70   : > { %1339 = vmatpush.bf16.msra.mxu3 %v2447_v32  ;;  %v2526_v31 = vld [vmem:[#allocation5 + $0x260] sm:$0xf]  ;;  %v2821_v32 = vld [vmem:[#allocation5 + $0x264] sm:$0xf0] }
  0x72   : > { %1097 = vmatpush.bf16.msra.mxu0 %v2291_v45 }
  0x73   : > { %1210 = vmatpush.bf16.msra.mxu1 %v2359_v28  ;;  %1225 = vmatpush.bf16.msra.mxu2 %v2355_v47  ;;  %v2511_v47 = vor.u32 %v2817_v44, %v2510_v43  ;;  %v2832_v43 = vld [vmem:[#allocation7 + $0x40] sm:$0xff] }
  0x74   : > { %1340 = vmatpush.bf16.msra.mxu3 %v2439_v48 }
  0x76   : > { %1350 = vmatpush.bf16.msrb.mxu0 %v2475_v55  ;;  %v2797_v55 = vld [vmem:[#allocation5 + $0x1a4] sm:$0xf0] }
  0x77   : > { %1211 = vmatpush.bf16.msra.mxu1 %v2351_v41  ;;  %v2519_v41 = vor.u32 %v2819_v38, %v2518_v37  ;;  %v2833_v37 = vld [vmem:[#allocation7 + $0x48] sm:$0xff]  ;;  %v2828_v38 = vld [vmem:[#allocation7 + $0x20] sm:$0xff] }
  0x7a   : > { %1351 = vmatpush.bf16.msrb.mxu0 %v2467_v4  ;;  %v2423_v4 = vor.u32 %v2795_v1, %v2422_v0  ;;  %v2486_v1 = vld [vmem:[#allocation5 + $0x210] sm:$0xf] }
  0x7b   : > { %v2487_v5 = vor.u32 %v2811_v2, %v2486_v1  ;;  %v1500_v1 = vld [vmem:[%s3208_s5] sm:$0x3] }
  0x7e   : > { %1352 = vmatpush.bf16.msrb.mxu0 %v2459_v20  ;;  %v2823_v20 = vld [vmem:[#allocation5 + $0x274] sm:$0xf0] }
  0x82   : > { %1353 = vmatpush.bf16.msrb.mxu0 %v2451_v34  ;;  %v2528_v34 = vld [vmem:[#allocation5 + $0x268] sm:$0xf0] }
  0x86   : > { %1354 = vmatpush.bf16.msrb.mxu0 %v2443_v53 }
  0x8a   : > { %1355 = vmatpush.bf16.msrb.mxu0 %v2435_v62  ;;  %v2496_v62 = vld [vmem:[#allocation5 + $0x228] sm:$0xf0] }
  0x8e   : > { %1356 = vmatpush.bf16.msrb.mxu0 %v2427_v7  ;;  %v2478_v7 = vld [vmem:[#allocation5 + $0x200] sm:$0xf] }
  0x92   : > { %1357 = vmatpush.bf16.msrb.mxu0 %v2419_v15 }
  0xb2   : > { %v514_v40 = vpop.f32.mrf.mxu0 }
  0xb5   : > { %v576_v59 = vpop.f32.mrf.mxu1 }
  0xb6   : > { %v577_v13 = vadd.f32 %v576_v59, %v514_v40  ;;  %v2431_v59 = vor.u32 %v2797_v55, %v2430_v54 }
  0xb8   : > { %1341 = vmatpush.bf16.msra.mxu3 %v2431_v59 }
  0xb9   : > { %v658_v8 = vpop.f32.mrf.mxu2 }
  0xba   : > { %v516_v19 = vpop.f32.mrf.mxu0  ;;  %v742_v27 = vpop.f32.mrf.mxu3  ;;  %v663_v30 = vadd.f32 %v658_v8, %v577_v13  ;;  %v2415_v13 = vor.u32 %v2793_v10, %v2414_v9  ;;  %v2808_v9 = vld [vmem:[#allocation5 + $0x204] sm:$0xf]  ;;  %v2480_v10 = vld [vmem:[#allocation5 + $0x208] sm:$0xf0] }
  0xbc   : > { %v747_v39 = vadd.f32 %v742_v27, %v663_v30  ;;  %1342 = vmatpush.bf16.msra.mxu3 %v2423_v4  ;;  %v2539_v30 = vor.u32 %v2822_v21, %v2536_v22  ;;  %v2488_v4 = vld [vmem:[#allocation5 + $0x218] sm:$0xf0]  ;;  %v2836_v21 = vld [vmem:[#allocation7 + $0x60] sm:$0xff] }
  0xbd   : > { %v578_v33 = vpop.f32.mrf.mxu1 }
  0xbe   : > { %v579_v40 = vadd.f32 %v578_v33, %v516_v19  ;;  %v2534_v19 = vld [vmem:[#allocation5 + $0x270] sm:$0xf]  ;;  %v2820_v33 = vld [vmem:[#allocation5 + $0x264] sm:$0xf] }
  0xbf   : > { %v2535_v29 = vor.u32 %v2823_v20, %v2534_v19  ;;  %v2531_v36 = vor.u32 %v2820_v33, %v2528_v34  ;;  %v2837_v19 = vld [vmem:[#allocation7 + $0x68] sm:$0xff]  ;;  %v2846_v20 = vld [vmem:[#allocation7 + $0xb0] sm:$0xff] }
  0xc0   : > { %1343 = vmatpush.bf16.msra.mxu3 %v2415_v13  ;;  %v2829_v34 = vld [vmem:[#allocation7 + $0x28] sm:$0xff] }
  0xc1   : > { %v660_v45 = vpop.f32.mrf.mxu2 }
  0xc2   : > { %v664_v57 = vadd.f32 %v660_v45, %v579_v40  ;;  %v744_v61 = vpop.f32.mrf.mxu3  ;;  %v2520_v40 = vld [vmem:[#allocation5 + $0x258] sm:$0xf0]  ;;  %v2816_v45 = vld [vmem:[#allocation5 + $0x244] sm:$0xf] }
  0xc4   : > { %v748_v3 = vadd.f32 %v744_v61, %v664_v57  ;;  %v2812_v61 = vld [vmem:[#allocation5 + $0x224] sm:$0xf] }
  0xc5   : > { %v2499_v0 = vor.u32 %v2812_v61, %v2496_v62  ;;  %v2848_v61 = vld [vmem:[#allocation7 + $0xc0] sm:$0xff] }
  0xd2   : > { %v826_v46 = vpop.f32.mrf.mxu0 }
  0xd3   : > { %v831_v51 = vadd.f32 %v826_v46, %v747_v39  ;;  %v2818_v39 = vld [vmem:[#allocation5 + $0x254] sm:$0xf]  ;;  %v2512_v46 = vld [vmem:[#allocation5 + $0x248] sm:$0xf0] }
  0xd4   : > { %v2523_v42 = vor.u32 %v2818_v39, %v2520_v40  ;;  %v2515_v48 = vor.u32 %v2816_v45, %v2512_v46  ;;  %v2852_v39 = vld [vmem:[#allocation7 + $0xe0] sm:$0xff]  ;;  %v2842_v40 = vld [vmem:[#allocation7 + $0x90] sm:$0xff]  ;;  %v2827_v45 = vld [vmem:[#allocation7 + $0x18] sm:$0xff] }
  0xd5   : > { %v837_v58 = vmul.f32 %v2918_v35, %v831_v51  ;;  %v2814_v51 = vld [vmem:[#allocation5 + $0x234] sm:$0xf]  ;;  %v2851_v46 = vld [vmem:[#allocation7 + $0xd8] sm:$0xff] }
  0xd7   : > { %v843_v63 = vadd.f32 %v2919_v52, %v837_v58  ;;  %v2494_v58 = vld [vmem:[#allocation5 + $0x220] sm:$0xf] }
  0xd9   : > { %2922 = vtanh.f32 %v843_v63  ;;  %v2495_v63 = vor.u32 %v2813_v60, %v2494_v58  ;;  %v2824_v60 = vld [vmem:[#allocation7] sm:$0xff] }
  0xda   : > { %v828_v6 = vpop.f32.mrf.mxu0 }
  0xdb   : > { %v832_v8 = vadd.f32 %v828_v6, %v748_v3  ;;  %v2810_v3 = vld [vmem:[#allocation5 + $0x214] sm:$0xf] }
  0xdc   : > { %v2491_v6 = vor.u32 %v2810_v3, %v2488_v4  ;;  %v1510_v4 = vld [vmem:[%s3209_s6] sm:$0x3] }
  0xdd   : > { %v838_v12 = vmul.f32 %v2918_v35, %v832_v8  ;;  %v2527_v35 = vor.u32 %v2821_v32, %v2526_v31  ;;  %v2809_v8 = vld [vmem:[#allocation5 + $0x204] sm:$0xf0]  ;;  %v2834_v32 = vld [vmem:[#allocation7 + $0x50] sm:$0xff] }
  0xde   : > { %v2479_v11 = vor.u32 %v2809_v8, %v2478_v7  ;;  %v1502_v7 = vperm.slane %v1500_v1, 0 }
  0xdf   : > { %v2923_v16 = vpop.eup %2922  ;;  %v844_v17 = vadd.f32 %v2919_v52, %v838_v12  ;;  %v2504_v52 = vld [vmem:[#allocation5 + $0x238] sm:$0xf0]  ;;  %v2483_v12 = vor.u32 %v2808_v9, %v2480_v10 }
  0xe0   : > { %847 = vst [vmem:[#allocation2 + $0x8] sm:$0xff] %v2923_v16  ;;  %v2507_v57 = vor.u32 %v2814_v51, %v2504_v52  ;;  %v2850_v51 = vld [vmem:[#allocation7 + $0xd0] sm:$0xff]  ;;  %v2859_v9 = vld [vmem:[#allocation7 + $0x118] sm:$0xff] }
  0xe1   : > { %2924 = vtanh.f32 %v844_v17  ;;  %v2838_v17 = vld [vmem:[#allocation7 + $0x70] sm:$0xff] }
  0xe2   : > { %v2862_v52 = vld [vmem:[#allocation7 + $0x130] sm:$0xff] }
  0xe7   : > { %v2925_v18 = vpop.eup %2924  ;;  %v868_v23 = vld [vmem:[#allocation2 + $0x7] sm:$0xff] }
  0xe8   : > { %848 = vst [vmem:[#allocation2 + $0x10] sm:$0xff] %v2925_v18  ;;  %v849_v25 = vld [vmem:[#allocation2 + $0x6] sm:$0xff]  ;;  %v1106_v55 = vpack.c.bf16 %v2925_v18, %v2923_v16  ;;  %v2839_v16 = vld [vmem:[#allocation7 + $0x78] sm:$0xff] }
  0xe9   : > { %v2847_v18 = vld [vmem:[#allocation7 + $0xb8] sm:$0xff] }
  0xef   : > { %v869_v24 = vld [vmem:[#allocation2 + $0xf] sm:$0xff] }
  0xf0   : > { %v850_v26 = vld [vmem:[#allocation2 + $0xe] sm:$0xff]  ;;  %v870_v27 = vpack.c.bf16 %v869_v24, %v868_v23  ;;  %v2831_v23 = vld [vmem:[#allocation7 + $0x38] sm:$0xff] }
  0xf1   : > { %v851_v28 = vpack.c.bf16 %v850_v26, %v849_v25  ;;  %v1236_v53 = vld [vmem:[#allocation2 + $0x9] sm:$0xff]  ;;  %v1237_v54 = vld [vmem:[#allocation2 + $0x11] sm:$0xff] }
  0xf2   : > { %976 = vmatmul.bf16.vlgmr.msrb.gmra.mxu1 %v870_v27  ;;  %990 = vmatmul.bf16.vlgmr.msrb.gmra.mxu2 %v870_v27  ;;  %v1238_v59 = vpack.c.bf16 %v1237_v54, %v1236_v53  ;;  %v1368_v13 = vld [vmem:[#allocation2 + $0xa] sm:$0xff]  ;;  %v1369_v14 = vld [vmem:[#allocation2 + $0x12] sm:$0xff]  ;;  %v2840_v53 = vld [vmem:[#allocation7 + $0x80] sm:$0xff] }
  0xf3   : > { %1084 = vmatmul.bf16.vlgmr.msrb.gmra.mxu3 %v851_v28  ;;  %1098 = vmatmul.bf16.vlgmr.msra.gmra.mxu0 %v851_v28  ;;  %v1370_v15 = vpack.c.bf16 %v1369_v14, %v1368_v13  ;;  %v2855_v24 = vld [vmem:[#allocation7 + $0xf8] sm:$0xff]  ;;  %v2845_v25 = vld [vmem:[#allocation7 + $0xa8] sm:$0xff]  ;;  %v2830_v27 = vld [vmem:[#allocation7 + $0x30] sm:$0xff] }
  0xf4   : > { %1468 = vmatpush.bf16.msrb.mxu1 %v2535_v29  ;;  %1482 = vmatpush.bf16.msrb.mxu2 %v2539_v30  ;;  %v2835_v26 = vld [vmem:[#allocation7 + $0x58] sm:$0xff]  ;;  %v2854_v28 = vld [vmem:[#allocation7 + $0xf0] sm:$0xff]  ;;  %v2844_v29 = vld [vmem:[#allocation7 + $0xa0] sm:$0xff] }
  0xf5   : > { %1611 = vmatpush.bf16.msrb.mxu3 %v2839_v16  ;;  %1673 = vmatpush.bf16.msra.mxu0 %v2831_v23  ;;  %v2858_v14 = vld [vmem:[#allocation7 + $0x110] sm:$0xff]  ;;  %v1513_v23 = vperm.slane %v1510_v4, 1 }
  0xf8   : > { %1469 = vmatpush.bf16.msrb.mxu1 %v2527_v35  ;;  %1483 = vmatpush.bf16.msrb.mxu2 %v2531_v36  ;;  %v2853_v35 = vld [vmem:[#allocation7 + $0xe8] sm:$0xff]  ;;  %v2843_v36 = vld [vmem:[#allocation7 + $0x98] sm:$0xff] }
  0xf9   : > { %1612 = vmatpush.bf16.msrb.mxu3 %v2838_v17  ;;  %1674 = vmatpush.bf16.msra.mxu0 %v2830_v27 }
  0xfc   : > { %1470 = vmatpush.bf16.msrb.mxu1 %v2519_v41  ;;  %1484 = vmatpush.bf16.msrb.mxu2 %v2523_v42 }
  0xfd   : > { %1613 = vmatpush.bf16.msrb.mxu3 %v2837_v19  ;;  %1675 = vmatpush.bf16.msra.mxu0 %v2829_v34 }
 0x100   : > { %1471 = vmatpush.bf16.msrb.mxu1 %v2511_v47  ;;  %1485 = vmatpush.bf16.msrb.mxu2 %v2515_v48  ;;  %v2863_v47 = vld [vmem:[#allocation7 + $0x138] sm:$0xff] }
 0x101   : > { %1614 = vmatpush.bf16.msrb.mxu3 %v2836_v21  ;;  %1676 = vmatpush.bf16.msra.mxu0 %v2828_v38  ;;  %v1503_v21 = vperm.slane %v1500_v1, 1 }
 0x102   : > { %1212 = vmatmul.bf16.vlgmr.msra.gmra.mxu1 %v1106_v55  ;;  %1226 = vmatmul.bf16.vlgmr.msra.gmra.mxu2 %v1106_v55  ;;  %v2825_v55 = vld [vmem:[#allocation7 + $0x8] sm:$0xff] }
 0x103   : > { %1344 = vmatmul.bf16.vlgmr.msra.gmra.mxu3 %v1238_v59  ;;  %1358 = vmatmul.bf16.vlgmr.msrb.gmra.mxu0 %v1238_v59 }
 0x104   : > { %1472 = vmatpush.bf16.msrb.mxu1 %v2503_v56  ;;  %1486 = vmatpush.bf16.msrb.mxu2 %v2507_v57  ;;  %v2849_v56 = vld [vmem:[#allocation7 + $0xc8] sm:$0xff] }
 0x105   : > { %1615 = vmatpush.bf16.msrb.mxu3 %v2835_v26  ;;  %1677 = vmatpush.bf16.msra.mxu0 %v2827_v45  ;;  %v2861_v57 = vld [vmem:[#allocation7 + $0x128] sm:$0xff] }
 0x108   : > { %1473 = vmatpush.bf16.msrb.mxu1 %v2495_v63  ;;  %1487 = vmatpush.bf16.msrb.mxu2 %v2499_v0  ;;  %v2860_v63 = vld [vmem:[#allocation7 + $0x120] sm:$0xff] }
 0x109   : > { %1616 = vmatpush.bf16.msrb.mxu3 %v2834_v32  ;;  %1678 = vmatpush.bf16.msra.mxu0 %v2826_v50  ;;  %v2856_v32 = vld [vmem:[#allocation7 + $0x100] sm:$0xff] }
 0x10c   : > { %1474 = vmatpush.bf16.msrb.mxu1 %v2487_v5  ;;  %1488 = vmatpush.bf16.msrb.mxu2 %v2491_v6 }
 0x10d   : > { %1617 = vmatpush.bf16.msrb.mxu3 %v2833_v37  ;;  %1679 = vmatpush.bf16.msra.mxu0 %v2825_v55 }
 0x110   : > { %1475 = vmatpush.bf16.msrb.mxu1 %v2479_v11  ;;  %1489 = vmatpush.bf16.msrb.mxu2 %v2483_v12  ;;  %v1512_v12 = vperm.slane %v1510_v4, 0  ;;  %v2920_v4 = vld [vmem:[%s3211_s8] ss:$0 sm:$0xff] }
 0x111   : > { %1618 = vmatpush.bf16.msrb.mxu3 %v2832_v43  ;;  %1680 = vmatpush.bf16.msra.mxu0 %v2824_v60 }
 0x113   : > { %1476 = vmatmul.bf16.vlgmr.msrb.gmra.mxu1 %v1370_v15  ;;  %1490 = vmatmul.bf16.vlgmr.msrb.gmra.mxu2 %v1370_v15 }
 0x114   : > { %1755 = vmatpush.bf16.msra.mxu1 %v2847_v18  ;;  %1839 = vmatpush.bf16.msra.mxu2 %v2855_v24  ;;  %v2857_v24 = vld [vmem:[#allocation7 + $0x108] sm:$0xff] }
 0x115   : > { %1923 = vmatpush.bf16.msra.mxu3 %v2863_v47 }
 0x118   : > { %1756 = vmatpush.bf16.msra.mxu1 %v2846_v20  ;;  %1840 = vmatpush.bf16.msra.mxu2 %v2854_v28 }
 0x119   : > { %1924 = vmatpush.bf16.msra.mxu3 %v2862_v52 }
 0x11c   : > { %1757 = vmatpush.bf16.msra.mxu1 %v2845_v25  ;;  %1841 = vmatpush.bf16.msra.mxu2 %v2853_v35 }
 0x11d   : > { %1925 = vmatpush.bf16.msra.mxu3 %v2861_v57 }
 0x120   : > { %1758 = vmatpush.bf16.msra.mxu1 %v2844_v29  ;;  %1842 = vmatpush.bf16.msra.mxu2 %v2852_v39 }
 0x121   : > { %1926 = vmatpush.bf16.msra.mxu3 %v2860_v63 }
 0x124   : > { %1759 = vmatpush.bf16.msra.mxu1 %v2843_v36  ;;  %1843 = vmatpush.bf16.msra.mxu2 %v2851_v46 }
 0x125   : > { %1927 = vmatpush.bf16.msra.mxu3 %v2859_v9  ;;  %v2921_v9 = vld [vmem:[%s3212_s9] ss:$0 sm:$0xff] }
 0x128   : > { %1760 = vmatpush.bf16.msra.mxu1 %v2842_v40  ;;  %1844 = vmatpush.bf16.msra.mxu2 %v2850_v51 }
 0x129   : > { %1928 = vmatpush.bf16.msra.mxu3 %v2858_v14 }
 0x12c   : > { %1761 = vmatpush.bf16.msra.mxu1 %v2841_v49  ;;  %1845 = vmatpush.bf16.msra.mxu2 %v2849_v56 }
 0x12d   : > { %1929 = vmatpush.bf16.msra.mxu3 %v2857_v24 }
 0x130   : > { %1762 = vmatpush.bf16.msra.mxu1 %v2840_v53  ;;  %1846 = vmatpush.bf16.msra.mxu2 %v2848_v61 }
 0x131   : > { %1930 = vmatpush.bf16.msra.mxu3 %v2856_v32 }
 0x16f   : > { %v3171_v22 = vpop.f32.mrf.mxu1 }
 0x170   : > { %v1099_v42 = vpop.f32.mrf.mxu0 }
 0x175   : > { %v3173_v30 = vpop.f32.mrf.mxu2 }
 0x176   : > { %v1085_v31 = vpop.f32.mrf.mxu3  ;;  %v1100_v5 = vadd.f32 %v1099_v42, %v3173_v30 }
 0x177   : > { %v3175_v33 = vpop.f32.mrf.mxu1  ;;  %v1086_v0 = vadd.f32 %v1085_v31, %v3171_v22 }
 0x178   : > { %v1101_v59 = vpop.f32.mrf.mxu0 }
 0x17d   : > { %v3177_v41 = vpop.f32.mrf.mxu2 }
 0x17e   : > { %v1087_v48 = vpop.f32.mrf.mxu3  ;;  %v1102_v25 = vadd.f32 %v1101_v59, %v3177_v41 }
 0x17f   : > { %v1213_v44 = vpop.f32.mrf.mxu1  ;;  %v1088_v15 = vadd.f32 %v1087_v48, %v3175_v33 }
 0x180   : > { %v1232_v2 = vadd.f32 %v1213_v44, %v1086_v0  ;;  %v1359_v13 = vpop.f32.mrf.mxu0 }
 0x185   : > { %v1227_v54 = vpop.f32.mrf.mxu2 }
 0x186   : > { %v1345_v62 = vpop.f32.mrf.mxu3  ;;  %v1233_v10 = vadd.f32 %v1227_v54, %v1100_v5 }
 0x187   : > { %v1215_v58 = vpop.f32.mrf.mxu1  ;;  %v1364_v6 = vadd.f32 %v1345_v62, %v1232_v2 }
 0x188   : > { %v1234_v18 = vadd.f32 %v1215_v58, %v1088_v15  ;;  %v1365_v20 = vadd.f32 %v1359_v13, %v1233_v10  ;;  %v1361_v35 = vpop.f32.mrf.mxu0 }
 0x18d   : > { %v1229_v3 = vpop.f32.mrf.mxu2 }
 0x18e   : > { %v1347_v17 = vpop.f32.mrf.mxu3  ;;  %v1235_v29 = vadd.f32 %v1229_v3, %v1102_v25 }
 0x18f   : > { %v1366_v26 = vadd.f32 %v1347_v17, %v1234_v18 }
 0x190   : > { %v1477_v8 = vpop.f32.mrf.mxu1  ;;  %v1367_v38 = vadd.f32 %v1361_v35, %v1235_v29 }
 0x191   : > { %v1496_v11 = vadd.f32 %v1477_v8, %v1364_v6 }
 0x193   : > { %v1506_v16 = vmul.f32 %v1502_v7, %v1496_v11 }
 0x195   : > { %v1516_v19 = vadd.f32 %v1512_v12, %v1506_v16 }
 0x196   : > { %v1491_v22 = vpop.f32.mrf.mxu2 }
 0x197   : > { %2926 = vtanh.f32 %v1516_v19  ;;  %v1497_v27 = vadd.f32 %v1491_v22, %v1365_v20 }
 0x198   : > { %v1479_v28 = vpop.f32.mrf.mxu1 }
 0x199   : > { %v1507_v30 = vmul.f32 %v1503_v21, %v1497_v27  ;;  %v1498_v31 = vadd.f32 %v1479_v28, %v1366_v26 }
 0x19b   : > { %v1517_v33 = vadd.f32 %v1513_v23, %v1507_v30  ;;  %v1508_v34 = vmul.f32 %v1502_v7, %v1498_v31 }
 0x19d   : > { %v2927_v36 = vpop.eup %2926  ;;  %v1518_v37 = vadd.f32 %v1512_v12, %v1508_v34 }
 0x19e   : > { %1522 = vst [vmem:[#allocation2 + $0x8] sm:$0xff] %v2927_v36  ;;  %v1493_v39 = vpop.f32.mrf.mxu2 }
 0x19f   : > { %2928 = vtanh.f32 %v1518_v37  ;;  %v1499_v40 = vadd.f32 %v1493_v39, %v1367_v38 }
 0x1a1   : > { %v1509_v41 = vmul.f32 %v1503_v21, %v1499_v40 }
 0x1a3   : > { %v1519_v42 = vadd.f32 %v1513_v23, %v1509_v41 }
 0x1a5   : > { %v2929_v43 = vpop.eup %2928  ;;  %v1543_v45 = vld [vmem:[#allocation2 + $0x7] sm:$0xff] }
 0x1a6   : > { %1523 = vst [vmem:[#allocation2 + $0x10] sm:$0xff] %v2929_v43  ;;  %v1689_v44 = vpack.c.bf16 %v2929_v43, %v2927_v36  ;;  %v1524_v46 = vld [vmem:[#allocation2 + $0x6] sm:$0xff] }
 0x1a8   : > { %1763 = vmatmul.bf16.vlgmr.msra.gmra.mxu1 %v1689_v44 }
 0x1ad   : > { %v1544_v47 = vld [vmem:[#allocation2 + $0xf] sm:$0xff] }
 0x1ae   : > { %v1525_v48 = vld [vmem:[#allocation2 + $0xe] sm:$0xff]  ;;  %v1545_v50 = vpack.c.bf16 %v1544_v47, %v1543_v45 }
 0x1af   : > { %v1771_v49 = vld [vmem:[#allocation2 + $0x9] sm:$0xff]  ;;  %v1526_v51 = vpack.c.bf16 %v1525_v48, %v1524_v46  ;;  %v1772_v52 = vld [vmem:[#allocation2 + $0x11] sm:$0xff] }
 0x1b0   : > { %v1773_v53 = vpack.c.bf16 %v1772_v52, %v1771_v49  ;;  %1619 = vmatmul.bf16.vlgmr.msrb.gmra.mxu3 %v1545_v50  ;;  %v1855_v54 = vld [vmem:[#allocation2 + $0xa] sm:$0xff]  ;;  %v1856_v55 = vld [vmem:[#allocation2 + $0x12] sm:$0xff] }
 0x1b1   : > { %1681 = vmatmul.bf16.vlgmr.msra.gmra.mxu0 %v1526_v51  ;;  %v1857_v56 = vpack.c.bf16 %v1856_v55, %v1855_v54 }
 0x1b2   : > { %1847 = vmatmul.bf16.vlgmr.msra.gmra.mxu2 %v1773_v53 }
 0x1c0   : > { %1931 = vmatmul.bf16.vlgmr.msra.gmra.mxu3 %v1857_v56 }
 0x225   : > { %v1764_v60 = vpop.f32.mrf.mxu1 }
 0x22d   : > { %v1766_v6 = vpop.f32.mrf.mxu1 }
 0x22e   : > { %v1682_v58 = vpop.f32.mrf.mxu0 }
 0x233   : > { %v1620_v57 = vpop.f32.mrf.mxu3 }
 0x234   : > { %v1683_v59 = vadd.f32 %v1682_v58, %v1620_v57 }
 0x235   : > { %v1848_v63 = vpop.f32.mrf.mxu2 }
 0x236   : > { %v1769_v62 = vadd.f32 %v1764_v60, %v1683_v59  ;;  %v1684_v0 = vpop.f32.mrf.mxu0 }
 0x238   : > { %v1853_v1 = vadd.f32 %v1848_v63, %v1769_v62 }
 0x23b   : > { %v1622_v61 = vpop.f32.mrf.mxu3 }
 0x23c   : > { %v1685_v2 = vadd.f32 %v1684_v0, %v1622_v61 }
 0x23d   : > { %v1850_v10 = vpop.f32.mrf.mxu2 }
 0x23e   : > { %v1770_v7 = vadd.f32 %v1766_v6, %v1685_v2 }
 0x240   : > { %v1854_v11 = vadd.f32 %v1850_v10, %v1770_v7 }
 0x243   : > { %v1932_v3 = vpop.f32.mrf.mxu3 }
 0x244   : > { %v1937_v5 = vadd.f32 %v1932_v3, %v1853_v1 }
 0x246   : > { %v1943_v8 = vmul.f32 %v2920_v4, %v1937_v5 }
 0x248   : > { %v1949_v12 = vadd.f32 %v2921_v9, %v1943_v8 }
 0x24a   : > { %v1951_v16 = vadd.f32 %v1949_v12, %v1517_v33 }
 0x24b   : > { %v1934_v13 = vpop.f32.mrf.mxu3 }
 0x24c   : > { %v1938_v14 = vadd.f32 %v1934_v13, %v1854_v11  ;;  %2930 = vtanh.f32 %v1951_v16 }
 0x24e   : > { %v1944_v15 = vmul.f32 %v2920_v4, %v1938_v14 }
 0x250   : > { %v1950_v17 = vadd.f32 %v2921_v9, %v1944_v15 }
 0x252   : > { %v1952_v18 = vadd.f32 %v1950_v17, %v1519_v42  ;;  %v2931_v19 = vpop.eup %2930 }
 0x254   : > { %2932 = vtanh.f32 %v1952_v18 }
 0x25a   : > { %v2933_v20 = vpop.eup %2932 }
 0x25b   : > { %v2871_v21 = vpack.c.bf16 %v2933_v20, %v2931_v19 }
 0x25d   : > { %2872 = vst [vmem:[%s409_s18] sm:$0xff] %v2871_v21  }
 0x25e PF: > { %s22_s13 = sadd.s32 1, %s3038_s13  }
 0x25f   : > { %p19_p7 = scmp.ge.s32.totalorder %s22_s13, 4  }
 0x261   :  { %21 = sbr.rel (!%p19_p7) target bundleno = 2 (0x2), region = 115 }
 0x266   :  { %1980 = vsyncpa [#allocation4], 1 }
 0x267   :  { %1982 = vsyncpa [#allocation4 + $0x1], 1 }
 0x268   :  { %1983 = vsyncpa [#allocation6], 1 }

</bundles_post_ra>
